<compile_context>
chip_gen: v5e
topology: v5e:2x2
jax: 0.10.0
libtpu: 0.0.40
codegen_flags: <defaults>
</compile_context>

<pallas_src>
import jax
import jax.numpy as jnp
from jax.experimental import pallas as pl
from jax.experimental.pallas import tpu as pltpu


def _divisors(n):
    return [d for d in range(1, n + 1) if n % d == 0]


def _pick_tiles(N, C, H, W, r, itemsize, budget_bytes):
    """Choose (TN, TH) block sizes.

    - TH is a multiple of the dtype-aware sublane packing (8 f32 / 16 bf16 / 32 int8)
      or equal to H, so blocks satisfy the (8,128) rule and stay sublane-dense.
    - The double-buffered per-step footprint (input + output blocks) stays under
      budget_bytes whenever a legal tile allows it.
    - The grid has >= 2 total steps whenever the problem can be split (v7x megacore).
    """
    sub = max(8, 32 // max(1, itemsize))
    row_bytes = C * W * (1 + r * r) * itemsize            # one (n, h) row: in + out
    per_step = lambda tn, th: 2 * tn * th * row_bytes     # x2: double-buffered pipeline

    th_cands = sorted({d for d in _divisors(H) if d % sub == 0} | {H})
    th_fit = [t for t in th_cands if per_step(1, t) <= budget_bytes]
    TH = max(th_fit) if th_fit else min(th_cands)

    tn_cands = [d for d in _divisors(N) if d <= 8]        # small static unroll in-kernel
    tn_fit = [t for t in tn_cands if per_step(t, TH) <= budget_bytes]
    TN = max(tn_fit) if tn_fit else 1

    # Guarantee >= 2 grid steps so both v7x TensorCores get work.
    if (N // TN) * (H // TH) < 2:
        if N >= 2:
            TN = max(d for d in _divisors(N) if d < N)
        else:
            smaller = [t for t in th_cands if t < TH]
            if smaller:
                TH = max(smaller)
    return TN, TH


def _make_localprop_kernel(r, W, TN):
    Wr = W * r

    def kernel(x_ref, w_ref, b_ref, o_ref):
        # x_ref: (TN, C, TH, W)       raw input tile (no wrapper-side repeat)
        # w_ref: (r, C, 1, W*r)       per-offset-i lane-pattern weights (resident)
        # b_ref: (C, 1, 1)            bias (resident)
        # o_ref: (TN, C, TH, r*W*r)   output tile, last dim laid out [i, w, j]
        C, TH = x_ref.shape[1], x_ref.shape[2]
        # Hoist the bias broadcast out of the per-offset work (emitted once).
        bb = jnp.broadcast_to(b_ref[...], (C, TH, r * Wr))
        for n in range(TN):                                # static unroll, TN <= 8
            x = x_ref[n]                                   # (C, TH, W)
            # In-VMEM j-spread: xj[c, t, w*r + j] = x[c, t, w]  (interleave order).
            xj = jnp.broadcast_to(x[..., None], (C, TH, W, r)).reshape(C, TH, Wr)
            parts = [xj * w_ref[i] for i in range(r)]      # offset i -> lanes [i*Wr, (i+1)*Wr)
            cat = parts[0] if r == 1 else jnp.concatenate(parts, axis=-1)
            o_ref[n] = (cat + bb).astype(o_ref.dtype)      # one dense store per n

    return kernel


def local_prop(x, weight, bias, sample_rate, vmem_budget_bytes=12 << 20):
    """Depthwise ConvTranspose2d with kernel_size == stride == sample_rate.

    x: (N, C, H, W) NCHW; weight: (C, r, r); bias: (C,).  Returns (N, C, H*r, W*r).
    """
    N, C, H, W = x.shape
    r = int(sample_rate)
    Wr = W * r
    dt = x.dtype
    itemsize = jnp.dtype(dt).itemsize

    # ---- tiny resident operands (a few KiB, built once by XLA) -------------
    #   wv[i, c, 0, w*r + j] = weight[c, i, j]
    wt = jnp.transpose(weight.astype(dt), (1, 0, 2))                       # (r_i, C, r_j)
    wv = jnp.broadcast_to(wt[:, :, None, None, :], (r, C, 1, W, r)).reshape(r, C, 1, Wr)
    b3 = bias.astype(dt).reshape(C, 1, 1)

    # ---- tiling (dtype-aware sublanes, v7x-safe budget, >=2 grid steps) ----
    TN, TH = _pick_tiles(N, C, H, W, r, itemsize, vmem_budget_bytes)

    # Explicit VMEM limit derived from the real footprint (double-buffered
    # in/out blocks + resident operands + compute intermediates headroom).
    block_bytes = 2 * TN * C * TH * W * (1 + r * r) * itemsize
    resident_bytes = 2 * (r * C * Wr + C) * itemsize
    footprint = block_bytes + resident_bytes + (1 << 20)
    vmem_limit = int(min(max(footprint * 3, 16 << 20), 64 << 20))
    vmem_limit = max(vmem_limit, footprint + (1 << 20))

    out = pl.pallas_call(
        _make_localprop_kernel(r, W, TN),
        out_shape=jax.ShapeDtypeStruct((N, C, H, r * Wr), dt),
        grid=(N // TN, H // TH),
        in_specs=[
            pl.BlockSpec((TN, C, TH, W), lambda n, h: (n, 0, h, 0)),
            pl.BlockSpec((r, C, 1, Wr), lambda n, h: (0, 0, 0, 0)),    # resident weights
            pl.BlockSpec((C, 1, 1), lambda n, h: (0, 0, 0)),           # resident bias
        ],
        out_specs=pl.BlockSpec((TN, C, TH, r * Wr), lambda n, h: (n, 0, h, 0)),
        compiler_params=pltpu.CompilerParams(
            dimension_semantics=("parallel", "parallel"),
            vmem_limit_bytes=vmem_limit),
    )(x, wv, b3)                                                       # (N, C, H, r*W*r)

    # Free reshape: (N, C, H, r*W*r) is bit-identical to (N, C, H*r, W*r).
    return out.reshape(N, C, H * r, W * r)


def local_prop_reference(x, weight, bias, sample_rate):
    """Pure-JAX reference of the depthwise ConvTranspose2d (stride == kernel)."""
    N, C, H, W = x.shape
    r = sample_rate
    out6 = (x[:, :, :, None, :, None] * weight[None, :, None, :, None, :]
            + bias[None, :, None, None, None, None])                   # (N,C,H,r,W,r)
    return out6.reshape(N, C, H * r, W * r)


if __name__ == "__main__":
    # Small shapes consistent with the module: channels=4, sample_rate=2.
    N, C, H, W = 2, 4, 16, 16
    sample_rate = 2

    key = jax.random.PRNGKey(0)
    kx, kw, kb = jax.random.split(key, 3)

    x = jax.random.normal(kx, (N, C, H, W), dtype=jnp.float32)
    # ConvTranspose2d(C, C, kernel_size=r, stride=r, groups=C) weight is (C,1,r,r);
    # the singleton group dim is dropped -> (C, r, r).
    weight = jax.random.normal(kw, (C, sample_rate, sample_rate), dtype=jnp.float32) * 0.1
    bias = jax.random.normal(kb, (C,), dtype=jnp.float32) * 0.1

    y = local_prop(x, weight, bias, sample_rate)
    y = jax.block_until_ready(y)

    y_ref = local_prop_reference(x, weight, bias, sample_rate)
    assert y.shape == (N, C, H * sample_rate, W * sample_rate), y.shape
    assert jnp.allclose(y, y_ref, atol=1e-5, rtol=1e-5), "mismatch vs reference"

    print("KERNEL_OK")
</pallas_src>

<mosaic_0001>
module attributes {stable_mosaic.version = 11 : i64} {
  func.func @kernel(%arg0: i32, %arg1: i32, %arg2: memref<1x4x16x16xf32, #tpu.memory_space<vmem>>, %arg3: memref<2x4x1x32xf32, #tpu.memory_space<vmem>>, %arg4: memref<4x1x1xf32, #tpu.memory_space<vmem>>, %arg5: memref<1x4x16x64xf32, #tpu.memory_space<vmem>>) attributes {dimension_semantics = [#tpu.dimension_semantics<parallel>, #tpu.dimension_semantics<parallel>], iteration_bounds = array<i64: 2, 1>, scalar_prefetch = 0 : i64, scratch_operands = 0 : i64, tpu.core_type = #tpu.core_type<tc>, window_params = [{transform_indices = @transform_0, window_bounds = array<i64: 1, 4, 16, 16>}, {pipeline_mode = #tpu.pipeline_mode<synchronous>, transform_indices = @transform_1, window_bounds = array<i64: 2, 4, 1, 32>}, {pipeline_mode = #tpu.pipeline_mode<synchronous>, transform_indices = @transform_2, window_bounds = array<i64: 4, 1, 1>}, {transform_indices = @transform_3, window_bounds = array<i64: 1, 4, 16, 64>}]} {
    %c0 = arith.constant 0 : index
    %c0_0 = arith.constant 0 : index
    %c0_1 = arith.constant 0 : index
    %0 = vector.load %arg4[%c0, %c0_0, %c0_1] : memref<4x1x1xf32, #tpu.memory_space<vmem>>, vector<4x1x1xf32>
    %1 = vector.shape_cast %0 : vector<4x1x1xf32> to vector<4x1x1xf32>
    %2 = vector.broadcast %1 : vector<4x1x1xf32> to vector<4x16x64xf32>
    %c0_2 = arith.constant 0 : index
    %c0_3 = arith.constant 0 : index
    %c0_4 = arith.constant 0 : index
    %c0_5 = arith.constant 0 : index
    %3 = vector.load %arg2[%c0_2, %c0_3, %c0_4, %c0_5] : memref<1x4x16x16xf32, #tpu.memory_space<vmem>>, vector<1x4x16x16xf32>
    %4 = vector.shape_cast %3 : vector<1x4x16x16xf32> to vector<4x16x16xf32>
    %5 = vector.shape_cast %4 : vector<4x16x16xf32> to vector<4x16x16x1xf32>
    %6 = vector.shape_cast %5 : vector<4x16x16x1xf32> to vector<4x16x16x1xf32>
    %7 = vector.broadcast %6 : vector<4x16x16x1xf32> to vector<4x16x16x2xf32>
    %8 = vector.shape_cast %7 : vector<4x16x16x2xf32> to vector<4x16x32xf32>
    %c0_6 = arith.constant 0 : index
    %c0_7 = arith.constant 0 : index
    %c0_8 = arith.constant 0 : index
    %c0_9 = arith.constant 0 : index
    %9 = vector.load %arg3[%c0_6, %c0_7, %c0_8, %c0_9] : memref<2x4x1x32xf32, #tpu.memory_space<vmem>>, vector<1x4x1x32xf32>
    %10 = vector.shape_cast %9 : vector<1x4x1x32xf32> to vector<4x1x32xf32>
    %11 = vector.broadcast %10 : vector<4x1x32xf32> to vector<4x16x32xf32>
    %12 = arith.mulf %8, %11 : vector<4x16x32xf32>
    %c1 = arith.constant 1 : index
    %c0_10 = arith.constant 0 : index
    %c0_11 = arith.constant 0 : index
    %c0_12 = arith.constant 0 : index
    %13 = vector.load %arg3[%c1, %c0_10, %c0_11, %c0_12] : memref<2x4x1x32xf32, #tpu.memory_space<vmem>>, vector<1x4x1x32xf32>
    %14 = vector.shape_cast %13 : vector<1x4x1x32xf32> to vector<4x1x32xf32>
    %15 = vector.broadcast %14 : vector<4x1x32xf32> to vector<4x16x32xf32>
    %16 = arith.mulf %8, %15 : vector<4x16x32xf32>
    %17 = tpu.concatenate %12, %16 in 2 : vector<4x16x32xf32>, vector<4x16x32xf32> -> vector<4x16x64xf32>
    %18 = arith.addf %17, %2 : vector<4x16x64xf32>
    %c0_13 = arith.constant 0 : index
    %c0_14 = arith.constant 0 : index
    %c0_15 = arith.constant 0 : index
    %c0_16 = arith.constant 0 : index
    %19 = vector.load %arg5[%c0_13, %c0_14, %c0_15, %c0_16] : memref<1x4x16x64xf32, #tpu.memory_space<vmem>>, vector<1x4x16x64xf32>
    %20 = vector.shape_cast %19 : vector<1x4x16x64xf32> to vector<4x16x64xf32>
    %21 = vector.shape_cast %18 : vector<4x16x64xf32> to vector<1x4x16x64xf32>
    tpu.vector_store %arg5[%c0_13, %c0_14, %c0_15, %c0_16], %21 {strides = array<i32>} : memref<1x4x16x64xf32, #tpu.memory_space<vmem>>, vector<1x4x16x64xf32>,
    return
  }
  func.func @transform_0(%arg0: i32, %arg1: i32) -> (i32, i32, i32, i32) {
    %c0_i32 = arith.constant 0 : i32
    %c0_i32_0 = arith.constant 0 : i32
    %c0_i32_1 = arith.constant 0 : i32
    return %arg0, %c0_i32, %arg1, %c0_i32_0 : i32, i32, i32, i32
  }
  func.func @transform_1(%arg0: i32, %arg1: i32) -> (i32, i32, i32, i32) {
    %c0_i32 = arith.constant 0 : i32
    %c0_i32_0 = arith.constant 0 : i32
    %c0_i32_1 = arith.constant 0 : i32
    %c0_i32_2 = arith.constant 0 : i32
    %c0_i32_3 = arith.constant 0 : i32
    return %c0_i32, %c0_i32_0, %c0_i32_1, %c0_i32_2 : i32, i32, i32, i32
  }
  func.func @transform_2(%arg0: i32, %arg1: i32) -> (i32, i32, i32) {
    %c0_i32 = arith.constant 0 : i32
    %c0_i32_0 = arith.constant 0 : i32
    %c0_i32_1 = arith.constant 0 : i32
    %c0_i32_2 = arith.constant 0 : i32
    return %c0_i32, %c0_i32_0, %c0_i32_1 : i32, i32, i32
  }
  func.func @transform_3(%arg0: i32, %arg1: i32) -> (i32, i32, i32, i32) {
    %c0_i32 = arith.constant 0 : i32
    %c0_i32_0 = arith.constant 0 : i32
    %c0_i32_1 = arith.constant 0 : i32
    return %arg0, %c0_i32, %arg1, %c0_i32_0 : i32, i32, i32, i32
  }
}

</mosaic_0001>

<bundles_post_ra>
// kernel: tpu_custom_call.1
= control target key start
LH: loop header
LB: loop body
LE: loop exit
PB: predicated region body
PF: predicated region fallthrough
CT: control target
= control target key end

     0   :  { %s6443_s0 = inlined_call_operand.hbm [shape: f32[2,4,16,16], index: 0, kind: input, shape index: {}]   ;;  %s6444_s1 = inlined_call_operand.hbm [shape: f32[2,4,1,32], index: 1, kind: input, shape index: {}]   ;;  %s6445_s2 = inlined_call_operand.vmem [shape: f32[4,1,1], index: 2, kind: input, shape index: {}]   ;;  %s6446_s3 = inlined_call_operand.hbm [shape: f32[2,4,16,64], index: 3, kind: output, shape index: {}]  }
   0x1   :  { %6534 = sst [smem:[#allocation126_spill]] %s6444_s1 }
   0x2   :  { %8 = vsyncpa [#allocation3], 0 }
   0x3   :  { %10 = vsyncpa [#allocation3 + $0x1], 0 }
   0x4   :  { %11 = vsyncpa [#allocation6], 0 }
   0x5   :  { %12 = vsyncpa [#allocation4], 0 }
   0x6   :  { %14 = vsyncpa [#allocation4 + $0x1], 0  ;;  %s4106_s12 = smov 0   ;;  %s4108_s13 = smov 0  }
   0x7   :  { %s4110_s14 = smov 0   ;;  %s4112_s15 = smov 0  }
   0x8   :  { %s4114_s16 = smov 0   ;;  %s4116_s17 = smov 0  }
   0x9 LB: > { %s3726_s18 = sadd.s32 4294967295, %s4059_s17   ;;  %s3727_s19 = sadd.s32 4294967294, %s4059_s17   ;;  %s4059_s17 = sphi %s4116_s17, %s20_s17   ;;  %s4055_s16 = sphi %s4114_s16, %s6791_s16   ;;  %s4051_s15 = sphi %s4112_s15, %s6790_s15   ;;  %s4047_s14 = sphi %s4110_s14, %s6789_s14   ;;  %s4043_s13 = sphi %s4108_s13, %s6788_s13   ;;  %s4039_s12 = sphi %s4106_s12, %s6787_s12  }
   0xa   : > { %p54_p0 = scmp.ne.s32.totalorder %s4043_s13, %s4039_s12  ;;  %p4140_p1 = scmp.eq.s32.totalorder %s3726_s18, 0 }
   0xb   : > { %p4144_p2 = scmp.eq.s32.totalorder %s3726_s18, 1  ;;  %p128_p3 = scmp.eq.s32.totalorder %s3727_s19, 1 }
   0xc   : > { %p4150_p4 = por %p4140_p1, %p54_p0  ;;  %p3728_p5 = scmp.ge.s32.totalorder %s4059_s17, 1 }
   0xd   : > { %p4155_p6 = por %p128_p3, %p54_p0  ;;  %p135_p7 = scmp.lt.s32.totalorder %s4059_s17, 3 }
   0xe   : > { %s6539_s1 = sld [smem:[#allocation126_spill]]  ;;  %s4061_s28 = smov [#allocation5]  }
   0xf   : > { %p4163_p8 = pnand %p3728_p5, %p135_p7  ;;  %s148_s29 = sshll.u32 %s4061_s28, 4  ;;  %s149_s29 = int_to_ptr.vmem [resolvable:$true] %s148_s29 }
  0x10   : > { %p3730_p11 = scmp.ge.s32.totalorder %s4059_s17, 2  ;;  %s4062_s30 = smov 16  }
  0x11   : > { %p3753_p9 = pneg %p4163_p8  ;;  %s4063_s4 = smov 1  }
  0x12   : > { %s32_s5 = sadd.s32 1, %s4055_s16  ;;  %s41_s6 = sadd.s32 1, %s4047_s14 }
  0x13   : > { %p3754_p10 = pnand %p3753_p9, %p4140_p1  ;;  %p34_p12 = scmp.ge.s32.totalorder %s32_s5, 2 }
  0x14   : > { %s146_s26 = sshll.u32 %s6539_s1, 4  ;;  %p48_p13 = scmp.ne.s32.totalorder %s4047_s14, %s4043_s13  ;;  %s147_s26 = int_to_ptr.hbm [resolvable:$true] %s146_s26 }
  0x15   : > { %3756 = dma.hbm_to_vmem [thread:$0]  (!%p3754_p10), %s147_s26, 128, %s149_s29, [#allocation6], %s4062_s30, %s4062_s30, %s4063_s4  }
  0x16   : > { %p49_p0 = scmp.eq.s32.totalorder %s4059_s17, 0  ;;  %s6793_s5 = smov (%p34_p12, %s32_s5), 0 }
  0x17   : > { %p4185_p5 = por %p4144_p2, %p48_p13  ;;  %s36_s9 = ssub.s32 %s4055_s16, %s6793_s5 }
  0x18   : > { %p4179_p3 = por %p49_p0, %p48_p13  ;;  %p3766_p7 = scmp.lt.s32.totalorder %s4059_s17, 2 }
  0x19   : > { %p39_p9 = scmp.eq.s32.totalorder %s36_s9, 0  ;;  %s165_s10 = sand.u32 1, %s4047_s14  }
  0x1a   : > { %s3731_s11 = sshll.u32 %s165_s10, 6  ;;  %s3743_s19 = sshll.u32 %s4055_s16, 6 }
  0x1b   : > { %s4194_s18 = scalar_select %p39_p9, %s4047_s14, %s41_s6  }
  0x1c   : > { %s176_s26 = scalar_lea.hbm %s6443_s0, %s3743_s19  ;;  %s169_s28 = scalar_lea.vmem [#allocation2], %s3731_s11 }
  0x1d   : > { %s179_s29 = sshll.u32 %s169_s28, 4  ;;  %s177_s21 = sshll.u32 %s176_s26, 4  ;;  %s180_s29 = int_to_ptr.vmem [resolvable:$true] %s179_s29  ;;  %s178_s21 = int_to_ptr.hbm [resolvable:$true] %s177_s21 }
  0x1e   : > { %p3758_p2 = pnand %p3766_p7, %p4179_p3  ;;  %s166_s30 = scalar_lea.sflag [#allocation3], %s165_s10 }
  0x1f   : > { %s4064_s4 = smov 128   ;;  %s4065_s1 = smov 8  }
  0x20   : > { %3760 = dma.hbm_to_vmem [thread:$0]  (!%p3758_p2), %s178_s21, 1024, %s180_s29, %s166_s30, %s4064_s4, %s4064_s4, %s4065_s1  }
  0x21   : > { %191 = sbr.rel (%p4163_p8) target bundleno = 1287 (0x507), region = 32 }
  0x26   : > { %s4205_s6 = sand.u32 1, %s4043_s13  }
  0x27   : > { %s3735_s9 = sshll.u32 %s4205_s6, 6  ;;  %s194_s11 = scalar_lea.sflag [#allocation3], %s4205_s6 }
  0x28   : > { %s4211_s19 = scalar_lea.vmem [#allocation2], %s3735_s9 }
  0x29   : > { %4026 = dma.done.wait (%p4150_p4), %s194_s11, 1024  }
  0x2a   : > { %4028 = vsyncadd (%p4150_p4), %s194_s11, 4294966272 }
  0x2b   : > { %4030 = dma.done.wait (%p4140_p1), [#allocation6], 128  }
  0x2c   : > { %4032 = vsyncadd (%p4140_p1), [#allocation6], 4294967168  ;;  %v265_v0 = vlaneseq  ;;  %v4066_v1 = vmov 0   ;;  %v3898_v3 = vld [vmem:[%s6445_s2 + $0x2] ss:$0 sm:$0xff]  ;;  %v4251_v13 = vld [vmem:[%s4211_s19 + $0x8] sm:$0xff] }
  0x2d   : > { %3843 = vset.pattern.permute.xlu1 %v4066_v1  ;;  %3842 = vset.pattern.permute.xlu0 %v4066_v1  ;;  %v3899_v4 = vld [vmem:[%s6445_s2] ss:$0 sm:$0xff]  ;;  %v3900_v7 = vld [vmem:[%s6445_s2 + $0x3] ss:$0 sm:$0xff]  ;;  %v3901_v8 = vld [vmem:[%s6445_s2 + $0x1] ss:$0 sm:$0xff] }
  0x2e   : > { %v4221_v2 = vshrl.u32 %v265_v0, 7  ;;  %v4231_v5 = vld [vmem:[%s4211_s19] sm:$0xff]  ;;  %249 = vperm.xlu1 %3843, %v3898_v3   ;;  %241 = vperm.xlu0 %3842, %v3899_v4   ;;  %v407_v14 = vperm.slane %v4251_v13, 3  ;;  %v4257_v16 = vld [vmem:[%s4211_s19 + $0x10] sm:$0xff]  ;;  %v4271_v21 = vld [vmem:[%s4211_s19 + $0x18] sm:$0xff]  ;;  %v368_v29 = vperm.slane %v4251_v13, 0 }
  0x2f   : > { %v264_v6 = vperm.slane %v4231_v5, 0  ;;  %v277_v10 = vperm.slane %v4231_v5, 1  ;;  %v290_v11 = vperm.slane %v4231_v5, 2  ;;  %v342_v12 = vperm.slane %v4231_v5, 6  ;;  %v4281_v24 = vld [vmem:[%s4211_s19 + $0x20] sm:$0xff]  ;;  %v4289_v27 = vld [vmem:[%s4211_s19 + $0x28] sm:$0xff] }
  0x30   : > { %3844 = vset.pattern.permute.xlu2 %v4221_v2  ;;  %v4241_v9 = vadd.s32 8, %v4221_v2  ;;  %v303_v15 = vperm.slane %v4231_v5, 3  ;;  %v316_v17 = vperm.slane %v4231_v5, 4  ;;  %v472_v18 = vperm.slane %v4257_v16, 0  ;;  %v4301_v32 = vld [vmem:[%s4211_s19 + $0x30] sm:$0xff]  ;;  %v4309_v35 = vld [vmem:[%s4211_s19 + $0x38] sm:$0xff] }
  0x31   : > { %v329_v19 = vperm.slane %v4231_v5, 5  ;;  %v537_v20 = vperm.slane %v4257_v16, 5  ;;  %v6454_v22 = vperm.slane %v4271_v21, 2  ;;  %v6453_v23 = vperm.slane %v4271_v21, 7  ;;  %s4069_s26 = smov 2   ;;  %s4070_s28 = smov 4  }
  0x32   : > { %v355_v25 = vperm.slane %v4231_v5, 7  ;;  %v6452_v26 = vperm.slane %v4281_v24, 4  ;;  %v6451_v28 = vperm.slane %v4289_v27, 1  ;;  %v381_v30 = vperm.slane %v4251_v13, 1  ;;  %s4071_s29 = smov 6   ;;  %s4072_s21 = smov 8  }
  0x33   : > { %v6450_v31 = vperm.slane %v4289_v27, 6  ;;  %v394_v33 = vperm.slane %v4251_v13, 2  ;;  %v6449_v34 = vperm.slane %v4301_v32, 3  ;;  %v6448_v36 = vperm.slane %v4309_v35, 0  ;;  %s4073_s30 = smov 10   ;;  %s4074_s4 = smov 12  }
  0x34   : > { %v6447_v38 = vperm.slane %v4309_v35, 5  ;;  %v420_v42 = vperm.slane %v4251_v13, 4  ;;  %v4067_v44 = vmov 1983009808   ;;  %vm1097_vm0 = vcmask 1047556   ;;  %s4075_s11 = smov 14  }
  0x35   : > { %v1102_v45 = vunpack.c.l.s4 %v4067_v44  ;;  %v433_v50 = vperm.slane %v4251_v13, 5  ;;  %v446_v55 = vperm.slane %v4251_v13, 6  ;;  %v459_v63 = vperm.slane %v4251_v13, 7  ;;  %s4077_s1 = smov 18   ;;  %s4078_s27 = smov 20  }
  0x36   : > { %253 = vperm.xlu1 %3843, %v3900_v7   ;;  %245 = vperm.xlu0 %3842, %v3901_v8   ;;  %v498_v4 = vperm.slane %v4257_v16, 2  ;;  %vm3369_vm1 = vcmask 15360   ;;  %vm3378_vm2 = vcmask 31744   ;;  %vm3387_vm3 = vcmask 48128   ;;  %s4079_s22 = smov 22   ;;  %s4080_s7 = smov 24  }
  0x37   : > { %v4331_v49 = vunpack.c.0.s8 %v1102_v45  ;;  %vm3396_vm4 = vcmask 64512   ;;  %vm3405_vm5 = vcmask 80896   ;;  %vm3414_vm6 = vcmask 97280   ;;  %s4081_s20 = smov 26   ;;  %s4082_s10 = smov 28  }
  0x38   : > { %269 = vperm.xlu2 %3844, %v264_v6   ;;  %vm3423_vm7 = vcmask 113664   ;;  %vm3432_vm8 = vcmask 130048   ;;  %vm3441_vm9 = vcmask 146432   ;;  %s4083_s24 = smov 30   ;;  %vm3450_vm10 = vcmask 162816   ;;  %s4084_s25 = smov 32  }
  0x39   : > { %vm3459_vm11 = vcmask 179200   ;;  %vm3468_vm12 = vcmask 195584   ;;  %vm3477_vm13 = vcmask 211968   ;;  %vm3495_vm14 = vcmask 244736  }
  0x3a   : > { %vm3486_vm15 = vcmask 228352  }
  0x3e   : > { %3847 = vset.pattern.permute.xlu1 %v4241_v9  ;;  %3845 = vset.pattern.permute.xlu0 %v4221_v2 }
  0x40   : > { %3846 = vset.pattern.permute.xlu2 %v4241_v9 }
  0x46   : > { %288 = vperm.xlu1 %3847, %v277_v10   ;;  %282 = vperm.xlu0 %3845, %v277_v10  }
  0x48   : > { %275 = vperm.xlu2 %3846, %v264_v6  }
  0x4e   : > { %301 = vperm.xlu1 %3847, %v290_v11   ;;  %347 = vperm.xlu0 %3845, %v342_v12  }
  0x50   : > { %3848 = vset.pattern.permute.xlu2 %v4221_v2 }
  0x56   : > { %3849 = vset.pattern.permute.xlu1 %v4221_v2  ;;  %412 = vperm.xlu0 %3845, %v407_v14  }
  0x58   : > { %295 = vperm.xlu2 %3848, %v290_v11  }
  0x5e   : > { %321 = vperm.xlu1 %3849, %v316_v17   ;;  %477 = vperm.xlu0 %3845, %v472_v18  }
  0x60   : > { %308 = vperm.xlu2 %3848, %v303_v15  }
  0x66   : > { %334 = vperm.xlu1 %3849, %v329_v19   ;;  %542 = vperm.xlu0 %3845, %v537_v20  }
  0x68   : > { %3850 = vset.pattern.permute.xlu2 %v4241_v9 }
  0x6e   : > { %3851 = vset.pattern.permute.xlu1 %v4241_v9  ;;  %607 = vperm.xlu0 %3845, %v6454_v22  }
  0x70   : > { %327 = vperm.xlu2 %3850, %v316_v17  }
  0x76   : > { %353 = vperm.xlu1 %3851, %v342_v12   ;;  %672 = vperm.xlu0 %3845, %v6453_v23  }
  0x78   : > { %340 = vperm.xlu2 %3850, %v329_v19  }
  0x7e   : > { %366 = vperm.xlu1 %3851, %v355_v25   ;;  %737 = vperm.xlu0 %3845, %v6452_v26  }
  0x80   : > { %3852 = vset.pattern.permute.xlu2 %v4221_v2 }
  0x86   : > { %3853 = vset.pattern.permute.xlu1 %v4221_v2  ;;  %802 = vperm.xlu0 %3845, %v6451_v28   ;;  %v6461_v28 = vperm.slane %v4271_v21, 4 }
  0x88   : > { %360 = vperm.xlu2 %3852, %v355_v25   ;;  %v4068_v25 = vmov 1934713408  }
  0x8e   : > { %386 = vperm.xlu1 %3853, %v381_v30   ;;  %867 = vperm.xlu0 %3845, %v6450_v31  }
  0x90   : > { %373 = vperm.xlu2 %3852, %v368_v29  }
  0x92   : > { %v270_v37 = vpop.permute.xlu2 %269 }
  0x93   : > { %v1099_v47 = vrot.slane %v270_v37, 4 }
  0x96   : > { %399 = vperm.xlu1 %3853, %v394_v33   ;;  %932 = vperm.xlu0 %3845, %v6449_v34  }
  0x98   : > { %3854 = vset.pattern.permute.xlu2 %v4241_v9 }
  0x9e   : > { %3855 = vset.pattern.permute.xlu1 %v4241_v9  ;;  %997 = vperm.xlu0 %3845, %v6448_v36  }
  0xa0   : > { %392 = vperm.xlu2 %3854, %v381_v30   ;;  %v4316_v39 = vpop.permute.xlu0 %241  ;;  %v4323_v41 = vpop.permute.xlu1 %249 }
  0xa1   : > { %6543 = vst [vmem:[#allocation11_spill] sm:$0xff] %v4316_v39 }
  0xa2   : > { %v4320_v40 = vpop.permute.xlu2 %275  ;;  %6545 = vst [vmem:[#allocation13_spill] sm:$0xff] %v4323_v41 }
  0xa3   : > { %6544 = vst [vmem:[#allocation12_spill] sm:$0xff] %v4320_v40 }
  0xa6   : > { %418 = vperm.xlu1 %3855, %v407_v14   ;;  %1062 = vperm.xlu0 %3845, %v6447_v38  }
  0xa8   : > { %405 = vperm.xlu2 %3854, %v394_v33   ;;  %v4327_v43 = vpop.permute.xlu0 %245  ;;  %v4329_v48 = vpop.permute.xlu1 %253 }
  0xa9   : > { %6546 = vst [vmem:[#allocation14_spill] sm:$0xff] %v4327_v43 }
  0xaa   : > { %6547 = vst [vmem:[#allocation15_spill] sm:$0xff] %v4329_v48 }
  0xae   : > { %431 = vperm.xlu1 %3855, %v420_v42   ;;  %3895 = vset.pattern.permute.xlu0 %v4241_v9 }
  0xb0   : > { %3856 = vset.pattern.permute.xlu2 %v4221_v2 }
  0xb2   : > { %v296_v46 = vpop.permute.xlu2 %295 }
  0xb3   : > { %v1100_v51 = vsel %vm1097_vm0, %v296_v46, %v1099_v47  ;;  %v1096_v5 = vrot.slane %v296_v46, 4  ;;  %v485_v47 = vperm.slane %v4257_v16, 1 }
  0xb4   : > { %v4339_v52 = vperm.slane %v1100_v51, %v4331_v49 }
  0xb5   : > { %v1098_v11 = vsel %vm1097_vm0, %v1096_v5, %v270_v37 }
  0xb6   : > { %3857 = vset.pattern.permute.xlu1 %v4221_v2  ;;  %314 = vperm.xlu0 %3895, %v303_v15   ;;  %6548 = vst [vmem:[#allocation16_spill] sm:$0xff] %v4339_v52  ;;  %v1159_v58 = vrot.slane %v4339_v52, 4  ;;  %v1104_v17 = vperm.slane %v1098_v11, %v4331_v49 }
  0xb8   : > { %425 = vperm.xlu2 %3856, %v420_v42   ;;  %v283_v53 = vpop.permute.xlu0 %282  ;;  %v4347_v60 = vpop.permute.xlu1 %288  ;;  %v1147_v46 = vrot.slane %v1104_v17, 4 }
  0xb9   : > { %v1111_v54 = vrot.slane %v283_v53, 4  ;;  %6549 = vst [vmem:[#allocation17_spill] sm:$0xff] %v4347_v60 }
  0xba   : > { %v309_v56 = vpop.permute.xlu2 %308 }
  0xbb   : > { %v1112_v57 = vsel %vm1097_vm0, %v309_v56, %v1111_v54  ;;  %v1109_v12 = vrot.slane %v309_v56, 4 }
  0xbc   : > { %v4345_v59 = vperm.slane %v1112_v57, %v4331_v49 }
  0xbd   : > { %v1110_v15 = vsel %vm1097_vm0, %v1109_v12, %v283_v53 }
  0xbe   : > { %451 = vperm.xlu1 %3857, %v446_v55   ;;  %379 = vperm.xlu0 %3895, %v368_v29   ;;  %v1160_v61 = vsel %vm1097_vm0, %v4345_v59, %v1159_v58  ;;  %v1150_v29 = vunpack.c.l.s4 %v4068_v25  ;;  %v1116_v33 = vperm.slane %v1110_v15, %v4331_v49 }
  0xc0   : > { %438 = vperm.xlu2 %3856, %v433_v50   ;;  %v348_v62 = vpop.permute.xlu0 %347  ;;  %v4353_v0 = vpop.permute.xlu1 %301 }
  0xc1   : > { %6550 = vst [vmem:[#allocation18_spill] sm:$0xff] %v4353_v0  ;;  %v1121_v10 = vrot.slane %v348_v62, 4  ;;  %v1321_v38 = vrot.slane %v4353_v0, 4 }
  0xc6   : > { %464 = vperm.xlu1 %3857, %v459_v63   ;;  %444 = vperm.xlu0 %3895, %v433_v50   ;;  %v4383_v50 = vunpack.c.0.s8 %v1150_v29 }
  0xc8   : > { %3858 = vset.pattern.permute.xlu2 %v4241_v9  ;;  %v4357_v3 = vpop.permute.xlu0 %412  ;;  %v1168_v56 = vperm.slane %v1160_v61, %v4383_v50 }
  0xc9   : > { %v1221_v43 = vrot.slane %v4357_v3, 4 }
  0xca   : > { %v4355_v1 = vpop.permute.xlu2 %327  ;;  %v1207_v11 = vrot.slane %v1168_v56, 4 }
  0xcb   : > { %6551 = vst [vmem:[#allocation19_spill] sm:$0xff] %v4355_v1 }
  0xce   : > { %3859 = vset.pattern.permute.xlu1 %v4241_v9  ;;  %509 = vperm.xlu0 %3895, %v498_v4  }
  0xd0   : > { %457 = vperm.xlu2 %3858, %v446_v55   ;;  %v322_v6 = vpop.permute.xlu1 %321  ;;  %v4363_v8 = vpop.permute.xlu0 %477  ;;  %v1148_v55 = vsel %vm1097_vm0, %v1116_v33, %v1147_v46 }
  0xd1   : > { %v1123_v7 = vrot.slane %v322_v6, 4  ;;  %v1122_v19 = vsel %vm1097_vm0, %v1121_v10, %v322_v6  ;;  %v4395_v6 = vperm.slane %v1148_v55, %v4383_v50  ;;  %v511_v55 = vperm.slane %v4257_v16, 3 }
  0xd2   : > { %v4366_v13 = vpop.permute.xlu2 %340  ;;  %v1128_v42 = vperm.slane %v1122_v19, %v4331_v49 }
  0xd3   : > { %6552 = vst [vmem:[#allocation20_spill] sm:$0xff] %v4366_v13  ;;  %v1124_v14 = vsel %vm1097_vm0, %v348_v62, %v1123_v7 }
  0xd4   : > { %v4375_v30 = vperm.slane %v1124_v14, %v4331_v49  ;;  %v1171_v57 = vrot.slane %v1128_v42, 4 }
  0xd6   : > { %483 = vperm.xlu1 %3859, %v472_v18   ;;  %6553 = vst [vmem:[#allocation21_spill] sm:$0xff] %v4375_v30  ;;  %v1183_v18 = vrot.slane %v4375_v30, 4 }
  0xd8   : > { %470 = vperm.xlu2 %3858, %v459_v63   ;;  %v335_v37 = vpop.permute.xlu1 %334  ;;  %v4380_v45 = vpop.permute.xlu0 %542  ;;  %v1145_v63 = vrot.slane %v1116_v33, 4  ;;  %v1199_v33 = vrot.slane %v4395_v6, 4 }
  0xd9   : > { %v1135_v44 = vrot.slane %v335_v37, 4 }
  0xda   : > { %v1146_v25 = vsel %vm1097_vm0, %v1145_v63, %v1104_v17 }
  0xde   : > { %496 = vperm.xlu1 %3859, %v485_v47  }
  0xe0   : > { %3860 = vset.pattern.permute.xlu2 %v4221_v2  ;;  %v4400_v12 = vpop.permute.xlu0 %607 }
  0xe2   : > { %v361_v51 = vpop.permute.xlu2 %360 }
  0xe3   : > { %v1133_v53 = vrot.slane %v361_v51, 4  ;;  %v1136_v54 = vsel %vm1097_vm0, %v361_v51, %v1135_v44 }
  0xe4   : > { %v4390_v58 = vperm.slane %v1136_v54, %v4331_v49 }
  0xe5   : > { %v1134_v62 = vsel %vm1097_vm0, %v1133_v53, %v335_v37 }
  0xe6   : > { %6554 = vst [vmem:[#allocation22_spill] sm:$0xff] %v4390_v58  ;;  %v1140_v5 = vperm.slane %v1134_v62, %v4331_v49  ;;  %v1184_v7 = vsel %vm1097_vm0, %v4390_v58, %v1183_v18  ;;  %3861 = vset.pattern.permute.xlu1 %v4221_v2  ;;  %v4424_v18 = vperm.slane %v1146_v25, %v4383_v50 }
  0xe7   : > { %v1192_v10 = vperm.slane %v1184_v7, %v4383_v50  ;;  %v524_v7 = vperm.slane %v4257_v16, 4 }
  0xe8   : > { %v1169_v61 = vrot.slane %v1140_v5, 4  ;;  %490 = vperm.xlu2 %3860, %v485_v47   ;;  %v1172_v14 = vsel %vm1097_vm0, %v1140_v5, %v1171_v57  ;;  %v4436_v54 = vpop.permute.xlu0 %672 }
  0xe9   : > { %v4404_v15 = vperm.slane %v1172_v14, %v4383_v50  ;;  %v4407_v19 = vsel %vm1097_vm0, %v1192_v10, %v1207_v11  ;;  %v1205_v37 = vrot.slane %v1192_v10, 4 }
  0xea   : > { %6555 = vst [vmem:[#allocation23_spill] sm:$0xff] %v4407_v19  ;;  %v1170_v29 = vsel %vm1097_vm0, %v1169_v61, %v1128_v42  ;;  %v4427_v42 = vpop.permute.xlu1 %353 }
  0xeb   : > { %v4413_v44 = vperm.slane %v1170_v29, %v4383_v50  ;;  %v4417_v46 = vsel %vm1097_vm0, %v4404_v15, %v1199_v33  ;;  %v4420_v47 = vsel %vm1097_vm0, %v1205_v37, %v1168_v56  ;;  %6558 = vst [vmem:[#allocation26_spill] sm:$0xff] %v4427_v42  ;;  %v1345_v53 = vrot.slane %v4427_v42, 4  ;;  %v4460_v29 = vpop.permute.xlu2 %373 }
  0xec   : > { %6556 = vst [vmem:[#allocation24_spill] sm:$0xff] %v4417_v46  ;;  %v563_v56 = vperm.slane %v4257_v16, 7  ;;  %v1211_v34 = vrot.slane %v4460_v29, 4 }
  0xed   : > { %6557 = vst [vmem:[#allocation25_spill] sm:$0xff] %v4420_v47  ;;  %v1193_v17 = vrot.slane %v4413_v44, 4  ;;  %v1346_v57 = vsel %vm1097_vm0, %v1345_v53, %v4355_v1 }
  0xee   : > { %574 = vperm.xlu0 %3895, %v563_v56   ;;  %516 = vperm.xlu1 %3861, %v511_v55   ;;  %v4443_v62 = vperm.slane %v1346_v57, %v4331_v49 }
  0xef   : > { %v4431_v51 = vsel %vm1097_vm0, %v1193_v17, %v4424_v18  ;;  %v550_v17 = vperm.slane %v4257_v16, 6 }
  0xf0   : > { %6559 = vst [vmem:[#allocation27_spill] sm:$0xff] %v4431_v51  ;;  %503 = vperm.xlu2 %3860, %v498_v4   ;;  %v4449_v5 = vpop.permute.xlu0 %737  ;;  %v1395_v11 = vrot.slane %v4443_v62, 4 }
  0xf2   : > { %v4445_v63 = vpop.permute.xlu1 %366 }
  0xf3   : > { %6560 = vst [vmem:[#allocation28_spill] sm:$0xff] %v4445_v63  ;;  %v1357_v4 = vrot.slane %v4445_v63, 4 }
  0xf5   : > { %v1358_v10 = vsel %vm1097_vm0, %v1357_v4, %v4366_v13 }
  0xf6   : > { %v1364_v61 = vperm.slane %v1358_v10, %v4331_v49  ;;  %529 = vperm.xlu1 %3861, %v524_v7   ;;  %639 = vperm.xlu0 %3895, %v6461_v28  }
  0xf8   : > { %3862 = vset.pattern.permute.xlu2 %v4241_v9  ;;  %v1396_v14 = vsel %vm1097_vm0, %v1364_v61, %v1395_v11  ;;  %v4457_v25 = vpop.permute.xlu0 %802 }
  0xfa   : > { %v4466_v37 = vpop.permute.xlu2 %392 }
  0xfe   : > { %3863 = vset.pattern.permute.xlu1 %v4241_v9 }
 0x100   : > { %522 = vperm.xlu2 %3862, %v511_v55   ;;  %v4462_v33 = vpop.permute.xlu0 %867  ;;  %v387_v55 = vpop.permute.xlu1 %386 }
 0x101   : > { %v1223_v23 = vrot.slane %v387_v55, 4 }
 0x102   : > { %v4472_v57 = vpop.permute.xlu2 %405 }
 0x103   : > { %v1224_v42 = vsel %vm1097_vm0, %v4357_v3, %v1223_v23 }
 0x104   : > { %v4522_v23 = vperm.slane %v1224_v42, %v4331_v49 }
 0x106   : > { %548 = vperm.xlu1 %3863, %v537_v20   ;;  %v576_v20 = vperm.slane %v4271_v21, 0  ;;  %6563 = vst [vmem:[#allocation31_spill] sm:$0xff] %v4522_v23 }
 0x108   : > { %535 = vperm.xlu2 %3862, %v524_v7   ;;  %v4470_v53 = vpop.permute.xlu0 %932  ;;  %v400_v7 = vpop.permute.xlu1 %399 }
 0x109   : > { %v1212_v31 = vsel %vm1097_vm0, %v400_v7, %v1211_v34  ;;  %v1393_v34 = vrot.slane %v1364_v61, 4  ;;  %v1209_v0 = vrot.slane %v400_v7, 4 }
 0x10a   : > { %v4501_v48 = vperm.slane %v1212_v31, %v4331_v49  ;;  %v1222_v31 = vsel %vm1097_vm0, %v1221_v43, %v387_v55  ;;  %v1433_v55 = vrot.slane %v4472_v57, 4 }
 0x10c   : > { %6561 = vst [vmem:[#allocation29_spill] sm:$0xff] %v4501_v48 }
 0x10e   : > { %561 = vperm.xlu1 %3863, %v550_v17  }
 0x110   : > { %3864 = vset.pattern.permute.xlu2 %v4221_v2  ;;  %v4474_v4 = vpop.permute.xlu0 %997 }
 0x112   : > { %v4477_v10 = vpop.permute.xlu2 %425 }
 0x113   : > { %v1235_v42 = vrot.slane %v4477_v10, 4 }
 0x116   : > { %3865 = vset.pattern.permute.xlu1 %v4221_v2 }
 0x118   : > { %555 = vperm.xlu2 %3864, %v550_v17   ;;  %v4480_v11 = vpop.permute.xlu1 %418  ;;  %v4482_v16 = vpop.permute.xlu0 %1062  ;;  %v589_v17 = vperm.slane %v4271_v21, 1 }
 0x119   : > { %v1445_v13 = vrot.slane %v4480_v11, 4 }
 0x11a   : > { %v4487_v36 = vpop.permute.xlu2 %438 }
 0x11e   : > { %581 = vperm.xlu1 %3865, %v576_v20  }
 0x120   : > { %568 = vperm.xlu2 %3864, %v563_v56   ;;  %v1322_v56 = vsel %vm1097_vm0, %v1321_v38, %v4320_v40  ;;  %v4495_v22 = vpop.permute.xlu1 %431 }
 0x121   : > { %v1328_v26 = vperm.slane %v1322_v56, %v4331_v49  ;;  %v1404_v56 = vperm.slane %v1396_v14, %v4383_v50  ;;  %v1394_v14 = vsel %vm1097_vm0, %v1393_v34, %v4443_v62  ;;  %v1210_v62 = vsel %vm1097_vm0, %v1209_v0, %v4460_v29 }
 0x123   : > { %v1371_v63 = vrot.slane %v1328_v26, 4  ;;  %v1421_v3 = vrot.slane %v1404_v56, 4 }
 0x126   : > { %594 = vperm.xlu1 %3865, %v589_v17  }
 0x128   : > { %3866 = vset.pattern.permute.xlu2 %v4241_v9  ;;  %v4503_v38 = vpop.permute.xlu0 %314 }
 0x129   : > { %6562 = vst [vmem:[#allocation30_spill] sm:$0xff] %v4503_v38  ;;  %v1333_v41 = vrot.slane %v4503_v38, 4  ;;  %v1447_v38 = vrot.slane %v4466_v37, 4 }
 0x12a   : > { %v4506_v39 = vpop.permute.xlu2 %457 }
 0x12b   : > { %v1334_v28 = vsel %vm1097_vm0, %v1333_v41, %v4347_v60  ;;  %v1457_v7 = vrot.slane %v4506_v39, 4 }
 0x12c   : > { %v1340_v61 = vperm.slane %v1334_v28, %v4331_v49  ;;  %v4527_v28 = vperm.slane %v1222_v31, %v4331_v49  ;;  %v1446_v31 = vsel %vm1097_vm0, %v1445_v13, %v4466_v37  ;;  %v4557_v37 = vperm.slane %v1394_v14, %v4383_v50 }
 0x12d   : > { %v1458_v13 = vsel %vm1097_vm0, %v1457_v7, %v4495_v22  ;;  %v6571_v14 = vperm.slane %v4271_v21, 2 }
 0x12e   : > { %3867 = vset.pattern.permute.xlu1 %v4241_v9  ;;  %v1369_v41 = vrot.slane %v1340_v61, 4  ;;  %v1372_v43 = vsel %vm1097_vm0, %v1340_v61, %v1371_v63  ;;  %6567 = vst [vmem:[#allocation35_spill] sm:$0xff] %v4557_v37 }
 0x12f   : > { %v1380_v40 = vperm.slane %v1372_v43, %v4383_v50 }
 0x130   : > { %587 = vperm.xlu2 %3866, %v576_v20   ;;  %v1271_v20 = vrot.slane %v4501_v48, 4  ;;  %v452_v1 = vpop.permute.xlu1 %451  ;;  %v380_v34 = vpop.permute.xlu0 %379  ;;  %v1370_v61 = vsel %vm1097_vm0, %v1369_v41, %v1328_v26  ;;  %v1257_v26 = vrot.slane %v4527_v28, 4  ;;  %v1448_v41 = vsel %vm1097_vm0, %v4480_v11, %v1447_v38 }
 0x131   : > { %v1434_v60 = vsel %vm1097_vm0, %v1433_v55, %v380_v34  ;;  %v1435_v47 = vrot.slane %v380_v34, 4  ;;  %v4541_v43 = vperm.slane %v1370_v61, %v4383_v50  ;;  %v1236_v0 = vsel %vm1097_vm0, %v452_v1, %v1235_v42 }
 0x132   : > { %v1272_v63 = vsel %vm1097_vm0, %v4522_v23, %v1271_v20  ;;  %v4545_v29 = vperm.slane %v1434_v60, %v4331_v49  ;;  %v4548_v19 = vsel %vm1097_vm0, %v1421_v3, %v1380_v40  ;;  %v4552_v20 = vperm.slane %v1210_v62, %v4331_v49  ;;  %v471_v55 = vpop.permute.xlu2 %470 }
 0x133   : > { %6564 = vst [vmem:[#allocation32_spill] sm:$0xff] %v4541_v43  ;;  %v4562_v60 = vperm.slane %v1446_v31, %v4331_v49  ;;  %v4566_v3 = vperm.slane %v1272_v63, %v4383_v50  ;;  %v4569_v62 = vperm.slane %v1236_v0, %v4331_v49  ;;  %v1436_v7 = vsel %vm1097_vm0, %v4472_v57, %v1435_v47 }
 0x134   : > { %6565 = vst [vmem:[#allocation33_spill] sm:$0xff] %v4545_v29  ;;  %v1419_v38 = vrot.slane %v4541_v43, 4  ;;  %v1247_v42 = vrot.slane %v4487_v36, 4  ;;  %v4581_v34 = vperm.slane %v1458_v13, %v4331_v49  ;;  %v1233_v63 = vrot.slane %v452_v1, 4 }
 0x135   : > { %6566 = vst [vmem:[#allocation34_spill] sm:$0xff] %v4548_v19  ;;  %v1456_v31 = vperm.slane %v1448_v41, %v4331_v49  ;;  %v1469_v47 = vrot.slane %v471_v55, 4  ;;  %v615_v0 = vperm.slane %v4271_v21, 3  ;;  %v1295_v41 = vrot.slane %v4569_v62, 4 }
 0x136   : > { %6568 = vst [vmem:[#allocation36_spill] sm:$0xff] %v4562_v60  ;;  %613 = vperm.xlu1 %3867, %v6571_v14   ;;  %v1444_v14 = vperm.slane %v1436_v7, %v4331_v49  ;;  %v680_v43 = vperm.slane %v4281_v24, 0 }
 0x137   : > { %6569 = vst [vmem:[#allocation37_spill] sm:$0xff] %v4566_v3 }
 0x138   : > { %600 = vperm.xlu2 %3866, %v589_v17   ;;  %v1423_v17 = vrot.slane %v1380_v40, 4  ;;  %v1483_v40 = vrot.slane %v4545_v29, 4  ;;  %6570 = vst [vmem:[#allocation38_spill] sm:$0xff] %v4569_v62  ;;  %v465_v57 = vpop.permute.xlu1 %464 }
 0x139   : > { %6573 = vst [vmem:[#allocation40_spill] sm:$0xff] %v4581_v34  ;;  %v1245_v1 = vrot.slane %v465_v57, 4  ;;  %v1248_v13 = vsel %vm1097_vm0, %v465_v57, %v1247_v42 }
 0x13a   : > { %v4576_v11 = vsel %vm1097_vm0, %v1404_v56, %v1423_v17  ;;  %v1484_v61 = vsel %vm1097_vm0, %v4562_v60, %v1483_v40  ;;  %v4589_v56 = vsel %vm1097_vm0, %v4557_v37, %v1419_v38  ;;  %v1459_v17 = vrot.slane %v4495_v22, 4  ;;  %v445_v40 = vpop.permute.xlu0 %444 }
 0x13b   : > { %6572 = vst [vmem:[#allocation39_spill] sm:$0xff] %v4576_v11  ;;  %v4597_v19 = vperm.slane %v1248_v13, %v4331_v49  ;;  %v1470_v11 = vsel %vm1097_vm0, %v1469_v47, %v445_v40  ;;  %v1471_v29 = vrot.slane %v445_v40, 4  ;;  %v1507_v38 = vrot.slane %v4581_v34, 4 }
 0x13c   : > { %6574 = vst [vmem:[#allocation41_spill] sm:$0xff] %v4589_v56  ;;  %v1234_v22 = vsel %vm1097_vm0, %v1233_v63, %v4477_v10  ;;  %v1246_v7 = vsel %vm1097_vm0, %v1245_v1, %v4487_v36  ;;  %v4606_v56 = vperm.slane %v1470_v11, %v4331_v49  ;;  %v1460_v13 = vsel %vm1097_vm0, %v4506_v39, %v1459_v17 }
 0x13d   : > { %6575 = vst [vmem:[#allocation42_spill] sm:$0xff] %v4597_v19  ;;  %v4609_v42 = vperm.slane %v1246_v7, %v4331_v49  ;;  %v1296_v57 = vsel %vm1097_vm0, %v4597_v19, %v1295_v41  ;;  %v1472_v47 = vsel %vm1097_vm0, %v471_v55, %v1471_v29  ;;  %v1495_v40 = vrot.slane %v1444_v14, 4 }
 0x13e   : > { %6576 = vst [vmem:[#allocation43_spill] sm:$0xff] %v4606_v56  ;;  %v1480_v10 = vperm.slane %v1472_v47, %v4331_v49  ;;  %v1508_v36 = vsel %vm1097_vm0, %v4606_v56, %v1507_v38  ;;  %v4620_v11 = vperm.slane %v1234_v22, %v4331_v49  ;;  %626 = vperm.xlu1 %3867, %v615_v0   ;;  %v1319_v29 = vrot.slane %v4566_v3, 4 }
 0x13f   : > { %v1281_v63 = vrot.slane %v4609_v42, 4  ;;  %v4624_v1 = vperm.slane %v1296_v57, %v4383_v50  ;;  %v1493_v55 = vrot.slane %v1456_v31, 4  ;;  %v1258_v39 = vsel %vm1097_vm0, %v1257_v26, %v4552_v20 }
 0x140   : > { %3868 = vset.pattern.permute.xlu2 %v4221_v2  ;;  %v1468_v17 = vperm.slane %v1460_v13, %v4331_v49  ;;  %v1517_v41 = vrot.slane %v1480_v10, 4  ;;  %v1496_v26 = vsel %vm1097_vm0, %v1456_v31, %v1495_v40  ;;  %v1492_v13 = vperm.slane %v1484_v61, %v4383_v50 }
 0x141   : > { %6577 = vst [vmem:[#allocation44_spill] sm:$0xff] %v4624_v1  ;;  %v1282_v38 = vsel %vm1097_vm0, %v1281_v63, %v4620_v11  ;;  %v4634_v22 = vsel %vm1097_vm0, %v4624_v1, %v1319_v29  ;;  %v1494_v47 = vsel %vm1097_vm0, %v1493_v55, %v1444_v14  ;;  %v4645_v34 = vperm.slane %v1258_v39, %v4383_v50 }
 0x142   : > { %6578 = vst [vmem:[#allocation45_spill] sm:$0xff] %v4634_v22  ;;  %v4636_v7 = vpop.permute.xlu2 %490  ;;  %v4639_v57 = vperm.slane %v1282_v38, %v4383_v50  ;;  %v1519_v60 = vrot.slane %v1468_v17, 4  ;;  %v4649_v29 = vperm.slane %v1494_v47, %v4383_v50  ;;  %v1504_v38 = vperm.slane %v1496_v26, %v4383_v50 }
 0x143   : > { %v1516_v31 = vperm.slane %v1508_v36, %v4383_v50  ;;  %v1535_v40 = vrot.slane %v1492_v13, 4  ;;  %v6582_v22 = vperm.slane %v4271_v21, 4  ;;  %v510_v36 = vpop.permute.xlu0 %509  ;;  %v641_v56 = vperm.slane %v4271_v21, 5 }
 0x144   : > { %v1305_v63 = vrot.slane %v4639_v57, 4  ;;  %6579 = vst [vmem:[#allocation46_spill] sm:$0xff] %v4649_v29  ;;  %v1520_v55 = vsel %vm1097_vm0, %v1480_v10, %v1519_v60  ;;  %v1543_v26 = vrot.slane %v1504_v38, 4  ;;  %v1769_v3 = vrot.slane %v510_v36, 4 }
 0x145   : > { %v1528_v39 = vperm.slane %v1520_v55, %v4383_v50 }
 0x146   : > { %v4655_v14 = vsel %vm1097_vm0, %v1305_v63, %v4645_v34  ;;  %3869 = vset.pattern.permute.xlu1 %v4221_v2  ;;  %v1539_v63 = vrot.slane %v4649_v29, 4 }
 0x147   : > { %v4678_v10 = vsel %vm1097_vm0, %v1528_v39, %v1543_v26  ;;  %v1541_v55 = vrot.slane %v1528_v39, 4  ;;  %v654_v26 = vperm.slane %v4271_v21, 6 }
 0x148   : > { %620 = vperm.xlu2 %3868, %v615_v0   ;;  %v1518_v0 = vsel %vm1097_vm0, %v1517_v41, %v1468_v17  ;;  %v4664_v47 = vpop.permute.xlu1 %483  ;;  %v1533_v17 = vrot.slane %v1516_v31, 4  ;;  %v4667_v41 = vsel %vm1097_vm0, %v1516_v31, %v1535_v40  ;;  %6584 = vst [vmem:[#allocation50_spill] sm:$0xff] %v4678_v10 }
 0x149   : > { %v4659_v61 = vperm.slane %v1518_v0, %v4383_v50  ;;  %6581 = vst [vmem:[#allocation48_spill] sm:$0xff] %v4667_v41  ;;  %v1771_v0 = vrot.slane %v4664_v47, 4 }
 0x14a   : > { %v4675_v60 = vsel %vm1097_vm0, %v1533_v17, %v1492_v13  ;;  %v504_v40 = vpop.permute.xlu2 %503 }
 0x14b   : > { %6580 = vst [vmem:[#allocation47_spill] sm:$0xff] %v4659_v61  ;;  %v4682_v31 = vsel %vm1097_vm0, %v4659_v61, %v1539_v63  ;;  %v1772_v41 = vsel %vm1097_vm0, %v510_v36, %v1771_v0 }
 0x14c   : > { %6583 = vst [vmem:[#allocation49_spill] sm:$0xff] %v4675_v60  ;;  %v4689_v29 = vperm.slane %v1772_v41, %v4331_v49  ;;  %v6474_v41 = vperm.slane %v4281_v24, 1 }
 0x14d   : > { %6585 = vst [vmem:[#allocation51_spill] sm:$0xff] %v4682_v31 }
 0x14e   : > { %646 = vperm.xlu1 %3869, %v641_v56   ;;  %6587 = vst [vmem:[#allocation53_spill] sm:$0xff] %v4689_v29  ;;  %v1831_v63 = vrot.slane %v4689_v29, 4  ;;  %704 = vperm.xlu0 %3895, %v6474_v41   ;;  %v1547_v41 = vrot.slane %v4363_v8, 4 }
 0x150   : > { %633 = vperm.xlu2 %3868, %v6582_v22   ;;  %v4686_v22 = vsel %vm1097_vm0, %v1541_v55, %v1504_v38  ;;  %v4691_v13 = vpop.permute.xlu1 %496  ;;  %v1548_v60 = vsel %vm1097_vm0, %v504_v40, %v1547_v41 }
 0x151   : > { %6586 = vst [vmem:[#allocation52_spill] sm:$0xff] %v4686_v22  ;;  %v1783_v17 = vrot.slane %v4691_v13, 4  ;;  %v1545_v22 = vrot.slane %v504_v40, 4  ;;  %v1583_v40 = vrot.slane %v4380_v45, 4 }
 0x153   : > { %v1546_v31 = vsel %vm1097_vm0, %v1545_v22, %v4363_v8  ;;  %v6589_v22 = vperm.slane %v4271_v21, 7 }
 0x156   : > { %659 = vperm.xlu1 %3869, %v654_v26  }
 0x158   : > { %3870 = vset.pattern.permute.xlu2 %v4241_v9 }
 0x15a   : > { %v4697_v39 = vpop.permute.xlu2 %522 }
 0x15b   : > { %v1784_v38 = vsel %vm1097_vm0, %v4697_v39, %v1783_v17  ;;  %v4715_v17 = vperm.slane %v1546_v31, %v4331_v49  ;;  %v1781_v62 = vrot.slane %v4697_v39, 4 }
 0x15c   : > { %v4702_v0 = vperm.slane %v1784_v38, %v4331_v49 }
 0x15e   : > { %6588 = vst [vmem:[#allocation54_spill] sm:$0xff] %v4702_v0  ;;  %v4707_v55 = vsel %vm1097_vm0, %v4702_v0, %v1831_v63  ;;  %3871 = vset.pattern.permute.xlu1 %v4241_v9 }
 0x160   : > { %652 = vperm.xlu2 %3870, %v641_v56   ;;  %v517_v38 = vpop.permute.xlu1 %516  ;;  %v1595_v56 = vrot.slane %v4715_v17, 4 }
 0x161   : > { %v1557_v10 = vrot.slane %v517_v38, 4 }
 0x162   : > { %v4717_v29 = vpop.permute.xlu2 %535 }
 0x163   : > { %v1558_v63 = vsel %vm1097_vm0, %v1557_v10, %v4636_v7 }
 0x164   : > { %v4724_v0 = vperm.slane %v1558_v63, %v4331_v49  ;;  %v1556_v63 = vperm.slane %v1548_v60, %v4331_v49  ;;  %v1770_v60 = vsel %vm1097_vm0, %v1769_v3, %v4664_v47 }
 0x166   : > { %678 = vperm.xlu1 %3871, %v6589_v22   ;;  %v1596_v31 = vsel %vm1097_vm0, %v4724_v0, %v1595_v56 }
 0x167   : > { %v1604_v47 = vperm.slane %v1596_v31, %v4383_v50  ;;  %v6591_v31 = vperm.slane %v4281_v24, 1 }
 0x168   : > { %665 = vperm.xlu2 %3870, %v654_v26   ;;  %v1559_v26 = vrot.slane %v4636_v7, 4  ;;  %v530_v61 = vpop.permute.xlu1 %529  ;;  %v1607_v7 = vrot.slane %v1556_v63, 4 }
 0x169   : > { %v1571_v10 = vrot.slane %v530_v61, 4 }
 0x16a   : > { %v1560_v8 = vsel %vm1097_vm0, %v517_v38, %v1559_v26 }
 0x16b   : > { %v1568_v21 = vperm.slane %v1560_v8, %v4331_v49 }
 0x16d   : > { %v1605_v41 = vrot.slane %v1568_v21, 4  ;;  %v1608_v1 = vsel %vm1097_vm0, %v1568_v21, %v1607_v7 }
 0x16e   : > { %691 = vperm.xlu1 %3871, %v680_v43   ;;  %v1616_v36 = vperm.slane %v1608_v1, %v4383_v50 }
 0x170   : > { %3872 = vset.pattern.permute.xlu2 %v4221_v2 }
 0x172   : > { %v556_v37 = vpop.permute.xlu2 %555 }
 0x173   : > { %v1569_v22 = vrot.slane %v556_v37, 4  ;;  %v1572_v56 = vsel %vm1097_vm0, %v556_v37, %v1571_v10 }
 0x174   : > { %v1580_v26 = vperm.slane %v1572_v56, %v4331_v49 }
 0x175   : > { %v1570_v38 = vsel %vm1097_vm0, %v1569_v22, %v530_v61  ;;  %v1606_v61 = vsel %vm1097_vm0, %v1605_v41, %v1556_v63  ;;  %v1593_v22 = vrot.slane %v4724_v0, 4 }
 0x176   : > { %v1576_v48 = vperm.slane %v1570_v38, %v4331_v49  ;;  %v1631_v23 = vrot.slane %v1580_v26, 4  ;;  %3873 = vset.pattern.permute.xlu1 %v4221_v2  ;;  %v4761_v63 = vperm.slane %v1606_v61, %v4383_v50  ;;  %v1655_v38 = vrot.slane %v1616_v36, 4 }
 0x178   : > { %685 = vperm.xlu2 %3872, %v680_v43   ;;  %v4751_v43 = vperm.slane %v1770_v60, %v4331_v49  ;;  %v1619_v7 = vrot.slane %v1576_v48, 4 }
 0x17a   : > { %v569_v8 = vpop.permute.xlu2 %568  ;;  %6590 = vst [vmem:[#allocation55_spill] sm:$0xff] %v4751_v43 }
 0x17b   : > { %v1581_v37 = vrot.slane %v569_v8, 4  ;;  %v1584_v10 = vsel %vm1097_vm0, %v569_v8, %v1583_v40  ;;  %v549_v40 = vpop.permute.xlu1 %548  ;;  %v706_v8 = vperm.slane %v4281_v24, 2 }
 0x17c   : > { %v1592_v21 = vperm.slane %v1584_v10, %v4331_v49 }
 0x17d   : > { %v1582_v3 = vsel %vm1097_vm0, %v1581_v37, %v4380_v45  ;;  %v1782_v45 = vsel %vm1097_vm0, %v1781_v62, %v4691_v13  ;;  %v1647_v37 = vrot.slane %v1604_v47, 4 }
 0x17e   : > { %v1588_v1 = vperm.slane %v1582_v3, %v4331_v49  ;;  %v1629_v39 = vrot.slane %v1592_v21, 4  ;;  %v1632_v56 = vsel %vm1097_vm0, %v1592_v21, %v1631_v23  ;;  %v575_v21 = vpop.permute.xlu0 %574  ;;  %711 = vperm.xlu1 %3873, %v706_v8  }
 0x17f   : > { %v1640_v41 = vperm.slane %v1632_v56, %v4383_v50  ;;  %v1819_v56 = vrot.slane %v4751_v43, 4 }
 0x180   : > { %v1617_v60 = vrot.slane %v1588_v1, 4  ;;  %698 = vperm.xlu2 %3872, %v6591_v31   ;;  %v1630_v0 = vsel %vm1097_vm0, %v1629_v39, %v1580_v26  ;;  %v1620_v23 = vsel %vm1097_vm0, %v1588_v1, %v1619_v7  ;;  %v1594_v26 = vsel %vm1097_vm0, %v1593_v22, %v4715_v17 }
 0x181   : > { %v4772_v10 = vsel %vm1097_vm0, %v1640_v41, %v1655_v38  ;;  %v4776_v3 = vperm.slane %v1630_v0, %v4383_v50  ;;  %v1628_v62 = vperm.slane %v1620_v23, %v4383_v50  ;;  %v1653_v13 = vrot.slane %v1640_v41, 4 }
 0x182   : > { %6592 = vst [vmem:[#allocation56_spill] sm:$0xff] %v4772_v10  ;;  %v1618_v61 = vsel %vm1097_vm0, %v1617_v60, %v1576_v48  ;;  %v1651_v39 = vrot.slane %v4761_v63, 4  ;;  %v1807_v7 = vrot.slane %v549_v40, 4  ;;  %v4793_v41 = vperm.slane %v1782_v45, %v4331_v49 }
 0x183   : > { %v4783_v1 = vperm.slane %v1618_v61, %v4383_v50  ;;  %v4787_v38 = vsel %vm1097_vm0, %v1628_v62, %v1647_v37  ;;  %v1645_v48 = vrot.slane %v1628_v62, 4  ;;  %v4790_v60 = vsel %vm1097_vm0, %v1653_v13, %v1616_v36  ;;  %v562_v45 = vpop.permute.xlu1 %561 }
 0x184   : > { %6593 = vst [vmem:[#allocation57_spill] sm:$0xff] %v4787_v38  ;;  %v1795_v31 = vrot.slane %v4717_v29, 4  ;;  %v1805_v17 = vrot.slane %v575_v21, 4  ;;  %v758_v22 = vperm.slane %v4281_v24, 6  ;;  %v4798_v0 = vperm.slane %v1594_v26, %v4383_v50 }
 0x185   : > { %6594 = vst [vmem:[#allocation58_spill] sm:$0xff] %v4790_v60  ;;  %v4801_v23 = vsel %vm1097_vm0, %v1645_v48, %v1604_v47  ;;  %v1641_v37 = vrot.slane %v4783_v1, 4  ;;  %v4806_v36 = vsel %vm1097_vm0, %v4776_v3, %v1651_v39  ;;  %v1808_v61 = vsel %vm1097_vm0, %v575_v21, %v1807_v7 }
 0x186   : > { %6595 = vst [vmem:[#allocation59_spill] sm:$0xff] %v4793_v41  ;;  %769 = vperm.xlu0 %3895, %v758_v22   ;;  %v1793_v62 = vrot.slane %v562_v45, 4  ;;  %v1796_v13 = vsel %vm1097_vm0, %v562_v45, %v1795_v31  ;;  %v719_v48 = vperm.slane %v4281_v24, 3  ;;  %v1820_v39 = vsel %vm1097_vm0, %v4793_v41, %v1819_v56 }
 0x187   : > { %6596 = vst [vmem:[#allocation60_spill] sm:$0xff] %v4801_v23  ;;  %v4813_v26 = vsel %vm1097_vm0, %v1641_v37, %v4798_v0  ;;  %v4816_v47 = vperm.slane %v1796_v13, %v4331_v49  ;;  %v1806_v43 = vsel %vm1097_vm0, %v1805_v17, %v549_v40  ;;  %v4825_v7 = vperm.slane %v1808_v61, %v4331_v49 }
 0x188   : > { %6597 = vst [vmem:[#allocation61_spill] sm:$0xff] %v4806_v36  ;;  %3874 = vset.pattern.permute.xlu2 %v4241_v9  ;;  %v1794_v21 = vsel %vm1097_vm0, %v1793_v62, %v4717_v29  ;;  %v1840_v45 = vperm.slane %v4707_v55, %v4383_v50  ;;  %v4834_v13 = vperm.slane %v1820_v39, %v4383_v50 }
 0x189   : > { %6598 = vst [vmem:[#allocation62_spill] sm:$0xff] %v4813_v26  ;;  %v4828_v31 = vperm.slane %v1794_v21, %v4331_v49  ;;  %v1855_v37 = vrot.slane %v4816_v47, 4  ;;  %v4837_v56 = vperm.slane %v1806_v43, %v4331_v49  ;;  %724 = vperm.xlu1 %3873, %v719_v48  }
 0x18a   : > { %6599 = vst [vmem:[#allocation63_spill] sm:$0xff] %v4816_v47  ;;  %v1879_v62 = vrot.slane %v1840_v45, 4  ;;  %v4845_v21 = vpop.permute.xlu2 %587  ;;  %v1871_v43 = vrot.slane %v4834_v13, 4 }
 0x18b   : > { %6600 = vst [vmem:[#allocation64_spill] sm:$0xff] %v4825_v7  ;;  %v1843_v40 = vrot.slane %v4828_v31, 4  ;;  %v1856_v29 = vsel %vm1097_vm0, %v4825_v7, %v1855_v37  ;;  %v1883_v26 = vrot.slane %v4845_v21, 4 }
 0x18c   : > { %6601 = vst [vmem:[#allocation65_spill] sm:$0xff] %v4828_v31  ;;  %v1864_v17 = vperm.slane %v1856_v29, %v4383_v50 }
 0x18d   : > { %6602 = vst [vmem:[#allocation66_spill] sm:$0xff] %v4834_v13  ;;  %v1844_v61 = vsel %vm1097_vm0, %v4837_v56, %v1843_v40 }
 0x18e   : > { %6603 = vst [vmem:[#allocation67_spill] sm:$0xff] %v4837_v56  ;;  %v4848_v55 = vperm.slane %v1844_v61, %v4383_v50  ;;  %v1877_v39 = vrot.slane %v1864_v17, 4  ;;  %v4852_v47 = vsel %vm1097_vm0, %v1864_v17, %v1879_v62  ;;  %v6608_v17 = vperm.slane %v4281_v24, 4 }
 0x18f   : > { %6605 = vst [vmem:[#allocation69_spill] sm:$0xff] %v4852_v47 }
 0x190   : > { %717 = vperm.xlu2 %3874, %v706_v8   ;;  %6604 = vst [vmem:[#allocation68_spill] sm:$0xff] %v4848_v55  ;;  %v4856_v37 = vsel %vm1097_vm0, %v4848_v55, %v1871_v43  ;;  %v4859_v29 = vsel %vm1097_vm0, %v1877_v39, %v1840_v45  ;;  %v582_v40 = vpop.permute.xlu1 %581  ;;  %v745_v39 = vperm.slane %v4281_v24, 5  ;;  %v1693_v55 = vrot.slane %v4436_v54, 4 }
 0x191   : > { %6606 = vst [vmem:[#allocation70_spill] sm:$0xff] %v4856_v37  ;;  %3875 = vset.pattern.permute.xlu1 %v4241_v9  ;;  %v1659_v8 = vrot.slane %v582_v40, 4 }
 0x192   : > { %6607 = vst [vmem:[#allocation71_spill] sm:$0xff] %v4859_v29  ;;  %v4862_v61 = vpop.permute.xlu2 %600 }
 0x193   : > { %v1660_v7 = vsel %vm1097_vm0, %v4400_v12, %v1659_v8 }
 0x194   : > { %v4869_v62 = vperm.slane %v1660_v7, %v4331_v49  ;;  %v771_v7 = vperm.slane %v4281_v24, 7 }
 0x196   : > { %6609 = vst [vmem:[#allocation72_spill] sm:$0xff] %v4869_v62 }
 0x198   : > { %730 = vperm.xlu2 %3874, %v719_v48   ;;  %v595_v43 = vpop.permute.xlu1 %594  ;;  %v1719_v48 = vrot.slane %v4869_v62, 4  ;;  %v4910_v62 = vld [vmem:[%s4211_s19 + $0x28] sm:$0xff] }
 0x199   : > { %743 = vperm.xlu1 %3875, %v6608_v17   ;;  %v1671_v45 = vrot.slane %v595_v43, 4  ;;  %v6489_v17 = vperm.slane %v4289_v27, 3 }
 0x19b   : > { %834 = vperm.xlu0 %3895, %v6489_v17  }
 0x1a0   : > { %3876 = vset.pattern.permute.xlu2 %v4221_v2 }
 0x1a1   : > { %756 = vperm.xlu1 %3875, %v745_v39  }
 0x1a2   : > { %v621_v47 = vpop.permute.xlu2 %620 }
 0x1a3   : > { %v1672_v29 = vsel %vm1097_vm0, %v621_v47, %v1671_v45 }
 0x1a4   : > { %v4876_v37 = vperm.slane %v1672_v29, %v4331_v49  ;;  %v784_v29 = vperm.slane %v4289_v27, 0 }
 0x1a6   : > { %6610 = vst [vmem:[#allocation73_spill] sm:$0xff] %v4876_v37  ;;  %v1720_v8 = vsel %vm1097_vm0, %v4876_v37, %v1719_v48 }
 0x1a8   : > { %750 = vperm.xlu2 %3876, %v745_v39   ;;  %v614_v13 = vpop.permute.xlu1 %613  ;;  %v1657_v39 = vrot.slane %v4400_v12, 4 }
 0x1a9   : > { %3877 = vset.pattern.permute.xlu1 %v4221_v2 }
 0x1aa   : > { %v634_v45 = vpop.permute.xlu2 %633  ;;  %v1658_v24 = vsel %vm1097_vm0, %v1657_v39, %v582_v40  ;;  %v6611_v39 = vperm.slane %v4289_v27, 1 }
 0x1ab   : > { %v1664_v41 = vperm.slane %v1658_v24, %v4331_v49  ;;  %v1683_v60 = vrot.slane %v634_v45, 4  ;;  %v1728_v24 = vperm.slane %v1720_v8, %v4383_v50  ;;  %v810_v8 = vperm.slane %v4910_v62, 2 }
 0x1ad   : > { %v1707_v12 = vrot.slane %v1664_v41, 4  ;;  %v1767_v51 = vrot.slane %v1728_v24, 4 }
 0x1b0   : > { %763 = vperm.xlu2 %3876, %v758_v22   ;;  %v627_v48 = vpop.permute.xlu1 %626  ;;  %v1669_v22 = vrot.slane %v621_v47, 4 }
 0x1b1   : > { %776 = vperm.xlu1 %3877, %v771_v7  }
 0x1b2   : > { %v1670_v56 = vsel %vm1097_vm0, %v1669_v22, %v595_v43 }
 0x1b8   : > { %3878 = vset.pattern.permute.xlu2 %v4241_v9 }
 0x1b9   : > { %789 = vperm.xlu1 %3877, %v784_v29  }
 0x1ba   : > { %v4891_v17 = vpop.permute.xlu2 %652 }
 0x1c0   : > { %782 = vperm.xlu2 %3878, %v771_v7   ;;  %v647_v31 = vpop.permute.xlu1 %646  ;;  %v1676_v7 = vperm.slane %v1670_v56, %v4331_v49 }
 0x1c1   : > { %3879 = vset.pattern.permute.xlu1 %v4241_v9  ;;  %v1694_v36 = vsel %vm1097_vm0, %v1693_v55, %v647_v31  ;;  %v1695_v47 = vrot.slane %v647_v31, 4  ;;  %v1881_v55 = vrot.slane %v614_v13, 4 }
 0x1c2   : > { %v1700_v40 = vperm.slane %v1694_v36, %v4331_v49  ;;  %v1705_v10 = vrot.slane %v1676_v7, 4  ;;  %v666_v46 = vpop.permute.xlu2 %665  ;;  %v1708_v36 = vsel %vm1097_vm0, %v1676_v7, %v1707_v12 }
 0x1c3   : > { %v1696_v43 = vsel %vm1097_vm0, %v4436_v54, %v1695_v47  ;;  %v1895_v54 = vrot.slane %v4862_v61, 4  ;;  %v1893_v47 = vrot.slane %v627_v48, 4  ;;  %v4922_v12 = vperm.slane %v1708_v36, %v4383_v50 }
 0x1c4   : > { %v1729_v22 = vrot.slane %v1700_v40, 4  ;;  %v1706_v52 = vsel %vm1097_vm0, %v1705_v10, %v1664_v41  ;;  %v1882_v23 = vsel %vm1097_vm0, %v1881_v55, %v4845_v21 }
 0x1c5   : > { %v1896_v36 = vsel %vm1097_vm0, %v627_v48, %v1895_v54  ;;  %v1759_v55 = vrot.slane %v4922_v12, 4 }
 0x1c8   : > { %795 = vperm.xlu2 %3878, %v784_v29   ;;  %v660_v19 = vpop.permute.xlu1 %659  ;;  %v640_v29 = vpop.permute.xlu0 %639 }
 0x1c9   : > { %808 = vperm.xlu1 %3879, %v6611_v39   ;;  %v1681_v56 = vrot.slane %v660_v19, 4  ;;  %v1684_v31 = vsel %vm1097_vm0, %v660_v19, %v1683_v60  ;;  %v4917_v19 = vperm.slane %v1696_v43, %v4331_v49  ;;  %v1907_v30 = vrot.slane %v640_v29, 4 }
 0x1ca   : > { %v4907_v39 = vperm.slane %v1684_v31, %v4331_v49  ;;  %v1884_v31 = vsel %vm1097_vm0, %v614_v13, %v1883_v26  ;;  %v4942_v13 = vperm.slane %v1706_v52, %v4383_v50  ;;  %v4955_v52 = vperm.slane %v1896_v36, %v4331_v49 }
 0x1cb   : > { %v1682_v37 = vsel %vm1097_vm0, %v1681_v56, %v634_v45  ;;  %6613 = vst [vmem:[#allocation75_spill] sm:$0xff] %v4917_v19  ;;  %v1894_v56 = vsel %vm1097_vm0, %v1893_v47, %v4862_v61  ;;  %v4939_v41 = vperm.slane %v1884_v31, %v4331_v49  ;;  %v1905_v61 = vrot.slane %v666_v46, 4 }
 0x1cc   : > { %6612 = vst [vmem:[#allocation74_spill] sm:$0xff] %v4907_v39  ;;  %v1688_v60 = vperm.slane %v1682_v37, %v4331_v49  ;;  %v1743_v7 = vrot.slane %v4907_v39, 4 }
 0x1cd   : > { %6614 = vst [vmem:[#allocation76_spill] sm:$0xff] %v4939_v41 }
 0x1ce   : > { %v1731_v45 = vrot.slane %v1688_v60, 4  ;;  %v1730_v43 = vsel %vm1097_vm0, %v1729_v22, %v1688_v60  ;;  %v1744_v37 = vsel %vm1097_vm0, %v4917_v19, %v1743_v7  ;;  %v1888_v22 = vperm.slane %v1882_v23, %v4331_v49  ;;  %6615 = vst [vmem:[#allocation77_spill] sm:$0xff] %v4955_v52 }
 0x1cf   : > { %v4935_v26 = vperm.slane %v1730_v43, %v4383_v50  ;;  %v1752_v10 = vperm.slane %v1744_v37, %v4383_v50  ;;  %v1900_v60 = vperm.slane %v1894_v56, %v4331_v49  ;;  %v1908_v23 = vsel %vm1097_vm0, %v666_v46, %v1907_v30 }
 0x1d0   : > { %3880 = vset.pattern.permute.xlu2 %v4221_v2  ;;  %v1732_v21 = vsel %vm1097_vm0, %v1700_v40, %v1731_v45  ;;  %v1943_v45 = vrot.slane %v4939_v41, 4  ;;  %v1906_v37 = vsel %vm1097_vm0, %v1905_v61, %v640_v29  ;;  %v4975_v36 = vperm.slane %v1908_v23, %v4331_v49 }
 0x1d1   : > { %821 = vperm.xlu1 %3879, %v810_v8   ;;  %v4950_v48 = vperm.slane %v1732_v21, %v4383_v50  ;;  %v1753_v54 = vrot.slane %v4935_v26, 4  ;;  %v4958_v40 = vsel %vm1097_vm0, %v1752_v10, %v1767_v51  ;;  %v1765_v7 = vrot.slane %v1752_v10, 4 }
 0x1d2   : > { %v4947_v47 = vpop.permute.xlu2 %685  ;;  %6616 = vst [vmem:[#allocation78_spill] sm:$0xff] %v4958_v40  ;;  %v1931_v51 = vrot.slane %v1888_v22, 4  ;;  %v1929_v56 = vrot.slane %v1900_v60, 4  ;;  %v1944_v30 = vsel %vm1097_vm0, %v4955_v52, %v1943_v45  ;;  %v1919_v46 = vrot.slane %v4891_v17, 4  ;;  %v705_v52 = vpop.permute.xlu0 %704 }
 0x1d3   : > { %v4963_v31 = vsel %vm1097_vm0, %v1753_v54, %v4942_v13  ;;  %v4971_v43 = vsel %vm1097_vm0, %v1765_v7, %v1728_v24  ;;  %6620 = vst [vmem:[#allocation82_spill] sm:$0xff] %v4975_v36  ;;  %v1912_v10 = vperm.slane %v1906_v37, %v4331_v49  ;;  %v4987_v54 = vperm.slane %v1944_v30, %v4383_v50 }
 0x1d4   : > { %6617 = vst [vmem:[#allocation79_spill] sm:$0xff] %v4963_v31  ;;  %v1932_v24 = vsel %vm1097_vm0, %v1900_v60, %v1931_v51  ;;  %v1967_v7 = vrot.slane %v4975_v36, 4  ;;  %v836_v45 = vperm.slane %v4910_v62, 4  ;;  %v1930_v37 = vsel %vm1097_vm0, %v1929_v56, %v1888_v22 }
 0x1d5   : > { %6619 = vst [vmem:[#allocation81_spill] sm:$0xff] %v4971_v43  ;;  %v1940_v51 = vperm.slane %v1932_v24, %v4383_v50  ;;  %v1991_v22 = vrot.slane %v4987_v54, 4  ;;  %v2231_v43 = vrot.slane %v705_v52, 4 }
 0x1d6   : > { %6622 = vst [vmem:[#allocation83_spill] sm:$0xff] %v4987_v54 }
 0x1d8   : > { %815 = vperm.xlu2 %3880, %v810_v8   ;;  %v4967_v8 = vsel %vm1097_vm0, %v4950_v48, %v1759_v55  ;;  %v679_v21 = vpop.permute.xlu1 %678  ;;  %v6621_v55 = vperm.slane %v4289_v27, 3 }
 0x1d9   : > { %6618 = vst [vmem:[#allocation80_spill] sm:$0xff] %v4967_v8  ;;  %3881 = vset.pattern.permute.xlu1 %v4221_v2  ;;  %v1917_v29 = vrot.slane %v679_v21, 4  ;;  %v1920_v61 = vsel %vm1097_vm0, %v679_v21, %v1919_v46  ;;  %v1955_v46 = vrot.slane %v1912_v10, 4 }
 0x1da   : > { %v4991_v23 = vperm.slane %v1920_v61, %v4331_v49  ;;  %v4995_v41 = vpop.permute.xlu2 %698 }
 0x1db   : > { %v1918_v60 = vsel %vm1097_vm0, %v1917_v29, %v4891_v17  ;;  %v1983_v29 = vrot.slane %v1940_v51, 4 }
 0x1dc   : > { %6623 = vst [vmem:[#allocation84_spill] sm:$0xff] %v4991_v23  ;;  %v1924_v30 = vperm.slane %v1918_v60, %v4331_v49  ;;  %v1968_v21 = vsel %vm1097_vm0, %v4991_v23, %v1967_v7 }
 0x1dd   : > { %v5007_v61 = vperm.slane %v1968_v21, %v4383_v50 }
 0x1de   : > { %v1953_v56 = vrot.slane %v1924_v30, 4  ;;  %v1956_v17 = vsel %vm1097_vm0, %v1924_v30, %v1955_v46 }
 0x1df   : > { %6625 = vst [vmem:[#allocation86_spill] sm:$0xff] %v5007_v61  ;;  %v1964_v24 = vperm.slane %v1956_v17, %v4383_v50  ;;  %v5014_v60 = vsel %vm1097_vm0, %v5007_v61, %v1991_v22  ;;  %v849_v17 = vperm.slane %v4910_v62, 5 }
 0x1e0   : > { %828 = vperm.xlu2 %3880, %v6621_v55   ;;  %v5004_v55 = vperm.slane %v1930_v37, %v4383_v50  ;;  %6626 = vst [vmem:[#allocation87_spill] sm:$0xff] %v5014_v60  ;;  %v1954_v7 = vsel %vm1097_vm0, %v1953_v56, %v1912_v10  ;;  %v692_v60 = vpop.permute.xlu1 %691 }
 0x1e1   : > { %841 = vperm.xlu1 %3881, %v836_v45   ;;  %v5019_v37 = vperm.slane %v1954_v7, %v4383_v50  ;;  %v5022_v21 = vsel %vm1097_vm0, %v1964_v24, %v1983_v29  ;;  %v1981_v30 = vrot.slane %v1964_v24, 4  ;;  %v5034_v7 = vld [vmem:[%s4211_s19 + $0x30] sm:$0xff] }
 0x1e2   : > { %6624 = vst [vmem:[#allocation85_spill] sm:$0xff] %v5004_v55  ;;  %v1979_v46 = vrot.slane %v5004_v55, 4  ;;  %v888_v29 = vperm.slane %v5034_v7, 0 }
 0x1e3   : > { %6627 = vst [vmem:[#allocation88_spill] sm:$0xff] %v5019_v37  ;;  %v5031_v10 = vsel %vm1097_vm0, %v1981_v30, %v1940_v51 }
 0x1e4   : > { %6628 = vst [vmem:[#allocation89_spill] sm:$0xff] %v5022_v21  ;;  %v5028_v22 = vsel %vm1097_vm0, %v5019_v37, %v1979_v46  ;;  %899 = vperm.xlu0 %3895, %v888_v29   ;;  %v901_v37 = vperm.slane %v5034_v7, 1 }
 0x1e5   : > { %6629 = vst [vmem:[#allocation90_spill] sm:$0xff] %v5028_v22 }
 0x1e6   : > { %6630 = vst [vmem:[#allocation91_spill] sm:$0xff] %v5031_v10 }
 0x1e8   : > { %3882 = vset.pattern.permute.xlu2 %v4241_v9 }
 0x1e9   : > { %854 = vperm.xlu1 %3881, %v849_v17  }
 0x1ea   : > { %v718_v54 = vpop.permute.xlu2 %717 }
 0x1eb   : > { %v2217_v56 = vrot.slane %v718_v54, 4 }
 0x1ed   : > { %v2218_v24 = vsel %vm1097_vm0, %v2217_v56, %v692_v60 }
 0x1ee   : > { %v5039_v36 = vperm.slane %v2218_v24, %v4331_v49  ;;  %v6506_v24 = vperm.slane %v5034_v7, 5 }
 0x1f0   : > { %847 = vperm.xlu2 %3882, %v836_v45   ;;  %6631 = vst [vmem:[#allocation92_spill] sm:$0xff] %v5039_v36  ;;  %v2267_v23 = vrot.slane %v5039_v36, 4  ;;  %v712_v10 = vpop.permute.xlu1 %711  ;;  %964 = vperm.xlu0 %3895, %v6506_v24  }
 0x1f1   : > { %3883 = vset.pattern.permute.xlu1 %v4241_v9  ;;  %v1993_v56 = vrot.slane %v712_v10, 4 }
 0x1f2   : > { %v731_v61 = vpop.permute.xlu2 %730 }
 0x1f3   : > { %v2229_v46 = vrot.slane %v731_v61, 4  ;;  %v2232_v40 = vsel %vm1097_vm0, %v731_v61, %v2231_v43  ;;  %v1995_v61 = vrot.slane %v4947_v47, 4 }
 0x1f5   : > { %v2230_v51 = vsel %vm1097_vm0, %v2229_v46, %v705_v52  ;;  %v1994_v46 = vsel %vm1097_vm0, %v1993_v56, %v4947_v47  ;;  %v2240_v52 = vperm.slane %v2232_v40, %v4331_v49 }
 0x1f6   : > { %v5044_v30 = vperm.slane %v2230_v51, %v4331_v49  ;;  %v6633_v51 = vperm.slane %v4289_v27, 6  ;;  %v5059_v22 = vperm.slane %v1994_v46, %v4331_v49 }
 0x1f8   : > { %6632 = vst [vmem:[#allocation93_spill] sm:$0xff] %v5044_v30  ;;  %860 = vperm.xlu2 %3882, %v849_v17   ;;  %v5049_v45 = vsel %vm1097_vm0, %v5044_v30, %v2267_v23  ;;  %v875_v23 = vperm.slane %v4910_v62, 7  ;;  %v5066_v30 = vld [vmem:[%s4211_s19 + $0x38] sm:$0xff]  ;;  %v2043_v24 = vrot.slane %v5059_v22, 4  ;;  %s4076_s19 = smov 16  }
 0x1f9   : > { %873 = vperm.xlu1 %3883, %v6633_v51   ;;  %v6507_v56 = vperm.slane %v5066_v30, 2  ;;  %v2219_v51 = vrot.slane %v692_v60, 4 }
 0x1fb   : > { %v725_v17 = vpop.permute.xlu1 %724  ;;  %1029 = vperm.xlu0 %3895, %v6507_v56   ;;  %v2220_v56 = vsel %vm1097_vm0, %v718_v54, %v2219_v51  ;;  %v2277_v54 = vrot.slane %v2240_v52, 4 }
 0x1fc   : > { %v2005_v21 = vrot.slane %v725_v17, 4  ;;  %v2228_v8 = vperm.slane %v2220_v56, %v4331_v49 }
 0x1fe   : > { %v2006_v36 = vsel %vm1097_vm0, %v2005_v21, %v4995_v41  ;;  %v6510_v21 = vperm.slane %v5066_v30, 7  ;;  %v2279_v19 = vrot.slane %v2228_v8, 4 }
 0x1ff   : > { %v5071_v27 = vperm.slane %v2006_v36, %v4331_v49  ;;  %v770_v36 = vpop.permute.xlu0 %769 }
 0x200   : > { %3884 = vset.pattern.permute.xlu2 %v4221_v2  ;;  %v2280_v51 = vsel %vm1097_vm0, %v2240_v52, %v2279_v19 }
 0x201   : > { %886 = vperm.xlu1 %3883, %v875_v23   ;;  %v5077_v46 = vsel %vm1097_vm0, %v5071_v27, %v2043_v24  ;;  %v2288_v19 = vperm.slane %v2280_v51, %v4383_v50  ;;  %v2276_v51 = vperm.slane %v5049_v45, %v4383_v50 }
 0x202   : > { %v5079_v62 = vpop.permute.xlu2 %750 }
 0x203   : > { %1094 = vperm.xlu0 %3895, %v6510_v21  }
 0x208   : > { %880 = vperm.xlu2 %3884, %v875_v23   ;;  %v2241_v23 = vrot.slane %v770_v36, 4 }
 0x209   : > { %3885 = vset.pattern.permute.xlu1 %v4221_v2 }
 0x20a   : > { %v764_v60 = vpop.permute.xlu2 %763 }
 0x20b   : > { %v744_v55 = vpop.permute.xlu1 %743 }
 0x20c   : > { %v2243_v24 = vrot.slane %v744_v55, 4  ;;  %v2242_v39 = vsel %vm1097_vm0, %v2241_v23, %v744_v55  ;;  %v2007_v55 = vrot.slane %v4995_v41, 4  ;;  %v2019_v41 = vrot.slane %v4449_v5, 4 }
 0x20d   : > { %v5097_v40 = vperm.slane %v2242_v39, %v4331_v49 }
 0x20e   : > { %v2244_v21 = vsel %vm1097_vm0, %v770_v36, %v2243_v24  ;;  %v1996_v36 = vsel %vm1097_vm0, %v712_v10, %v1995_v61  ;;  %v914_v24 = vperm.slane %v5034_v7, 2  ;;  %v2008_v39 = vsel %vm1097_vm0, %v725_v17, %v2007_v55 }
 0x20f   : > { %v2252_v43 = vperm.slane %v2244_v21, %v4331_v49  ;;  %6634 = vst [vmem:[#allocation94_spill] sm:$0xff] %v5097_v40  ;;  %v2278_v21 = vsel %vm1097_vm0, %v2277_v54, %v2228_v8  ;;  %v5106_v52 = vperm.slane %v1996_v36, %v4331_v49  ;;  %v2291_v10 = vrot.slane %v5097_v40, 4 }
 0x210   : > { %893 = vperm.xlu2 %3884, %v888_v29   ;;  %v2284_v8 = vperm.slane %v2278_v21, %v4383_v50  ;;  %v2327_v36 = vrot.slane %v2288_v19, 4  ;;  %v2017_v55 = vrot.slane %v764_v60, 4 }
 0x211   : > { %906 = vperm.xlu1 %3885, %v901_v37   ;;  %v2303_v23 = vrot.slane %v2252_v43, 4  ;;  %6635 = vst [vmem:[#allocation95_spill] sm:$0xff] %v5106_v52 }
 0x212   : > { %v2323_v40 = vrot.slane %v2284_v8, 4 }
 0x213   : > { %v757_v29 = vpop.permute.xlu1 %756 }
 0x214   : > { %v2255_v56 = vrot.slane %v757_v29, 4 }
 0x218   : > { %3886 = vset.pattern.permute.xlu2 %v4241_v9 }
 0x219   : > { %919 = vperm.xlu1 %3885, %v914_v24  }
 0x21a   : > { %v783_v38 = vpop.permute.xlu2 %782 }
 0x21b   : > { %v2253_v47 = vrot.slane %v783_v38, 4  ;;  %v2256_v58 = vsel %vm1097_vm0, %v783_v38, %v2255_v56  ;;  %v5121_v56 = vperm.slane %v2008_v39, %v4331_v49 }
 0x21c   : > { %v2264_v61 = vperm.slane %v2256_v58, %v4331_v49 }
 0x21d   : > { %v2254_v31 = vsel %vm1097_vm0, %v2253_v47, %v757_v29  ;;  %v2055_v29 = vrot.slane %v5106_v52, 4 }
 0x21e   : > { %v5115_v38 = vperm.slane %v2254_v31, %v4331_v49  ;;  %v2301_v54 = vrot.slane %v2264_v61, 4  ;;  %v2304_v17 = vsel %vm1097_vm0, %v2264_v61, %v2303_v23  ;;  %v2020_v61 = vsel %vm1097_vm0, %v764_v60, %v2019_v41 }
 0x21f   : > { %v2312_v58 = vperm.slane %v2304_v17, %v4383_v50  ;;  %v2319_v17 = vrot.slane %v2276_v51, 4  ;;  %v2041_v60 = vrot.slane %v5071_v27, 4  ;;  %v5149_v41 = vperm.slane %v2020_v61, %v4331_v49 }
 0x220   : > { %6636 = vst [vmem:[#allocation96_spill] sm:$0xff] %v5115_v38  ;;  %912 = vperm.xlu2 %3886, %v901_v37   ;;  %v2302_v21 = vsel %vm1097_vm0, %v2301_v54, %v2252_v43  ;;  %v2292_v31 = vsel %vm1097_vm0, %v5115_v38, %v2291_v10  ;;  %v2056_v37 = vsel %vm1097_vm0, %v5121_v56, %v2055_v29  ;;  %v2031_v29 = vrot.slane %v5079_v62, 4 }
 0x221   : > { %v2308_v47 = vperm.slane %v2302_v21, %v4383_v50  ;;  %v2300_v45 = vperm.slane %v2292_v31, %v4383_v50  ;;  %v5131_v23 = vsel %vm1097_vm0, %v2312_v58, %v2327_v36  ;;  %v2325_v39 = vrot.slane %v2312_v58, 4  ;;  %6641 = vst [vmem:[#allocation101_spill] sm:$0xff] %v5149_v41  ;;  %3887 = vset.pattern.permute.xlu1 %v4241_v9 }
 0x222   : > { %6637 = vst [vmem:[#allocation97_spill] sm:$0xff] %v5131_v23  ;;  %v2018_v10 = vsel %vm1097_vm0, %v2017_v55, %v4449_v5  ;;  %v5162_v31 = vperm.slane %v2056_v37, %v4383_v50  ;;  %v1005_v38 = vperm.slane %v5066_v30, 1 }
 0x223   : > { %v2321_v52 = vrot.slane %v2308_v47, 4  ;;  %v2317_v43 = vrot.slane %v2300_v45, 4  ;;  %v5139_v54 = vsel %vm1097_vm0, %v2300_v45, %v2319_v17  ;;  %v5142_v21 = vsel %vm1097_vm0, %v2308_v47, %v2323_v40  ;;  %v777_v55 = vpop.permute.xlu1 %776 }
 0x224   : > { %6638 = vst [vmem:[#allocation98_spill] sm:$0xff] %v5139_v54  ;;  %v5145_v58 = vsel %vm1097_vm0, %v2325_v39, %v2288_v19  ;;  %v2024_v40 = vperm.slane %v2018_v10, %v4331_v49  ;;  %v2029_v19 = vrot.slane %v777_v55, 4  ;;  %v2032_v27 = vsel %vm1097_vm0, %v777_v55, %v2031_v29 }
 0x225   : > { %6639 = vst [vmem:[#allocation99_spill] sm:$0xff] %v5142_v21  ;;  %v5153_v36 = vsel %vm1097_vm0, %v2321_v52, %v2284_v8  ;;  %v5156_v5 = vsel %vm1097_vm0, %v2317_v43, %v2276_v51  ;;  %v2079_v47 = vrot.slane %v5149_v41, 4  ;;  %v5166_v52 = vperm.slane %v2032_v27, %v4331_v49  ;;  %v5170_v51 = vpop.permute.xlu2 %795 }
 0x226   : > { %6640 = vst [vmem:[#allocation100_spill] sm:$0xff] %v5145_v58  ;;  %v2042_v8 = vsel %vm1097_vm0, %v2041_v60, %v5059_v22  ;;  %v2030_v45 = vsel %vm1097_vm0, %v2029_v19, %v5079_v62  ;;  %v2067_v39 = vrot.slane %v2024_v40, 4  ;;  %v2103_v22 = vrot.slane %v5162_v31, 4 }
 0x227   : > { %6642 = vst [vmem:[#allocation102_spill] sm:$0xff] %v5153_v36  ;;  %v2036_v61 = vperm.slane %v2030_v45, %v4331_v49  ;;  %v2080_v17 = vsel %vm1097_vm0, %v5166_v52, %v2079_v47  ;;  %v2048_v37 = vperm.slane %v2042_v8, %v4383_v50  ;;  %v6646_v60 = vperm.slane %v4301_v32, 3 }
 0x228   : > { %6643 = vst [vmem:[#allocation103_spill] sm:$0xff] %v5156_v5  ;;  %925 = vperm.xlu2 %3886, %v914_v24   ;;  %v2052_v24 = vperm.slane %v5077_v46, %v4383_v50  ;;  %v5181_v43 = vperm.slane %v2080_v17, %v4383_v50  ;;  %v940_v45 = vperm.slane %v5034_v7, 4  ;;  %v2129_v36 = vrot.slane %v4462_v33, 4 }
 0x229   : > { %6644 = vst [vmem:[#allocation104_spill] sm:$0xff] %v5162_v31  ;;  %v2065_v10 = vrot.slane %v2036_v61, 4  ;;  %938 = vperm.xlu1 %3887, %v6646_v60   ;;  %v2068_v62 = vsel %vm1097_vm0, %v2036_v61, %v2067_v39  ;;  %v2091_v47 = vrot.slane %v2048_v37, 4 }
 0x22a   : > { %6645 = vst [vmem:[#allocation105_spill] sm:$0xff] %v5181_v43  ;;  %v2076_v46 = vperm.slane %v2068_v62, %v4383_v50  ;;  %v2095_v29 = vrot.slane %v2052_v24, 4  ;;  %v5190_v55 = vsel %vm1097_vm0, %v5181_v43, %v2103_v22 }
 0x22b   : > { %6647 = vst [vmem:[#allocation106_spill] sm:$0xff] %v5190_v55  ;;  %v2066_v19 = vsel %vm1097_vm0, %v2065_v10, %v2024_v40  ;;  %v790_v60 = vpop.permute.xlu1 %789 }
 0x22c   : > { %v2072_v27 = vperm.slane %v2066_v19, %v4383_v50  ;;  %v5196_v8 = vsel %vm1097_vm0, %v2076_v46, %v2095_v29  ;;  %v2093_v32 = vrot.slane %v2076_v46, 4  ;;  %v2107_v5 = vrot.slane %v790_v60, 4 }
 0x22e   : > { %v2092_v61 = vsel %vm1097_vm0, %v2072_v27, %v2091_v47  ;;  %v2089_v17 = vrot.slane %v2072_v27, 4  ;;  %v5201_v22 = vsel %vm1097_vm0, %v2093_v32, %v2052_v24  ;;  %v6649_v32 = vperm.slane %v5034_v7, 5 }
 0x22f   : > { %2905 = vrot.lane.b32.xlu0 %v2092_v61, %s4069_s26 }
 0x230   : > { %3888 = vset.pattern.permute.xlu2 %v4221_v2  ;;  %v5205_v10 = vsel %vm1097_vm0, %v2089_v17, %v2048_v37 }
 0x231   : > { %6648 = vst [vmem:[#allocation107_spill] sm:$0xff] %v5205_v10  ;;  %951 = vperm.xlu1 %3887, %v940_v45  }
 0x232   : > { %v816_v39 = vpop.permute.xlu2 %815 }
 0x233   : > { %v2105_v40 = vrot.slane %v816_v39, 4 }
 0x235   : > { %v2106_v62 = vsel %vm1097_vm0, %v2105_v40, %v790_v60  ;;  %v5226_v40 = vpop.permute.xlu0 %834 }
 0x236   : > { %v5209_v29 = vperm.slane %v2106_v62, %v4331_v49  ;;  %v2331_v62 = vrot.slane %v5170_v51, 4 }
 0x238   : > { %945 = vperm.xlu2 %3888, %v940_v45   ;;  %v2155_v37 = vrot.slane %v5209_v29, 4  ;;  %v966_v45 = vperm.slane %v5034_v7, 6 }
 0x239   : > { %3889 = vset.pattern.permute.xlu1 %v4221_v2 }
 0x23a   : > { %v829_v46 = vpop.permute.xlu2 %828 }
 0x23b   : > { %v2117_v19 = vrot.slane %v829_v46, 4  ;;  %v5218_v47 = vpop.permute.xlu1 %808 }
 0x23c   : > { %v2343_v17 = vrot.slane %v5218_v47, 4 }
 0x23d   : > { %v2118_v24 = vsel %vm1097_vm0, %v2117_v19, %v4457_v25 }
 0x23e   : > { %v5215_v27 = vperm.slane %v2118_v24, %v4331_v49  ;;  %v2344_v24 = vsel %vm1097_vm0, %v5226_v40, %v2343_v17 }
 0x23f   : > { %v5241_v21 = vperm.slane %v2344_v24, %v4331_v49 }
 0x240   : > { %958 = vperm.xlu2 %3888, %v6649_v32   ;;  %v2156_v61 = vsel %vm1097_vm0, %v5215_v27, %v2155_v37  ;;  %v979_v37 = vperm.slane %v5034_v7, 7  ;;  %v2108_v7 = vsel %vm1097_vm0, %v816_v39, %v2107_v5  ;;  %v6652_v5 = vperm.slane %v4309_v35, 0 }
 0x241   : > { %971 = vperm.xlu1 %3889, %v966_v45   ;;  %6651 = vst [vmem:[#allocation109_spill] sm:$0xff] %v5241_v21  ;;  %v2164_v31 = vperm.slane %v2156_v61, %v4383_v50 }
 0x243   : > { %v5229_v19 = vpop.permute.xlu1 %821 }
 0x244   : > { %v2332_v32 = vsel %vm1097_vm0, %v5229_v19, %v2331_v62  ;;  %v2119_v62 = vrot.slane %v4457_v25, 4 }
 0x245   : > { %v5237_v58 = vperm.slane %v2332_v32, %v4331_v49 }
 0x246   : > { %v2120_v24 = vsel %vm1097_vm0, %v829_v46, %v2119_v62 }
 0x247   : > { %6650 = vst [vmem:[#allocation108_spill] sm:$0xff] %v5237_v58  ;;  %v2391_v23 = vrot.slane %v5237_v58, 4 }
 0x248   : > { %3890 = vset.pattern.permute.xlu2 %v4241_v9 }
 0x249   : > { %984 = vperm.xlu1 %3889, %v979_v37   ;;  %v5246_v54 = vsel %vm1097_vm0, %v5241_v21, %v2391_v23  ;;  %v2116_v23 = vperm.slane %v2108_v7, %v4331_v49 }
 0x24a   : > { %v5248_v17 = vpop.permute.xlu2 %847 }
 0x24b   : > { %v2167_v60 = vrot.slane %v2116_v23, 4 }
 0x250   : > { %977 = vperm.xlu2 %3890, %v966_v45   ;;  %v2128_v45 = vperm.slane %v2120_v24, %v4331_v49 }
 0x251   : > { %3891 = vset.pattern.permute.xlu1 %v4241_v9 }
 0x252   : > { %v5256_v21 = vpop.permute.xlu2 %860  ;;  %v2165_v46 = vrot.slane %v2128_v45, 4 }
 0x253   : > { %v842_v32 = vpop.permute.xlu1 %841 }
 0x254   : > { %v2131_v58 = vrot.slane %v842_v32, 4  ;;  %v2130_v55 = vsel %vm1097_vm0, %v2129_v36, %v842_v32 }
 0x255   : > { %v2136_v7 = vperm.slane %v2130_v55, %v4331_v49  ;;  %v2153_v55 = vrot.slane %v5215_v27, 4 }
 0x256   : > { %v2132_v25 = vsel %vm1097_vm0, %v4462_v33, %v2131_v58 }
 0x257   : > { %v2140_v39 = vperm.slane %v2132_v25, %v4331_v49  ;;  %v2166_v25 = vsel %vm1097_vm0, %v2165_v46, %v2116_v23  ;;  %v2329_v46 = vrot.slane %v5229_v19, 4 }
 0x258   : > { %990 = vperm.xlu2 %3890, %v979_v37   ;;  %v2168_v37 = vsel %vm1097_vm0, %v2128_v45, %v2167_v60  ;;  %v2179_v45 = vrot.slane %v2136_v7, 4 }
 0x259   : > { %1003 = vperm.xlu1 %3891, %v6652_v5   ;;  %v2191_v33 = vrot.slane %v2140_v39, 4  ;;  %v2176_v36 = vperm.slane %v2168_v37, %v4383_v50  ;;  %v5278_v37 = vperm.slane %v2166_v25, %v4383_v50 }
 0x25b   : > { %v855_v62 = vpop.permute.xlu1 %854  ;;  %v2215_v61 = vrot.slane %v2176_v36, 4 }
 0x25c   : > { %v2143_v24 = vrot.slane %v855_v62, 4 }
 0x260   : > { %3892 = vset.pattern.permute.xlu2 %v4221_v2 }
 0x261   : > { %1016 = vperm.xlu1 %3891, %v1005_v38  }
 0x262   : > { %v881_v58 = vpop.permute.xlu2 %880 }
 0x263   : > { %v2141_v32 = vrot.slane %v881_v58, 4  ;;  %v2144_v5 = vsel %vm1097_vm0, %v881_v58, %v2143_v24  ;;  %v2207_v58 = vrot.slane %v2164_v31, 4 }
 0x264   : > { %v2152_v60 = vperm.slane %v2144_v5, %v4331_v49 }
 0x265   : > { %v2142_v43 = vsel %vm1097_vm0, %v2141_v32, %v855_v62 }
 0x266   : > { %v2148_v10 = vperm.slane %v2142_v43, %v4331_v49  ;;  %v2189_v41 = vrot.slane %v2152_v60, 4  ;;  %v2192_v24 = vsel %vm1097_vm0, %v2152_v60, %v2191_v33  ;;  %v2154_v60 = vsel %vm1097_vm0, %v2153_v55, %v5209_v29 }
 0x267   : > { %v2200_v23 = vperm.slane %v2192_v24, %v4383_v50 }
 0x268   : > { %v2177_v5 = vrot.slane %v2148_v10, 4  ;;  %1010 = vperm.xlu2 %3892, %v1005_v38   ;;  %v2190_v27 = vsel %vm1097_vm0, %v2189_v41, %v2140_v39  ;;  %v2180_v62 = vsel %vm1097_vm0, %v2148_v10, %v2179_v45  ;;  %v2211_v38 = vrot.slane %v5278_v37, 4 }
 0x269   : > { %v5286_v43 = vperm.slane %v2190_v27, %v4383_v50  ;;  %v2188_v32 = vperm.slane %v2180_v62, %v4383_v50  ;;  %v5290_v25 = vsel %vm1097_vm0, %v2200_v23, %v2215_v61  ;;  %v2213_v33 = vrot.slane %v2200_v23, 4  ;;  %3893 = vset.pattern.permute.xlu1 %v4221_v2 }
 0x26a   : > { %v2178_v19 = vsel %vm1097_vm0, %v2177_v5, %v2136_v7  ;;  %v2330_v39 = vsel %vm1097_vm0, %v2329_v46, %v5170_v51  ;;  %v5313_v7 = vperm.slane %v2154_v60, %v4383_v50  ;;  %v2355_v46 = vrot.slane %v5248_v17, 4 }
 0x26b   : > { %v5297_v41 = vperm.slane %v2178_v19, %v4383_v50  ;;  %v5300_v10 = vsel %vm1097_vm0, %v2188_v32, %v2207_v58  ;;  %v2205_v45 = vrot.slane %v2188_v32, 4  ;;  %v5305_v24 = vsel %vm1097_vm0, %v2213_v33, %v2176_v36  ;;  %v874_v36 = vpop.permute.xlu1 %873 }
 0x26c   : > { %v5309_v29 = vsel %vm1097_vm0, %v5286_v43, %v2211_v38  ;;  %v2341_v58 = vrot.slane %v5226_v40, 4  ;;  %v5321_v51 = vperm.slane %v2330_v39, %v4331_v49  ;;  %v6654_v5 = vperm.slane %v5066_v30, 2 }
 0x26d   : > { %v2201_v55 = vrot.slane %v5297_v41, 4  ;;  %v5318_v23 = vsel %vm1097_vm0, %v2205_v45, %v2164_v31  ;;  %v2353_v27 = vrot.slane %v874_v36, 4  ;;  %v1031_v62 = vperm.slane %v5066_v30, 3 }
 0x26e   : > { %6653 = vst [vmem:[#allocation110_spill] sm:$0xff] %v5321_v51  ;;  %v2342_v31 = vsel %vm1097_vm0, %v2341_v58, %v5218_v47  ;;  %v2356_v40 = vsel %vm1097_vm0, %v874_v36, %v2355_v46  ;;  %v2379_v32 = vrot.slane %v5321_v51, 4  ;;  %v2367_v38 = vrot.slane %v5256_v21, 4 }
 0x26f   : > { %v5325_v61 = vsel %vm1097_vm0, %v2201_v55, %v5313_v7  ;;  %v2354_v33 = vsel %vm1097_vm0, %v2353_v27, %v5248_v17  ;;  %v5338_v60 = vperm.slane %v2342_v31, %v4331_v49  ;;  %v5341_v19 = vperm.slane %v2356_v40, %v4331_v49 }
 0x270   : > { %1023 = vperm.xlu2 %3892, %v6654_v5   ;;  %v5345_v39 = vperm.slane %v2354_v33, %v4331_v49  ;;  %v2400_v58 = vperm.slane %v5246_v54, %v4383_v50  ;;  %v1044_v5 = vperm.slane %v5066_v30, 4 }
 0x271   : > { %6655 = vst [vmem:[#allocation111_spill] sm:$0xff] %v5341_v19  ;;  %1036 = vperm.xlu1 %3893, %v1031_v62   ;;  %v2380_v45 = vsel %vm1097_vm0, %v5338_v60, %v2379_v32  ;;  %v2415_v36 = vrot.slane %v5341_v19, 4 }
 0x272   : > { %6656 = vst [vmem:[#allocation112_spill] sm:$0xff] %v5345_v39  ;;  %v5361_v31 = vperm.slane %v2380_v45, %v4383_v50  ;;  %v2403_v40 = vrot.slane %v5345_v39, 4 }
 0x273   : > { %v887_v47 = vpop.permute.xlu1 %886 }
 0x274   : > { %v2365_v55 = vrot.slane %v887_v47, 4  ;;  %v2368_v17 = vsel %vm1097_vm0, %v887_v47, %v2367_v38  ;;  %6658 = vst [vmem:[#allocation114_spill] sm:$0xff] %v5361_v31  ;;  %v2439_v38 = vrot.slane %v2400_v58, 4  ;;  %v2431_v45 = vrot.slane %v5361_v31, 4 }
 0x275   : > { %v5355_v46 = vperm.slane %v2368_v17, %v4331_v49  ;;  %v5372_v17 = vpop.permute.xlu2 %893 }
 0x276   : > { %v2366_v27 = vsel %vm1097_vm0, %v2365_v55, %v5256_v21 }
 0x277   : > { %6657 = vst [vmem:[#allocation113_spill] sm:$0xff] %v5355_v46  ;;  %v5365_v32 = vperm.slane %v2366_v27, %v4331_v49  ;;  %v2416_v54 = vsel %vm1097_vm0, %v5355_v46, %v2415_v36  ;;  %v6663_v46 = vperm.slane %v4309_v35, 5 }
 0x278   : > { %3894 = vset.pattern.permute.xlu2 %v4241_v9  ;;  %v2424_v33 = vperm.slane %v2416_v54, %v4383_v50 }
 0x279   : > { %1049 = vperm.xlu1 %3893, %v1044_v5   ;;  %v2404_v47 = vsel %vm1097_vm0, %v5365_v32, %v2403_v40 }
 0x27a   : > { %v5375_v21 = vperm.slane %v2404_v47, %v4383_v50  ;;  %v2437_v55 = vrot.slane %v2424_v33, 4  ;;  %v5379_v27 = vsel %vm1097_vm0, %v2424_v33, %v2439_v38 }
 0x27b   : > { %6660 = vst [vmem:[#allocation116_spill] sm:$0xff] %v5379_v27  ;;  %v900_v27 = vpop.permute.xlu0 %899 }
 0x27c   : > { %6659 = vst [vmem:[#allocation115_spill] sm:$0xff] %v5375_v21  ;;  %v5383_v36 = vsel %vm1097_vm0, %v5375_v21, %v2431_v45  ;;  %v5386_v54 = vsel %vm1097_vm0, %v2437_v55, %v2400_v58  ;;  %v1070_v45 = vperm.slane %v5066_v30, 6 }
 0x27d   : > { %6661 = vst [vmem:[#allocation117_spill] sm:$0xff] %v5383_v36  ;;  %v913_v40 = vpop.permute.xlu2 %912  ;;  %v2667_v36 = vrot.slane %v900_v27, 4 }
 0x27e   : > { %6662 = vst [vmem:[#allocation118_spill] sm:$0xff] %v5386_v54 }
 0x280   : > { %1042 = vperm.xlu2 %3894, %v1031_v62   ;;  %v2443_v62 = vrot.slane %v5372_v17, 4 }
 0x281   : > { %3896 = vset.pattern.permute.xlu1 %v4241_v9 }
 0x283   : > { %v5389_v19 = vpop.permute.xlu1 %906 }
 0x284   : > { %v2455_v47 = vrot.slane %v5389_v19, 4 }
 0x285   : > { %v926_v38 = vpop.permute.xlu2 %925 }
 0x286   : > { %v2456_v58 = vsel %vm1097_vm0, %v4470_v53, %v2455_v47  ;;  %v2665_v31 = vrot.slane %v926_v38, 4 }
 0x287   : > { %v5407_v35 = vperm.slane %v2456_v58, %v4331_v49  ;;  %v6664_v58 = vperm.slane %v5066_v30, 7 }
 0x288   : > { %1055 = vperm.xlu2 %3894, %v1044_v5  }
 0x289   : > { %1068 = vperm.xlu1 %3896, %v6663_v46  }
 0x28b   : > { %v5395_v33 = vpop.permute.xlu1 %919 }
 0x28c   : > { %v2444_v9 = vsel %vm1097_vm0, %v5395_v33, %v2443_v62 }
 0x28d   : > { %v5403_v5 = vperm.slane %v2444_v9, %v4331_v49 }
 0x28f   : > { %v2503_v46 = vrot.slane %v5403_v5, 4 }
 0x290   : > { %3897 = vset.pattern.permute.xlu2 %v4221_v2  ;;  %v1195_v2 = vrot.slane %v4424_v18, 4 }
 0x291   : > { %1081 = vperm.xlu1 %3896, %v1070_v45   ;;  %v5412_v55 = vsel %vm1097_vm0, %v5407_v35, %v2503_v46  ;;  %v1643_v46 = vrot.slane %v4798_v0, 4  ;;  %v2666_v0 = vsel %vm1097_vm0, %v2665_v31, %v900_v27  ;;  %v1755_v31 = vrot.slane %v4942_v13, 4 }
 0x292   : > { %v5414_v47 = vpop.permute.xlu2 %945  ;;  %v1196_v62 = vsel %vm1097_vm0, %v4413_v44, %v1195_v2  ;;  %v1307_v44 = vrot.slane %v4645_v34, 4 }
 0x294   : > { %v1308_v30 = vsel %vm1097_vm0, %v4639_v57, %v1307_v44  ;;  %v2672_v57 = vperm.slane %v2666_v0, %v4331_v49 }
 0x298   : > { %1075 = vperm.xlu2 %3897, %v1070_v45   ;;  %v1644_v45 = vsel %vm1097_vm0, %v4783_v1, %v1643_v46 }
 0x299   : > { %2897 = vrot.lane.b32.xlu1 %v1196_v62, %s4069_s26  ;;  %v2679_v62 = vrot.slane %v913_v40, 4 }
 0x29a   : > { %v5422_v54 = vpop.permute.xlu2 %958 }
 0x29b   : > { %v939_v9 = vpop.permute.xlu1 %938 }
 0x29c   : > { %v2677_v18 = vrot.slane %v939_v9, 4  ;;  %v2680_v46 = vsel %vm1097_vm0, %v939_v9, %v2679_v62  ;;  %v1756_v9 = vsel %vm1097_vm0, %v4935_v26, %v1755_v31  ;;  %v2453_v26 = vrot.slane %v4470_v53, 4 }
 0x29d   : > { %v5446_v27 = vperm.slane %v2680_v46, %v4331_v49 }
 0x29e   : > { %v2678_v21 = vsel %vm1097_vm0, %v2677_v18, %v913_v40  ;;  %v1197_v18 = vrot.slane %v4404_v15, 4 }
 0x29f   : > { %6666 = vst [vmem:[#allocation120_spill] sm:$0xff] %v5446_v27 }
 0x2a0   : > { %1088 = vperm.xlu2 %3897, %v6664_v58   ;;  %v2668_v58 = vsel %vm1097_vm0, %v926_v38, %v2667_v36  ;;  %v2684_v36 = vperm.slane %v2678_v21, %v4331_v49  ;;  %v1198_v46 = vsel %vm1097_vm0, %v1197_v18, %v4395_v6  ;;  %v2454_v6 = vsel %vm1097_vm0, %v2453_v26, %v5389_v19 }
 0x2a1   : > { %2901 = vrot.lane.b32.xlu1 %v1644_v45, %s4069_s26  ;;  %v2203_v45 = vrot.slane %v5313_v7, 4  ;;  %v5438_v34 = vperm.slane %v2668_v58, %v4331_v49  ;;  %v965_v7 = vpop.permute.xlu0 %964 }
 0x2a2   : > { %v2703_v44 = vrot.slane %v965_v7, 4  ;;  %v2713_v62 = vrot.slane %v2684_v36, 4 }
 0x2a3   : > { %v952_v2 = vpop.permute.xlu1 %951  ;;  %6665 = vst [vmem:[#allocation119_spill] sm:$0xff] %v5438_v34  ;;  %v2204_v38 = vsel %vm1097_vm0, %v5297_v41, %v2203_v45  ;;  %v2727_v21 = vrot.slane %v5438_v34, 4  ;;  %v2441_v41 = vrot.slane %v5395_v33, 4 }
 0x2a4   : > { %v2691_v1 = vrot.slane %v952_v2, 4  ;;  %v2714_v53 = vsel %vm1097_vm0, %v2713_v62, %v2672_v57 }
 0x2a8   : > { %2899 = vrot.lane.b32.xlu2 %v1308_v30, %s4069_s26  ;;  %v2715_v30 = vrot.slane %v2672_v57, 4 }
 0x2a9   : > { %2907 = vrot.lane.b32.xlu1 %v2204_v38, %s4069_s26 }
 0x2aa   : > { %v978_v51 = vpop.permute.xlu2 %977 }
 0x2ab   : > { %v2689_v39 = vrot.slane %v978_v51, 4  ;;  %v2692_v40 = vsel %vm1097_vm0, %v978_v51, %v2691_v1  ;;  %v2728_v51 = vsel %vm1097_vm0, %v5446_v27, %v2727_v21  ;;  %v2716_v1 = vsel %vm1097_vm0, %v2684_v36, %v2715_v30 }
 0x2ac   : > { %v5457_v58 = vperm.slane %v2692_v40, %v4331_v49  ;;  %v5476_v31 = vperm.slane %v2728_v51, %v4383_v50  ;;  %v2724_v40 = vperm.slane %v2716_v1, %v4383_v50  ;;  %v2460_v51 = vperm.slane %v2454_v6, %v4331_v49 }
 0x2ad   : > { %v2690_v13 = vsel %vm1097_vm0, %v2689_v39, %v952_v2  ;;  %v2442_v39 = vsel %vm1097_vm0, %v2441_v41, %v5372_v17  ;;  %v1757_v17 = vrot.slane %v4950_v48, 4  ;;  %v5490_v41 = vperm.slane %v2714_v53, %v4383_v50 }
 0x2ae   : > { %6667 = vst [vmem:[#allocation121_spill] sm:$0xff] %v5457_v58  ;;  %v2696_v15 = vperm.slane %v2690_v13, %v4331_v49  ;;  %v2751_v45 = vrot.slane %v5457_v58, 4  ;;  %v2448_v21 = vperm.slane %v2442_v39, %v4331_v49  ;;  %v2775_v62 = vrot.slane %v5476_v31, 4 }
 0x2af   : > { %6669 = vst [vmem:[#allocation123_spill] sm:$0xff] %v5476_v31  ;;  %v1758_v6 = vsel %vm1097_vm0, %v1757_v17, %v4922_v12 }
 0x2b0   : > { %2903 = vrot.lane.b32.xlu2 %v1756_v9, %s4069_s26  ;;  %v2739_v9 = vrot.slane %v2696_v15, 4  ;;  %v2491_v53 = vrot.slane %v2448_v21, 4 }
 0x2b1   : > { %2929 = vrot.lane.b32.xlu1 %v1198_v46, %s4070_s28 }
 0x2b2   : > { %v991_v0 = vpop.permute.xlu2 %990 }
 0x2b3   : > { %v2701_v33 = vrot.slane %v991_v0, 4  ;;  %v2704_v2 = vsel %vm1097_vm0, %v991_v0, %v2703_v44  ;;  %v972_v44 = vpop.permute.xlu1 %971  ;;  %v2767_v0 = vrot.slane %v2724_v40, 4 }
 0x2b4   : > { %v5472_v38 = vperm.slane %v2704_v2, %v4331_v49  ;;  %v2465_v30 = vrot.slane %v972_v44, 4 }
 0x2b5   : > { %v2702_v36 = vsel %vm1097_vm0, %v2701_v33, %v965_v7  ;;  %v2467_v7 = vrot.slane %v5414_v47, 4 }
 0x2b6   : > { %6668 = vst [vmem:[#allocation122_spill] sm:$0xff] %v5472_v38  ;;  %v2708_v18 = vperm.slane %v2702_v36, %v4331_v49  ;;  %v2752_v57 = vsel %vm1097_vm0, %v5472_v38, %v2751_v45  ;;  %v2763_v45 = vrot.slane %v5490_v41, 4  ;;  %v2466_v36 = vsel %vm1097_vm0, %v2465_v30, %v5414_v47 }
 0x2b7   : > { %v5493_v48 = vperm.slane %v2752_v57, %v4383_v50  ;;  %v2468_v1 = vsel %vm1097_vm0, %v972_v44, %v2467_v7  ;;  %v2479_v7 = vrot.slane %v5422_v54, 4  ;;  %v2472_v47 = vperm.slane %v2466_v36, %v4331_v49 }
 0x2b8   : > { %v2737_v13 = vrot.slane %v2708_v18, 4  ;;  %v2740_v19 = vsel %vm1097_vm0, %v2708_v18, %v2739_v9  ;;  %v2489_v9 = vrot.slane %v2460_v51, 4  ;;  %v5517_v18 = vperm.slane %v2468_v1, %v4331_v49 }
 0x2b9   : > { %6670 = vst [vmem:[#allocation124_spill] sm:$0xff] %v5493_v48  ;;  %v2748_v26 = vperm.slane %v2740_v19, %v4383_v50  ;;  %v5503_v33 = vsel %vm1097_vm0, %v5493_v48, %v2775_v62  ;;  %2935 = vrot.lane.b32.xlu1 %v1758_v6, %s4070_s28  ;;  %v2492_v30 = vsel %vm1097_vm0, %v2460_v51, %v2491_v53  ;;  %v2515_v1 = vrot.slane %v2472_v47, 4 }
 0x2ba   : > { %v2738_v39 = vsel %vm1097_vm0, %v2737_v13, %v2696_v15  ;;  %6671 = vst [vmem:[#allocation125_spill] sm:$0xff] %v5503_v33  ;;  %v2512_v19 = vperm.slane %v5412_v55, %v4383_v50  ;;  %v2527_v62 = vrot.slane %v5517_v18, 4  ;;  %v1259_v6 = vrot.slane %v4552_v20, 4 }
 0x2bb   : > { %v5506_v2 = vperm.slane %v2738_v39, %v4383_v50  ;;  %v5509_v46 = vsel %vm1097_vm0, %v2748_v26, %v2767_v0  ;;  %v2765_v15 = vrot.slane %v2748_v26, 4  ;;  %v985_v13 = vpop.permute.xlu1 %984  ;;  %v2490_v0 = vsel %vm1097_vm0, %v2489_v9, %v2448_v21 }
 0x2bc   : > { %v2477_v12 = vrot.slane %v985_v13, 4  ;;  %v2480_v17 = vsel %vm1097_vm0, %v985_v13, %v2479_v7  ;;  %v2496_v55 = vperm.slane %v2490_v0, %v4383_v50  ;;  %v2551_v36 = vrot.slane %v2512_v19, 4 }
 0x2bd   : > { %v5522_v57 = vsel %vm1097_vm0, %v5506_v2, %v2763_v45  ;;  %v5526_v44 = vsel %vm1097_vm0, %v2765_v15, %v2724_v40  ;;  %v5535_v26 = vperm.slane %v2480_v17, %v4331_v49  ;;  %v2500_v45 = vperm.slane %v2492_v30, %v4383_v50 }
 0x2be   : > { %v2478_v40 = vsel %vm1097_vm0, %v2477_v12, %v5422_v54  ;;  %v1283_v21 = vrot.slane %v4620_v11, 4  ;;  %v2539_v0 = vrot.slane %v2496_v55, 4 }
 0x2bf   : > { %v2484_v39 = vperm.slane %v2478_v40, %v4331_v49  ;;  %v2528_v51 = vsel %vm1097_vm0, %v5535_v26, %v2527_v62  ;;  %v2543_v30 = vrot.slane %v2500_v45, 4  ;;  %v1260_v40 = vsel %vm1097_vm0, %v4527_v28, %v1259_v6 }
 0x2c0   : > { %v2536_v53 = vperm.slane %v2528_v51, %v4383_v50  ;;  %v1284_v17 = vsel %vm1097_vm0, %v4609_v42, %v1283_v21 }
 0x2c1   : > { %v2513_v15 = vrot.slane %v2484_v39, 4  ;;  %v2516_v54 = vsel %vm1097_vm0, %v2484_v39, %v2515_v1  ;;  %v1292_v51 = vperm.slane %v1284_v17, %v4383_v50 }
 0x2c2   : > { %v2524_v9 = vperm.slane %v2516_v54, %v4383_v50  ;;  %v5551_v7 = vsel %vm1097_vm0, %v2536_v53, %v2551_v36  ;;  %v2549_v13 = vrot.slane %v2536_v53, 4  ;;  %v5556_v62 = vpop.permute.xlu2 %1010  ;;  %v1268_v36 = vperm.slane %v1260_v40, %v4383_v50 }
 0x2c3   : > { %v2514_v12 = vsel %vm1097_vm0, %v2513_v15, %v2472_v47  ;;  %v1309_v6 = vrot.slane %v1292_v51, 4 }
 0x2c4   : > { %v2541_v20 = vrot.slane %v2524_v9, 4  ;;  %v2520_v11 = vperm.slane %v2514_v12, %v4383_v50  ;;  %v5562_v1 = vsel %vm1097_vm0, %v2524_v9, %v2543_v30  ;;  %v5565_v39 = vsel %vm1097_vm0, %v2549_v13, %v2512_v19  ;;  %v1030_v19 = vpop.permute.xlu0 %1029 }
 0x2c5   : > { %v1311_v54 = vrot.slane %v1268_v36, 4  ;;  %v1310_v12 = vsel %vm1097_vm0, %v1309_v6, %v1268_v36 }
 0x2c6   : > { %v2542_v47 = vsel %vm1097_vm0, %v2541_v20, %v2500_v45  ;;  %v2540_v42 = vsel %vm1097_vm0, %v2520_v11, %v2539_v0  ;;  %v2537_v53 = vrot.slane %v2520_v11, 4  ;;  %v2777_v45 = vrot.slane %v1030_v19, 4 }
 0x2c7   : > { %2941 = vrot.lane.b32.xlu1 %v2542_v47, %s4070_s28  ;;  %2909 = vrot.lane.b32.xlu2 %v2540_v42, %s4069_s26  ;;  %v1312_v13 = vsel %vm1097_vm0, %v1292_v51, %v1311_v54  ;;  %v2555_v54 = vrot.slane %v4474_v4, 4 }
 0x2c8   : > { %v5574_v28 = vsel %vm1097_vm0, %v2537_v53, %v2496_v55 }
 0x2ca   : > { %v1024_v9 = vpop.permute.xlu2 %1023 }
 0x2cb   : > { %v1004_v21 = vpop.permute.xlu1 %1003 }
 0x2cc   : > { %v2779_v15 = vrot.slane %v1004_v21, 4  ;;  %v2778_v55 = vsel %vm1097_vm0, %v2777_v45, %v1004_v21 }
 0x2cd   : > { %v2784_v11 = vperm.slane %v2778_v55, %v4331_v49  ;;  %v2567_v55 = vrot.slane %v5556_v62, 4 }
 0x2ce   : > { %v2780_v17 = vsel %vm1097_vm0, %v1030_v19, %v2779_v15 }
 0x2cf   : > { %2963 = vrot.lane.b32.xlu1 %v1312_v13, %s4071_s29  ;;  %2931 = vrot.lane.b32.xlu2 %v1310_v12, %s4070_s28  ;;  %v2788_v30 = vperm.slane %v2780_v17, %v4331_v49  ;;  %v2827_v53 = vrot.slane %v2784_v11, 4 }
 0x2d1   : > { %v2839_v40 = vrot.slane %v2788_v30, 4 }
 0x2d3   : > { %v1017_v20 = vpop.permute.xlu1 %1016 }
 0x2d4   : > { %v2791_v0 = vrot.slane %v1017_v20, 4 }
 0x2d7   : > { %2969 = vrot.lane.b32.xlu1 %v5196_v8, %s4071_s29  ;;  %2937 = vrot.lane.b32.xlu2 %v5201_v22, %s4070_s28  ;;  %v2556_v22 = vsel %vm1097_vm0, %v1024_v9, %v2555_v54 }
 0x2d8   : > { %v2564_v17 = vperm.slane %v2556_v22, %v4331_v49 }
 0x2da   : > { %v1043_v47 = vpop.permute.xlu2 %1042 }
 0x2db   : > { %v2789_v42 = vrot.slane %v1043_v47, 4  ;;  %v2792_v51 = vsel %vm1097_vm0, %v1043_v47, %v2791_v0 }
 0x2dc   : > { %v2800_v36 = vperm.slane %v2792_v51, %v4331_v49 }
 0x2dd   : > { %v2790_v6 = vsel %vm1097_vm0, %v2789_v42, %v1017_v20  ;;  %v2553_v42 = vrot.slane %v1024_v9, 4 }
 0x2de   : > { %v2796_v21 = vperm.slane %v2790_v6, %v4331_v49  ;;  %v2837_v19 = vrot.slane %v2800_v36, 4  ;;  %v5593_v15 = vsel %vm1097_vm0, %v2800_v36, %v2839_v40  ;;  %v2615_v40 = vrot.slane %v2564_v17, 4 }
 0x2df   : > { %v2554_v6 = vsel %vm1097_vm0, %v2553_v42, %v4474_v4  ;;  %v2591_v42 = vrot.slane %v4482_v16, 4 }
 0x2e0   : > { %v2825_v45 = vrot.slane %v2796_v21, 4  ;;  %v5597_v13 = vsel %vm1097_vm0, %v2837_v19, %v2788_v30  ;;  %v5600_v8 = vsel %vm1097_vm0, %v2796_v21, %v2827_v53 }
 0x2e2   : > { %v5604_v12 = vsel %vm1097_vm0, %v2825_v45, %v2784_v11  ;;  %v5610_v30 = vpop.permute.xlu2 %1055  ;;  %v2560_v45 = vperm.slane %v2554_v6, %v4331_v49 }
 0x2e3   : > { %v1037_v20 = vpop.permute.xlu1 %1036 }
 0x2e4   : > { %v2568_v0 = vsel %vm1097_vm0, %v1037_v20, %v2567_v55  ;;  %v2565_v36 = vrot.slane %v1037_v20, 4 }
 0x2e5   : > { %v2576_v47 = vperm.slane %v2568_v0, %v4331_v49 }
 0x2e6   : > { %v2566_v19 = vsel %vm1097_vm0, %v2565_v36, %v5556_v62 }
 0x2e7   : > { %v2613_v51 = vrot.slane %v2576_v47, 4  ;;  %v2616_v53 = vsel %vm1097_vm0, %v2576_v47, %v2615_v40  ;;  %v2572_v9 = vperm.slane %v2566_v19, %v4331_v49  ;;  %v2603_v40 = vrot.slane %v2560_v45, 4 }
 0x2e9   : > { %v2614_v11 = vsel %vm1097_vm0, %v2613_v51, %v2564_v17  ;;  %v2601_v17 = vrot.slane %v2572_v9, 4  ;;  %v2604_v4 = vsel %vm1097_vm0, %v2572_v9, %v2603_v40 }
 0x2ea   : > { %v2612_v19 = vperm.slane %v2604_v4, %v4383_v50  ;;  %v2620_v9 = vperm.slane %v2614_v11, %v4383_v50 }
 0x2eb   : > { %v1050_v21 = vpop.permute.xlu1 %1049 }
 0x2ec   : > { %v2579_v54 = vrot.slane %v1050_v21, 4  ;;  %v2655_v48 = vrot.slane %v2612_v19, 4  ;;  %v2659_v58 = vrot.slane %v2620_v9, 4 }
 0x2f2   : > { %v1076_v22 = vpop.permute.xlu2 %1075 }
 0x2f3   : > { %v2577_v55 = vrot.slane %v1076_v22, 4  ;;  %v2580_v0 = vsel %vm1097_vm0, %v1076_v22, %v2579_v54  ;;  %v2624_v54 = vperm.slane %v2616_v53, %v4383_v50  ;;  %v1095_v22 = vpop.permute.xlu0 %1094 }
 0x2f4   : > { %v2588_v47 = vperm.slane %v2580_v0, %v4331_v49  ;;  %v2813_v0 = vrot.slane %v1095_v22, 4 }
 0x2f5   : > { %v2578_v20 = vsel %vm1097_vm0, %v2577_v55, %v1050_v21  ;;  %v2602_v55 = vsel %vm1097_vm0, %v2601_v17, %v2560_v45  ;;  %v2663_v45 = vrot.slane %v2624_v54, 4 }
 0x2f6   : > { %v2584_v62 = vperm.slane %v2578_v20, %v4331_v49  ;;  %v2639_v33 = vrot.slane %v2588_v47, 4 }
 0x2f8   : > { %v2627_v20 = vrot.slane %v2584_v62, 4 }
 0x2fa   : > { %v1089_v51 = vpop.permute.xlu2 %1088 }
 0x2fb   : > { %v2589_v36 = vrot.slane %v1089_v51, 4  ;;  %v2592_v6 = vsel %vm1097_vm0, %v1089_v51, %v2591_v42  ;;  %v1069_v31 = vpop.permute.xlu1 %1068 }
 0x2fc   : > { %v2600_v21 = vperm.slane %v2592_v6, %v4331_v49  ;;  %v2608_v6 = vperm.slane %v2602_v55, %v4383_v50  ;;  %v2815_v11 = vrot.slane %v1069_v31, 4 }
 0x2fd   : > { %v2590_v40 = vsel %vm1097_vm0, %v2589_v36, %v4482_v16  ;;  %v2814_v16 = vsel %vm1097_vm0, %v2813_v0, %v1069_v31 }
 0x2fe   : > { %v2596_v42 = vperm.slane %v2590_v40, %v4331_v49  ;;  %v2637_v51 = vrot.slane %v2600_v21, 4  ;;  %v2640_v4 = vsel %vm1097_vm0, %v2600_v21, %v2639_v33  ;;  %v2816_v33 = vsel %vm1097_vm0, %v1095_v22, %v2815_v11 }
 0x2ff   : > { %v2648_v53 = vperm.slane %v2640_v4, %v4383_v50  ;;  %v2651_v0 = vrot.slane %v2608_v6, 4 }
 0x300   : > { %v2625_v17 = vrot.slane %v2596_v42, 4  ;;  %v2628_v34 = vsel %vm1097_vm0, %v2596_v42, %v2627_v20  ;;  %v2638_v27 = vsel %vm1097_vm0, %v2637_v51, %v2588_v47  ;;  %v2824_v20 = vperm.slane %v2816_v33, %v4331_v49 }
 0x301   : > { %v2636_v36 = vperm.slane %v2628_v34, %v4383_v50  ;;  %v2661_v40 = vrot.slane %v2648_v53, 4  ;;  %v2644_v55 = vperm.slane %v2638_v27, %v4383_v50  ;;  %v5646_v38 = vsel %vm1097_vm0, %v2648_v53, %v2663_v45 }
 0x302   : > { %v2900_v21 = vpop.permute.xlu2 %2899  ;;  %v2626_v4 = vsel %vm1097_vm0, %v2625_v17, %v2584_v62  ;;  %v2820_v42 = vperm.slane %v2814_v16, %v4331_v49  ;;  %v1649_v51 = vrot.slane %v4776_v3, 4  ;;  %v2803_v53 = vrot.slane %v5610_v30, 4 }
 0x303   : > { %v5651_v31 = vsel %vm3369_vm1, %v4655_v14, %v2900_v21  ;;  %v2656_v34 = vsel %vm1097_vm0, %v2636_v36, %v2655_v48  ;;  %v2653_v47 = vrot.slane %v2636_v36, 4  ;;  %v2632_v22 = vperm.slane %v2626_v4, %v4383_v50 }
 0x304   : > { %2975 = vrot.lane.b32.xlu1 %v2656_v34, %s4071_s29  ;;  %v5657_v62 = vsel %vm1097_vm0, %v2661_v40, %v2624_v54  ;;  %v5660_v27 = vsel %vm1097_vm0, %v2644_v55, %v2659_v58  ;;  %v2657_v14 = vrot.slane %v2644_v55, 4  ;;  %v2861_v11 = vrot.slane %v2824_v20, 4  ;;  %v1082_v54 = vpop.permute.xlu1 %1081 }
 0x305   : > { %v2654_v48 = vsel %vm1097_vm0, %v2653_v47, %v2612_v19  ;;  %v2652_v45 = vsel %vm1097_vm0, %v2632_v22, %v2651_v0  ;;  %v2649_v17 = vrot.slane %v2632_v22, 4  ;;  %v2801_v16 = vrot.slane %v1082_v54, 4  ;;  %v6672_v22 = vld [vmem:[#allocation79_spill] sm:$0xff] }
 0x306   : > { %2943 = vrot.lane.b32.xlu2 %v2654_v48, %s4070_s28  ;;  %2911 = vrot.lane.b32.xlu0 %v2652_v45, %s4069_s26  ;;  %v5670_v58 = vsel %vm1097_vm0, %v2657_v14, %v2620_v9  ;;  %v2804_v3 = vsel %vm1097_vm0, %v1082_v54, %v2803_v53  ;;  %v2844_v19 = vperm.slane %v5597_v13, %v4383_v50  ;;  %v2849_v40 = vrot.slane %v2820_v42, 4  ;;  %s6369_s26 = scalar_lea.vmem [#allocation7], %s3735_s9  ;;  %s3744_s9 = sshll.u32 %s4051_s15, 6 }
 0x307   : > { %v5674_v36 = vsel %vm1097_vm0, %v2649_v17, %v2608_v6  ;;  %v2812_v33 = vperm.slane %v2804_v3, %v4331_v49  ;;  %v2832_v21 = vperm.slane %v5604_v12, %v4383_v50  ;;  %v1157_v4 = vrot.slane %v4345_v59, 4  ;;  %v6673_v59 = vld [vmem:[#allocation22_spill] sm:$0xff]  ;;  %v6674_v3 = vld [vmem:[#allocation57_spill] sm:$0xff] }
 0x308   : > { %v2848_v9 = vperm.slane %v5593_v15, %v4383_v50  ;;  %v2802_v55 = vsel %vm1097_vm0, %v2801_v16, %v5610_v30  ;;  %v1650_v6 = vsel %vm1097_vm0, %v1649_v51, %v4761_v63  ;;  %v1181_v14 = vrot.slane %v6673_v59, 4 }
 0x309   : > { %v2808_v13 = vperm.slane %v2802_v55, %v4331_v49  ;;  %v2862_v0 = vsel %vm1097_vm0, %v2861_v11, %v2812_v33  ;;  %v2863_v47 = vrot.slane %v2812_v33, 4  ;;  %v2836_v30 = vperm.slane %v5600_v8, %v4383_v50  ;;  %v6675_v8 = vld [vmem:[#allocation60_spill] sm:$0xff] }
 0x30a   : > { %v2904_v34 = vpop.permute.xlu2 %2903  ;;  %v2868_v15 = vperm.slane %v2862_v0, %v4383_v50  ;;  %v2883_v63 = vrot.slane %v2844_v19, 4  ;;  %v2875_v48 = vrot.slane %v2832_v21, 4 }
 0x30b   : > { %v5692_v12 = vsel %vm3369_vm1, %v6672_v22, %v2904_v34  ;;  %v2851_v51 = vrot.slane %v2808_v13, 4  ;;  %v2850_v53 = vsel %vm1097_vm0, %v2849_v40, %v2808_v13  ;;  %v2864_v45 = vsel %vm1097_vm0, %v2824_v20, %v2863_v47  ;;  %v6676_v34 = vld [vmem:[#allocation27_spill] sm:$0xff] }
 0x30c   : > { %2997 = vrot.lane.b32.xlu1 %v1650_v6, %s4072_s21  ;;  %v2856_v17 = vperm.slane %v2850_v53, %v4383_v50  ;;  %v2881_v11 = vrot.slane %v2868_v15, 4  ;;  %v2872_v54 = vperm.slane %v2864_v45, %v4383_v50  ;;  %v5704_v16 = vsel %vm1097_vm0, %v2868_v15, %v2883_v63  ;;  %v2898_v33 = vpop.permute.xlu1 %2897  ;;  %v6677_v63 = vld [vmem:[#allocation16_spill] sm:$0xff] }
 0x30d   : > { %v2209_v40 = vrot.slane %v5286_v43, 4  ;;  %v2852_v55 = vsel %vm1097_vm0, %v2820_v42, %v2851_v51  ;;  %v2887_v20 = vrot.slane %v2848_v9, 4  ;;  %v3370_v6 = vsel %vm3369_vm1, %v6676_v34, %v2898_v33  ;;  %v6678_v51 = vld [vmem:[#allocation21_spill] sm:$0xff]  ;;  %v6681_v33 = vld [vmem:[#allocation62_spill] sm:$0xff] }
 0x30e   : > { %2965 = vrot.lane.b32.xlu2 %v6674_v3, %s4071_s29  ;;  %2933 = vrot.lane.b32.xlu0 %v6675_v8, %s4070_s28  ;;  %v5715_v13 = vsel %vm1097_vm0, %v2856_v17, %v2875_v48  ;;  %v2873_v0 = vrot.slane %v2856_v17, 4  ;;  %v5718_v47 = vsel %vm1097_vm0, %v2881_v11, %v2844_v19  ;;  %v2860_v22 = vperm.slane %v2852_v55, %v4383_v50  ;;  %v6680_v8 = vld [vmem:[#allocation75_spill] sm:$0xff] }
 0x30f   : > { %v2879_v59 = vrot.slane %v2836_v30, 4  ;;  %v5722_v15 = vsel %vm1097_vm0, %v2872_v54, %v2887_v20  ;;  %v2885_v43 = vrot.slane %v2872_v54, 4  ;;  %v1158_v42 = vsel %vm1097_vm0, %v1157_v4, %v6677_v63  ;;  %v6682_v20 = vld [vmem:[#allocation72_spill] sm:$0xff] }
 0x310   : > { %v1182_v53 = vsel %vm1097_vm0, %v1181_v14, %v6678_v51  ;;  %v5729_v48 = vsel %vm1097_vm0, %v2873_v0, %v2832_v21  ;;  %v2210_v19 = vsel %vm1097_vm0, %v2209_v40, %v5278_v37  ;;  %v2877_v45 = vrot.slane %v2860_v22, 4  ;;  %v6679_v14 = vld [vmem:[#allocation73_spill] sm:$0xff]  ;;  %v6684_v51 = vld [vmem:[#allocation24_spill] sm:$0xff] }
 0x311   : > { %v5734_v17 = vsel %vm1097_vm0, %v2860_v22, %v2879_v59  ;;  %v5737_v11 = vsel %vm1097_vm0, %v2885_v43, %v2848_v9  ;;  %v1164_v4 = vperm.slane %v1158_v42, %v4383_v50  ;;  %v1717_v21 = vrot.slane %v6679_v14, 4  ;;  %v6683_v22 = vld [vmem:[#allocation74_spill] sm:$0xff] }
 0x312   : > { %v5742_v54 = vsel %vm1097_vm0, %v2877_v45, %v2836_v30  ;;  %v1188_v3 = vperm.slane %v1182_v53, %v4383_v50  ;;  %v1741_v37 = vrot.slane %v6680_v8, 4  ;;  %v2525_v42 = vrot.slane %v5535_v26, 4 }
 0x313   : > { %v1203_v55 = vrot.slane %v1164_v4, 4  ;;  %v1718_v34 = vsel %vm1097_vm0, %v1717_v21, %v6682_v20 }
 0x314   : > { %3003 = vrot.lane.b32.xlu1 %v2210_v19, %s4072_s21  ;;  %v2902_v9 = vpop.permute.xlu1 %2901  ;;  %v1201_v30 = vrot.slane %v1188_v3, 4  ;;  %v1742_v59 = vsel %vm1097_vm0, %v1741_v37, %v6683_v22  ;;  %v2526_v26 = vsel %vm1097_vm0, %v2525_v42, %v5517_v18  ;;  %v6688_v22 = vld [vmem:[#allocation38_spill] sm:$0xff] }
 0x315   : > { %v5753_v40 = vsel %vm3369_vm1, %v6681_v33, %v2902_v9  ;;  %v1204_v0 = vsel %vm1097_vm0, %v1188_v3, %v1203_v55  ;;  %v1748_v63 = vperm.slane %v1742_v59, %v4383_v50  ;;  %v2532_v37 = vperm.slane %v2526_v26, %v4383_v50  ;;  %v6686_v33 = vld [vmem:[#allocation80_spill] sm:$0xff]  ;;  %v2906_v26 = vpop.permute.xlu0 %2905 }
 0x316   : > { %2971 = vrot.lane.b32.xlu2 %v5300_v10, %s4071_s29  ;;  %2939 = vrot.lane.b32.xlu0 %v5318_v23, %s4070_s28  ;;  %v1724_v10 = vperm.slane %v1718_v34, %v4383_v50  ;;  %v2501_v23 = vrot.slane %v5407_v35, 4  ;;  %v1202_v43 = vsel %vm1097_vm0, %v1201_v30, %v1164_v4  ;;  %v6687_v30 = vld [vmem:[#allocation31_spill] sm:$0xff] }
 0x317   : > { %v1761_v14 = vrot.slane %v1748_v63, 4  ;;  %v1269_v20 = vrot.slane %v6687_v30, 4 }
 0x318   : > { %v1763_v45 = vrot.slane %v1724_v10, 4  ;;  %v2502_v35 = vsel %vm1097_vm0, %v2501_v23, %v5403_v5  ;;  %v6685_v5 = vld [vmem:[#allocation42_spill] sm:$0xff] }
 0x319   : > { %v2508_v3 = vperm.slane %v2502_v35, %v4383_v50  ;;  %v1762_v8 = vsel %vm1097_vm0, %v1761_v14, %v1724_v10  ;;  %v1293_v9 = vrot.slane %v6685_v5, 4  ;;  %v6689_v10 = vld [vmem:[#allocation29_spill] sm:$0xff]  ;;  %v6693_v5 = vld [vmem:[#allocation107_spill] sm:$0xff] }
 0x31a   : > { %v1764_v4 = vsel %vm1097_vm0, %v1748_v63, %v1763_v45  ;;  %v1270_v23 = vsel %vm1097_vm0, %v1269_v20, %v6689_v10  ;;  %v6690_v45 = vld [vmem:[#allocation44_spill] sm:$0xff] }
 0x31b   : > { %v2547_v34 = vrot.slane %v2508_v3, 4  ;;  %v1294_v59 = vsel %vm1097_vm0, %v1293_v9, %v6688_v22  ;;  %v1317_v35 = vrot.slane %v6690_v45, 4  ;;  %v6696_v10 = vld [vmem:[#allocation104_spill] sm:$0xff] }
 0x31c   : > { %3025 = vrot.lane.b32.xlu1 %v1204_v0, %s4073_s30  ;;  %v2908_v53 = vpop.permute.xlu1 %2907  ;;  %v2545_v0 = vrot.slane %v2532_v37, 4  ;;  %v1300_v42 = vperm.slane %v1294_v59, %v4383_v50 }
 0x31d   : > { %v5771_v19 = vsel %vm3369_vm1, %v5325_v61, %v2908_v53 }
 0x31e   : > { %2993 = vrot.lane.b32.xlu2 %v1202_v43, %s4072_s21  ;;  %2961 = vrot.lane.b32.xlu0 %v6684_v51, %s4071_s29  ;;  %v2077_v51 = vrot.slane %v5166_v52, 4 }
 0x321   : > { %v2910_v21 = vpop.permute.xlu2 %2909 }
 0x322   : > { %v3376_v61 = vsel %vm3369_vm1, %v5574_v28, %v2910_v21  ;;  %v2548_v28 = vsel %vm1097_vm0, %v2532_v37, %v2547_v34  ;;  %v1313_v21 = vrot.slane %v1300_v42, 4 }
 0x324   : > { %3031 = vrot.lane.b32.xlu1 %v1764_v4, %s4073_s30  ;;  %v2930_v18 = vpop.permute.xlu1 %2929  ;;  %v2053_v4 = vrot.slane %v5121_v56, 4 }
 0x325   : > { %v5789_v55 = vsel %vm3378_vm2, %v3370_v6, %v2930_v18  ;;  %v2546_v6 = vsel %vm1097_vm0, %v2545_v0, %v2508_v3  ;;  %v6691_v3 = vld [vmem:[#allocation37_spill] sm:$0xff] }
 0x326   : > { %2999 = vrot.lane.b32.xlu2 %v1762_v8, %s4072_s21  ;;  %2967 = vrot.lane.b32.xlu0 %v6686_v33, %s4071_s29  ;;  %v1318_v52 = vsel %vm1097_vm0, %v1317_v35, %v6691_v3  ;;  %v6692_v8 = vld [vmem:[#allocation101_spill] sm:$0xff]  ;;  %v6694_v33 = vld [vmem:[#allocation95_spill] sm:$0xff] }
 0x327   : > { %v2078_v37 = vsel %vm1097_vm0, %v2077_v51, %v6692_v8  ;;  %v2054_v18 = vsel %vm1097_vm0, %v2053_v4, %v6694_v33  ;;  %v6695_v0 = vld [vmem:[#allocation105_spill] sm:$0xff]  ;;  %v6702_v3 = vld [vmem:[#allocation23_spill] sm:$0xff]  ;;  %v2761_v33 = vrot.slane %v5506_v2, 4 }
 0x328   : > { %v2084_v34 = vperm.slane %v2078_v37, %v4383_v50  ;;  %v2060_v22 = vperm.slane %v2054_v18, %v4383_v50  ;;  %v6705_v37 = vld [vmem:[#allocation85_spill] sm:$0xff]  ;;  %v6709_v18 = vld [vmem:[#allocation36_spill] sm:$0xff] }
 0x329   : > { %v2932_v43 = vpop.permute.xlu2 %2931 }
 0x32a   : > { %v3380_v63 = vsel %vm3378_vm2, %v5651_v31, %v2932_v43  ;;  %v1276_v31 = vperm.slane %v1270_v23, %v4383_v50  ;;  %v2097_v59 = vrot.slane %v2084_v34, 4  ;;  %v2099_v43 = vrot.slane %v2060_v22, 4 }
 0x32c   : > { %3037 = vrot.lane.b32.xlu1 %v2548_v28, %s4073_s30  ;;  %v2936_v53 = vpop.permute.xlu1 %2935  ;;  %v1314_v20 = vsel %vm1097_vm0, %v1313_v21, %v1276_v31  ;;  %v2101_v28 = vrot.slane %v6695_v0, 4  ;;  %v2100_v51 = vsel %vm1097_vm0, %v2084_v34, %v2099_v43  ;;  %v2762_v0 = vsel %vm1097_vm0, %v2761_v33, %v5490_v41  ;;  %v6713_v43 = vld [vmem:[#allocation96_spill] sm:$0xff] }
 0x32d   : > { %v5809_v14 = vsel %vm3378_vm2, %v5692_v12, %v2936_v53  ;;  %v3374_v12 = vsel %vm3369_vm1, %v6693_v5, %v2906_v26  ;;  %v2098_v53 = vsel %vm1097_vm0, %v2097_v59, %v2060_v22  ;;  %v6701_v26 = vld [vmem:[#allocation32_spill] sm:$0xff] }
 0x32e   : > { %3005 = vrot.lane.b32.xlu2 %v2546_v6, %s4072_s21  ;;  %2973 = vrot.lane.b32.xlu0 %v5562_v1, %s4071_s29  ;;  %v1315_v1 = vrot.slane %v1276_v31, 4  ;;  %v2102_v23 = vsel %vm1097_vm0, %v2101_v28, %v6696_v10  ;;  %v6711_v28 = vld [vmem:[#allocation40_spill] sm:$0xff]  ;;  %v6712_v10 = vld [vmem:[#allocation93_spill] sm:$0xff] }
 0x330   : > { %v1316_v30 = vsel %vm1097_vm0, %v1300_v42, %v1315_v1  ;;  %v6706_v1 = vld [vmem:[#allocation43_spill] sm:$0xff] }
 0x331   : > { %v2938_v9 = vpop.permute.xlu2 %2937  ;;  %v1505_v5 = vrot.slane %v6706_v1, 4 }
 0x332   : > { %v3383_v56 = vsel %vm3378_vm2, %v3374_v12, %v2938_v9  ;;  %v6707_v12 = vld [vmem:[#allocation78_spill] sm:$0xff]  ;;  %v6708_v9 = vld [vmem:[#allocation81_spill] sm:$0xff] }
 0x333   : > { %v1506_v22 = vsel %vm1097_vm0, %v1505_v5, %v6711_v28  ;;  %v6720_v28 = vld [vmem:[#allocation65_spill] sm:$0xff] }
 0x334   : > { %3059 = vrot.lane.b32.xlu1 %v1318_v52, %s4074_s4  ;;  %v6703_v52 = vld [vmem:[#allocation25_spill] sm:$0xff]  ;;  %v1512_v2 = vperm.slane %v1506_v22, %v4383_v50 }
 0x336   : > { %3027 = vrot.lane.b32.xlu2 %v1316_v30, %s4073_s30  ;;  %2995 = vrot.lane.b32.xlu0 %v1314_v20, %s4072_s21  ;;  %v6710_v20 = vld [vmem:[#allocation33_spill] sm:$0xff] }
 0x339   : > { %v2942_v6 = vpop.permute.xlu1 %2941 }
 0x33a   : > { %v5834_v42 = vsel %vm3378_vm2, %v3376_v61, %v2942_v6  ;;  %v6697_v61 = vld [vmem:[#allocation56_spill] sm:$0xff]  ;;  %v2289_v6 = vrot.slane %v6713_v43, 4 }
 0x33c   : > { %3065 = vrot.lane.b32.xlu1 %v2102_v23, %s4074_s4  ;;  %v2265_v23 = vrot.slane %v6712_v10, 4  ;;  %v6721_v10 = vld [vmem:[#allocation55_spill] sm:$0xff] }
 0x33e   : > { %3033 = vrot.lane.b32.xlu2 %v2100_v51, %s4073_s30  ;;  %3001 = vrot.lane.b32.xlu0 %v2098_v53, %s4072_s21  ;;  %v1529_v53 = vrot.slane %v1512_v2, 4 }
 0x341   : > { %v2964_v45 = vpop.permute.xlu1 %2963 }
 0x342   : > { %v5843_v35 = vsel %vm3387_vm3, %v3380_v63, %v2964_v45  ;;  %v6699_v63 = vld [vmem:[#allocation61_spill] sm:$0xff]  ;;  %v6714_v45 = vld [vmem:[#allocation92_spill] sm:$0xff] }
 0x344   : > { %3071 = vrot.lane.b32.xlu1 %v5657_v62, %s4074_s4  ;;  %v6698_v62 = vld [vmem:[#allocation58_spill] sm:$0xff] }
 0x346   : > { %3039 = vrot.lane.b32.xlu2 %v5660_v27, %s4073_s30  ;;  %3007 = vrot.lane.b32.xlu0 %v5670_v58, %s4072_s21  ;;  %v6700_v27 = vld [vmem:[#allocation35_spill] sm:$0xff] }
 0x347   : > { %v1417_v58 = vrot.slane %v6700_v27, 4 }
 0x349   : > { %v2970_v31 = vpop.permute.xlu1 %2969  ;;  %v1418_v21 = vsel %vm1097_vm0, %v1417_v58, %v6701_v26  ;;  %v6716_v26 = vld [vmem:[#allocation45_spill] sm:$0xff] }
 0x34a   : > { %v5852_v4 = vsel %vm3387_vm3, %v3383_v56, %v2970_v31  ;;  %v1481_v56 = vrot.slane %v6709_v18, 4  ;;  %v6718_v18 = vld [vmem:[#allocation106_spill] sm:$0xff] }
 0x34c   : > { %3093 = vrot.lane.b32.xlu1 %v6697_v61, %s4075_s11  ;;  %v1482_v34 = vsel %vm1097_vm0, %v1481_v56, %v6710_v20  ;;  %v2266_v61 = vsel %vm1097_vm0, %v2265_v23, %v6714_v45 }
 0x34d   : > { %v1488_v59 = vperm.slane %v1482_v34, %v4383_v50  ;;  %v2272_v27 = vperm.slane %v2266_v61, %v4383_v50 }
 0x34e   : > { %3061 = vrot.lane.b32.xlu2 %v6698_v62, %s4074_s4  ;;  %3029 = vrot.lane.b32.xlu0 %v6699_v63, %s4073_s30  ;;  %v6715_v62 = vld [vmem:[#allocation94_spill] sm:$0xff] }
 0x34f   : > { %v1531_v51 = vrot.slane %v1488_v59, 4  ;;  %v2290_v63 = vsel %vm1097_vm0, %v2289_v6, %v6715_v62  ;;  %v1530_v58 = vsel %vm1097_vm0, %v1529_v53, %v1488_v59  ;;  %v2401_v6 = vrot.slane %v5365_v32, 4  ;;  %v6723_v62 = vld [vmem:[#allocation66_spill] sm:$0xff] }
 0x351   : > { %v1532_v31 = vsel %vm1097_vm0, %v1512_v2, %v1531_v51  ;;  %v2377_v51 = vrot.slane %v5338_v60, 4 }
 0x354   : > { %3099 = vrot.lane.b32.xlu1 %v5290_v25, %s4075_s11  ;;  %v6704_v25 = vld [vmem:[#allocation88_spill] sm:$0xff] }
 0x355   : > { %v1977_v8 = vrot.slane %v6704_v25, 4 }
 0x356   : > { %3067 = vrot.lane.b32.xlu2 %v5305_v24, %s4074_s4  ;;  %3035 = vrot.lane.b32.xlu0 %v5309_v29, %s4073_s30  ;;  %s3625_s30 = scalar_lea.hbm %s6446_s3, %s3744_s9 }
 0x357   : > { %v1978_v29 = vsel %vm1097_vm0, %v1977_v8, %v6705_v37  ;;  %s3628_s15 = sshll.u32 %s3625_s30, 4  ;;  %s3629_s15 = int_to_ptr.hbm [resolvable:$true] %s3628_s15 }
 0x35c   : > { %3121 = vrot.lane.b32.xlu1 %v1418_v21, %s4076_s19 }
 0x35e   : > { %3089 = vrot.lane.b32.xlu2 %v6702_v3, %s4075_s11  ;;  %3057 = vrot.lane.b32.xlu0 %v6703_v52, %s4074_s4  ;;  %v2315_v52 = vrot.slane %v2272_v27, 4 }
 0x360   : > { %v2944_v24 = vpop.permute.xlu2 %2943 }
 0x364   : > { %3127 = vrot.lane.b32.xlu1 %v1978_v29, %s4076_s19 }
 0x366   : > { %3095 = vrot.lane.b32.xlu2 %v6707_v12, %s4075_s11  ;;  %3063 = vrot.lane.b32.xlu0 %v6708_v9, %s4074_s4  ;;  %v6717_v9 = vld [vmem:[#allocation67_spill] sm:$0xff] }
 0x367   : > { %v1841_v33 = vrot.slane %v6717_v9, 4  ;;  %v6727_v9 = vld [vmem:[#allocation114_spill] sm:$0xff] }
 0x368   : > { %v2966_v30 = vpop.permute.xlu2 %2965 }
 0x369   : > { %v1842_v22 = vsel %vm1097_vm0, %v1841_v33, %v6720_v28 }
 0x36a   : > { %v1848_v43 = vperm.slane %v1842_v22, %v4383_v50  ;;  %v6728_v22 = vld [vmem:[#allocation39_spill] sm:$0xff] }
 0x36c   : > { %3133 = vrot.lane.b32.xlu1 %v2762_v0, %s4076_s19 }
 0x36e   : > { %3101 = vrot.lane.b32.xlu2 %v5551_v7, %s4075_s11  ;;  %3069 = vrot.lane.b32.xlu0 %v5565_v39, %s4074_s4  ;;  %v2296_v39 = vperm.slane %v2290_v63, %v4383_v50  ;;  %v6724_v63 = vld [vmem:[#allocation112_spill] sm:$0xff]  ;;  %s3626_s4 = sshll.u32 %s6369_s26, 4  ;;  %s3627_s4 = int_to_ptr.vmem [resolvable:$true] %s3626_s4 }
 0x370   : > { %v2972_v41 = vpop.permute.xlu2 %2971  ;;  %v2313_v8 = vrot.slane %v2296_v39, 4  ;;  %v2316_v29 = vsel %vm1097_vm0, %v2296_v39, %v2315_v52 }
 0x372   : > { %v2314_v12 = vsel %vm1097_vm0, %v2313_v8, %v2272_v27 }
 0x374   : > { %3155 = vrot.lane.b32.xlu1 %v1532_v31, %s4077_s1  ;;  %v1865_v31 = vrot.slane %v1848_v43, 4 }
 0x376   : > { %v2976_v7 = vpop.permute.xlu1 %2975  ;;  %3091 = vrot.lane.b32.xlu0 %v6716_v26, %s4075_s11  ;;  %3123 = vrot.lane.b32.xlu2 %v1530_v58, %s4076_s19 }
 0x378   : > { %v2994_v21 = vpop.permute.xlu2 %2993  ;;  %v2912_v3 = vpop.permute.xlu0 %2911 }
 0x379   : > { %v3377_v25 = vsel %vm3369_vm1, %v5674_v36, %v2912_v3  ;;  %v6719_v36 = vld [vmem:[#allocation59_spill] sm:$0xff]  ;;  %vm3602_vm1 = vcmask 523264  }
 0x37a   : > { %v3386_v37 = vsel %vm3378_vm2, %v3377_v25, %v2944_v24  ;;  %v1817_v56 = vrot.slane %v6719_v36, 4  ;;  %v6726_v3 = vld [vmem:[#allocation115_spill] sm:$0xff] }
 0x37b   : > { %v5916_v1 = vsel %vm3387_vm3, %v3386_v37, %v2976_v7  ;;  %v6725_v7 = vld [vmem:[#allocation110_spill] sm:$0xff]  ;;  %v2429_v52 = vrot.slane %v6726_v3, 4 }
 0x37c   : > { %3161 = vrot.lane.b32.xlu1 %v2316_v29, %s4077_s1  ;;  %v1818_v23 = vsel %vm1097_vm0, %v1817_v56, %v6721_v10  ;;  %v2378_v58 = vsel %vm1097_vm0, %v2377_v51, %v6725_v7 }
 0x37d   : > { %v2384_v25 = vperm.slane %v2378_v58, %v4383_v50  ;;  %v2430_v33 = vsel %vm1097_vm0, %v2429_v52, %v6727_v9 }
 0x37e   : > { %v2998_v5 = vpop.permute.xlu1 %2997  ;;  %3097 = vrot.lane.b32.xlu0 %v6718_v18, %s4075_s11  ;;  %3129 = vrot.lane.b32.xlu2 %v2314_v12, %s4076_s19 }
 0x37f   : > { %v2427_v18 = vrot.slane %v2384_v25, 4 }
 0x380   : > { %v3000_v24 = vpop.permute.xlu2 %2999  ;;  %v2934_v20 = vpop.permute.xlu0 %2933 }
 0x381   : > { %v3381_v34 = vsel %vm3378_vm2, %v5753_v40, %v2934_v20  ;;  %v6722_v40 = vld [vmem:[#allocation68_spill] sm:$0xff] }
 0x382   : > { %v3390_v0 = vsel %vm3387_vm3, %v3381_v34, %v2966_v30  ;;  %v1869_v30 = vrot.slane %v6722_v40, 4 }
 0x383   : > { %v5932_v59 = vsel %vm3396_vm4, %v3390_v0, %v2998_v5 }
 0x384   : > { %3167 = vrot.lane.b32.xlu1 %v5715_v13, %s4077_s1  ;;  %v1824_v13 = vperm.slane %v1818_v23, %v4383_v50 }
 0x386   : > { %v3004_v2 = vpop.permute.xlu1 %3003  ;;  %3103 = vrot.lane.b32.xlu0 %v5646_v38, %s4075_s11  ;;  %3135 = vrot.lane.b32.xlu2 %v5729_v48, %s4076_s19  ;;  %v1870_v38 = vsel %vm1097_vm0, %v1869_v30, %v6723_v62  ;;  %v2402_v48 = vsel %vm1097_vm0, %v2401_v6, %v6724_v63  ;;  %v1867_v27 = vrot.slane %v1824_v13, 4  ;;  %v1866_v39 = vsel %vm1097_vm0, %v1865_v31, %v1824_v13  ;;  %v6731_v30 = vld [vmem:[#allocation89_spill] sm:$0xff]  ;;  %v6734_v63 = vld [vmem:[#allocation47_spill] sm:$0xff]  ;;  %s3612_s11 = scalar_lea.sflag [#allocation4], %s4205_s6 }
 0x387   : > { %v2408_v26 = vperm.slane %v2402_v48, %v4383_v50  ;;  %v1537_v48 = vrot.slane %v6734_v63, 4 }
 0x388   : > { %v3006_v53 = vpop.permute.xlu2 %3005  ;;  %v2940_v45 = vpop.permute.xlu0 %2939 }
 0x389   : > { %v3384_v61 = vsel %vm3378_vm2, %v5771_v19, %v2940_v45  ;;  %v2425_v5 = vrot.slane %v2408_v26, 4  ;;  %v2428_v34 = vsel %vm1097_vm0, %v2408_v26, %v2427_v18  ;;  %v6732_v45 = vld [vmem:[#allocation90_spill] sm:$0xff] }
 0x38a   : > { %v3393_v32 = vsel %vm3387_vm3, %v3384_v61, %v2972_v41  ;;  %v1868_v41 = vsel %vm1097_vm0, %v1848_v43, %v1867_v27  ;;  %v6730_v43 = vld [vmem:[#allocation34_spill] sm:$0xff]  ;;  %v6733_v61 = vld [vmem:[#allocation91_spill] sm:$0xff] }
 0x38b   : > { %v5954_v60 = vsel %vm3396_vm4, %v3393_v32, %v3004_v2  ;;  %v2426_v20 = vsel %vm1097_vm0, %v2425_v5, %v2384_v25  ;;  %v6729_v2 = vld [vmem:[#allocation41_spill] sm:$0xff]  ;;  %v6738_v25 = vld [vmem:[#allocation102_spill] sm:$0xff] }
 0x38c   : > { %3189 = vrot.lane.b32.xlu1 %v1870_v38, %s4078_s27  ;;  %v6742_v18 = vld [vmem:[#allocation98_spill] sm:$0xff] }
 0x38e   : > { %v3026_v19 = vpop.permute.xlu1 %3025  ;;  %3125 = vrot.lane.b32.xlu0 %v1866_v39, %s4076_s19  ;;  %3157 = vrot.lane.b32.xlu2 %v1868_v41, %s4077_s1  ;;  %v6737_v41 = vld [vmem:[#allocation48_spill] sm:$0xff] }
 0x390   : > { %v3028_v8 = vpop.permute.xlu2 %3027  ;;  %v2962_v37 = vpop.permute.xlu0 %2961 }
 0x391   : > { %v3388_v29 = vsel %vm3387_vm3, %v5789_v55, %v2962_v37  ;;  %v6739_v37 = vld [vmem:[#allocation54_spill] sm:$0xff] }
 0x392   : > { %v3397_v12 = vsel %vm3396_vm4, %v3388_v29, %v2994_v21  ;;  %v1829_v29 = vrot.slane %v6739_v37, 4 }
 0x393   : > { %v5972_v36 = vsel %vm3405_vm5, %v3397_v12, %v3026_v19  ;;  %v6740_v12 = vld [vmem:[#allocation64_spill] sm:$0xff] }
 0x394   : > { %3195 = vrot.lane.b32.xlu1 %v2430_v33, %s4078_s27  ;;  %v1853_v9 = vrot.slane %v6740_v12, 4  ;;  %v6741_v33 = vld [vmem:[#allocation103_spill] sm:$0xff] }
 0x396   : > { %v3032_v56 = vpop.permute.xlu1 %3031  ;;  %3131 = vrot.lane.b32.xlu0 %v2426_v20, %s4076_s19  ;;  %3163 = vrot.lane.b32.xlu2 %v2428_v34, %s4077_s1  ;;  %v6743_v34 = vld [vmem:[#allocation53_spill] sm:$0xff]  ;;  %s3987_s19 = sshra.s32 %s3629_s15, 4  ;;  %s3988_s19 = int_to_ptr.hbm [resolvable:$true] %s3987_s19 }
 0x397   : > { %p3994_p10 = scmp.lt.s32.totalorder %s3988_s19, %s6446_s3 }
 0x398   : > { %v3034_v55 = vpop.permute.xlu2 %3033  ;;  %v2968_v21 = vpop.permute.xlu0 %2967 }
 0x399   : > { %v3391_v0 = vsel %vm3387_vm3, %v5809_v14, %v2968_v21 }
 0x39a   : > { %v3400_v28 = vsel %vm3396_vm4, %v3391_v0, %v3000_v24  ;;  %v6744_v0 = vld [vmem:[#allocation63_spill] sm:$0xff] }
 0x39b   : > { %v5984_v10 = vsel %vm3405_vm5, %v3400_v28, %v3032_v56  ;;  %v1854_v28 = vsel %vm1097_vm0, %v1853_v9, %v6744_v0 }
 0x39c   : > { %3217 = vrot.lane.b32.xlu1 %v6728_v22, %s4079_s22 }
 0x39e   : > { %v3038_v23 = vpop.permute.xlu1 %3037  ;;  %3153 = vrot.lane.b32.xlu0 %v6729_v2, %s4077_s1  ;;  %3185 = vrot.lane.b32.xlu2 %v6730_v43, %s4078_s27  ;;  %v6745_v2 = vld [vmem:[#allocation17_spill] sm:$0xff] }
 0x39f   : > { %v1335_v43 = vrot.slane %v6745_v2, 4 }
 0x3a0   : > { %v3040_v6 = vpop.permute.xlu2 %3039  ;;  %v2974_v40 = vpop.permute.xlu0 %2973 }
 0x3a1   : > { %v3394_v14 = vsel %vm3387_vm3, %v5834_v42, %v2974_v40 }
 0x3a2   : > { %v3403_v24 = vsel %vm3396_vm4, %v3394_v14, %v3006_v53  ;;  %v1860_v14 = vperm.slane %v1854_v28, %v4383_v50 }
 0x3a3   : > { %v5996_v13 = vsel %vm3405_vm5, %v3403_v24, %v3038_v23  ;;  %v6747_v24 = vld [vmem:[#allocation12_spill] sm:$0xff] }
 0x3a4   : > { %3223 = vrot.lane.b32.xlu1 %v6731_v30, %s4079_s22  ;;  %v1323_v30 = vrot.slane %v6747_v24, 4 }
 0x3a6   : > { %v3060_v51 = vpop.permute.xlu1 %3059  ;;  %3159 = vrot.lane.b32.xlu0 %v6732_v45, %s4077_s1  ;;  %3191 = vrot.lane.b32.xlu2 %v6733_v61, %s4078_s27  ;;  %v6749_v61 = vld [vmem:[#allocation113_spill] sm:$0xff] }
 0x3a8   : > { %v3062_v31 = vpop.permute.xlu2 %3061  ;;  %v2996_v32 = vpop.permute.xlu0 %2995 }
 0x3a9   : > { %v3398_v42 = vsel %vm3396_vm4, %v5843_v35, %v2996_v32 }
 0x3aa   : > { %v3407_v53 = vsel %vm3405_vm5, %v3398_v42, %v3028_v8  ;;  %v6751_v42 = vld [vmem:[#allocation30_spill] sm:$0xff] }
 0x3ab   : > { %v6008_v62 = vsel %vm3414_vm6, %v3407_v53, %v3060_v51  ;;  %v6748_v51 = vld [vmem:[#allocation19_spill] sm:$0xff]  ;;  %v1336_v53 = vsel %vm1097_vm0, %v6751_v42, %v1335_v43 }
 0x3ac   : > { %3229 = vrot.lane.b32.xlu1 %v5509_v46, %s4079_s22  ;;  %v6735_v46 = vld [vmem:[#allocation46_spill] sm:$0xff]  ;;  %v1347_v45 = vrot.slane %v6748_v51, 4 }
 0x3ad   : > { %v1538_v19 = vsel %vm1097_vm0, %v1537_v48, %v6735_v46  ;;  %v6753_v48 = vld [vmem:[#allocation26_spill] sm:$0xff] }
 0x3ae   : > { %v3066_v38 = vpop.permute.xlu1 %3065  ;;  %3165 = vrot.lane.b32.xlu0 %v5522_v57, %s4077_s1  ;;  %3197 = vrot.lane.b32.xlu2 %v5526_v44, %s4078_s27  ;;  %v6736_v44 = vld [vmem:[#allocation49_spill] sm:$0xff]  ;;  %s3989_s1 = scalar_lea.hbm %s3988_s19, 64 }
 0x3af   : > { %p3990_p1 = scmp.ne.s32.totalorder %s3988_s19, %s3989_s1 }
 0x3b0   : > { %v3068_v27 = vpop.permute.xlu2 %3067  ;;  %v3002_v7 = vpop.permute.xlu0 %3001 }
 0x3b1   : > { %v3401_v35 = vsel %vm3396_vm4, %v5852_v4, %v3002_v7  ;;  %v1348_v7 = vsel %vm1097_vm0, %v6753_v48, %v1347_v45  ;;  %p3991_p4 = pnand %p3990_p1, %p4185_p5 }
 0x3b2   : > { %v3410_v58 = vsel %vm3405_vm5, %v3401_v35, %v3034_v55  ;;  %v1830_v55 = vsel %vm1097_vm0, %v1829_v29, %v6743_v34  ;;  %v1356_v29 = vperm.slane %v1348_v7, %v4331_v49 }
 0x3b3   : > { %v6022_v57 = vsel %vm3414_vm6, %v3410_v58, %v3066_v38  ;;  %v1836_v23 = vperm.slane %v1830_v55, %v4383_v50  ;;  %v6752_v38 = vld [vmem:[#allocation18_spill] sm:$0xff]  ;;  %p3992_p8 = pneg %p3991_p4 }
 0x3b4   : > { %3251 = vrot.lane.b32.xlu1 %v1538_v19, %s4080_s7  ;;  %v1324_v63 = vsel %vm1097_vm0, %v6752_v38, %v1323_v30  ;;  %v6754_v19 = vld [vmem:[#allocation28_spill] sm:$0xff]  ;;  %v1407_v34 = vrot.slane %v1356_v29, 4 }
 0x3b5   : > { %v1875_v46 = vrot.slane %v1836_v23, 4  ;;  %v1332_v9 = vperm.slane %v1324_v63, %v4331_v49 }
 0x3b6   : > { %v3072_v39 = vpop.permute.xlu1 %3071  ;;  %3187 = vrot.lane.b32.xlu0 %v6736_v44, %s4078_s27  ;;  %3219 = vrot.lane.b32.xlu2 %v6737_v41, %s4079_s22  ;;  %v1873_v41 = vrot.slane %v1860_v14, 4 }
 0x3b7   : > { %v1383_v2 = vrot.slane %v1332_v9, 4 }
 0x3b8   : > { %v6028_v26 = vpop.permute.xlu2 %3089  ;;  %v3008_v4 = vpop.permute.xlu0 %3007 }
 0x3b9   : > { %v3404_v3 = vsel %vm3396_vm4, %v5916_v1, %v3008_v4  ;;  %v1344_v4 = vperm.slane %v1336_v53, %v4331_v49  ;;  %v6760_v53 = vld [vmem:[#allocation77_spill] sm:$0xff] }
 0x3ba   : > { %v3413_v52 = vsel %vm3405_vm5, %v3404_v3, %v3040_v6  ;;  %v6746_v6 = vld [vmem:[#allocation109_spill] sm:$0xff]  ;;  %v1941_v38 = vrot.slane %v6760_v53, 4  ;;  %v6770_v53 = vld [vmem:[#allocation123_spill] sm:$0xff] }
 0x3bb   : > { %v6036_v8 = vsel %vm3414_vm6, %v3413_v52, %v3072_v39  ;;  %v6755_v39 = vld [vmem:[#allocation108_spill] sm:$0xff]  ;;  %v1876_v52 = vsel %vm1097_vm0, %v1860_v14, %v1875_v46  ;;  %v1384_v14 = vsel %vm1097_vm0, %v1344_v4, %v1383_v2  ;;  %v6767_v2 = vld [vmem:[#allocation121_spill] sm:$0xff] }
 0x3bc   : > { %3257 = vrot.lane.b32.xlu1 %v6738_v25, %s4080_s7  ;;  %v6756_v25 = vld [vmem:[#allocation111_spill] sm:$0xff] }
 0x3be   : > { %v3094_v5 = vpop.permute.xlu1 %3093  ;;  %3193 = vrot.lane.b32.xlu0 %v6741_v33, %s4078_s27  ;;  %3225 = vrot.lane.b32.xlu2 %v6742_v18, %s4079_s22  ;;  %v1874_v33 = vsel %vm1097_vm0, %v1873_v41, %v1836_v23 }
 0x3c0   : > { %v6044_v1 = vpop.permute.xlu2 %3095  ;;  %v3030_v56 = vpop.permute.xlu0 %3029 }
 0x3c1   : > { %v3408_v20 = vsel %vm3405_vm5, %v5932_v59, %v3030_v56  ;;  %v2389_v59 = vrot.slane %v6746_v6, 4  ;;  %v1381_v56 = vrot.slane %v1344_v4, 4  ;;  %v6762_v4 = vld [vmem:[#allocation76_spill] sm:$0xff] }
 0x3c2   : > { %v3417_v21 = vsel %vm3414_vm6, %v3408_v20, %v3062_v31  ;;  %v2413_v31 = vrot.slane %v6749_v61, 4  ;;  %v6757_v20 = vld [vmem:[#allocation70_spill] sm:$0xff]  ;;  %v6758_v61 = vld [vmem:[#allocation84_spill] sm:$0xff] }
 0x3c3   : > { %v6056_v22 = vsel %vm3423_vm7, %v3417_v21, %v3094_v5 }
 0x3c4   : > { %3263 = vrot.lane.b32.xlu1 %v5718_v47, %s4080_s7  ;;  %v6750_v47 = vld [vmem:[#allocation20_spill] sm:$0xff]  ;;  %v2414_v37 = vsel %vm1097_vm0, %v2413_v31, %v6756_v25  ;;  %v1965_v31 = vrot.slane %v6758_v61, 4 }
 0x3c5   : > { %v1359_v32 = vrot.slane %v6750_v47, 4  ;;  %v2420_v18 = vperm.slane %v2414_v37, %v4383_v50  ;;  %v6759_v47 = vld [vmem:[#allocation117_spill] sm:$0xff]  ;;  %v6763_v37 = vld [vmem:[#allocation122_spill] sm:$0xff] }
 0x3c6   : > { %v3100_v40 = vpop.permute.xlu1 %3099  ;;  %3199 = vrot.lane.b32.xlu0 %v5742_v54, %s4078_s27  ;;  %3231 = vrot.lane.b32.xlu2 %v5734_v17, %s4079_s22  ;;  %v2390_v17 = vsel %vm1097_vm0, %v2389_v59, %v6755_v39  ;;  %v6761_v39 = vld [vmem:[#allocation82_spill] sm:$0xff] }
 0x3c7   : > { %v1360_v54 = vsel %vm1097_vm0, %v6754_v19, %v1359_v32  ;;  %v2396_v12 = vperm.slane %v2390_v17, %v4383_v50  ;;  %v2433_v43 = vrot.slane %v2420_v18, 4  ;;  %v6127_v32 = vperm.slane %v1384_v14, %v4383_v50 }
 0x3c8   : > { %v6076_v35 = vpop.permute.xlu2 %3101  ;;  %v3036_v58 = vpop.permute.xlu0 %3035  ;;  %v1966_v17 = vsel %vm1097_vm0, %v1965_v31, %v6761_v39  ;;  %v6771_v39 = vld [vmem:[#allocation50_spill] sm:$0xff] }
 0x3c9   : > { %v3411_v44 = vsel %vm3405_vm5, %v5954_v60, %v3036_v58  ;;  %v1368_v60 = vperm.slane %v1360_v54, %v4331_v49  ;;  %v2435_v28 = vrot.slane %v2396_v12, 4  ;;  %v2434_v45 = vsel %vm1097_vm0, %v2433_v43, %v2396_v12 }
 0x3ca   : > { %v3420_v3 = vsel %vm3414_vm6, %v3411_v44, %v3068_v27  ;;  %v1972_v25 = vperm.slane %v1966_v17, %v4383_v50 }
 0x3cb   : > { %v6092_v5 = vsel %vm3423_vm7, %v3420_v3, %v3100_v40  ;;  %v1405_v55 = vrot.slane %v1368_v60, 4  ;;  %v1408_v49 = vsel %vm1097_vm0, %v1368_v60, %v1407_v34  ;;  %v2436_v59 = vsel %vm1097_vm0, %v2420_v18, %v2435_v28  ;;  %v6764_v60 = vld [vmem:[#allocation86_spill] sm:$0xff] }
 0x3cc   : > { %3285 = vrot.lane.b32.xlu1 %v1876_v52, %s4081_s20  ;;  %v1382_v40 = vsel %vm1097_vm0, %v1381_v56, %v1332_v9  ;;  %v6117_v30 = vperm.slane %v1408_v49, %v4383_v50  ;;  %v1989_v12 = vrot.slane %v6764_v60, 4  ;;  %v1985_v34 = vrot.slane %v1972_v25, 4  ;;  %v6776_v60 = vld [vmem:[#allocation100_spill] sm:$0xff] }
 0x3ce   : > { %v3122_v27 = vpop.permute.xlu1 %3121  ;;  %3221 = vrot.lane.b32.xlu0 %v6757_v20, %s4079_s22  ;;  %3253 = vrot.lane.b32.xlu2 %v1874_v33, %s4080_s7  ;;  %v1429_v7 = vrot.slane %v6117_v30, 4 }
 0x3d0   : > { %v6102_v21 = vpop.permute.xlu2 %3123  ;;  %v3058_v0 = vpop.permute.xlu0 %3057  ;;  %v1430_v54 = vsel %vm1097_vm0, %v1429_v7, %v6127_v32 }
 0x3d1   : > { %v3415_v23 = vsel %vm3414_vm6, %v5972_v36, %v3058_v0  ;;  %v1406_v36 = vsel %vm1097_vm0, %v1405_v55, %v1356_v29  ;;  %v2749_v29 = vrot.slane %v6763_v37, 4  ;;  %v6766_v0 = vld [vmem:[#allocation83_spill] sm:$0xff] }
 0x3d2   : > { %v3424_v6 = vsel %vm3423_vm7, %v3415_v23, %v6028_v26  ;;  %v1388_v26 = vperm.slane %v1382_v40, %v4383_v50  ;;  %v1412_v42 = vperm.slane %v1406_v36, %v4383_v50  ;;  %v1990_v28 = vsel %vm1097_vm0, %v1989_v12, %v6766_v0  ;;  %v6769_v36 = vld [vmem:[#allocation124_spill] sm:$0xff]  ;;  %v6777_v0 = vld [vmem:[#allocation71_spill] sm:$0xff] }
 0x3d3   : > { %v6114_v24 = vsel %vm3432_vm8, %v3424_v6, %v3122_v27  ;;  %v6765_v27 = vld [vmem:[#allocation120_spill] sm:$0xff]  ;;  %v2750_v49 = vsel %vm1097_vm0, %v2749_v29, %v6767_v2  ;;  %v6768_v6 = vld [vmem:[#allocation119_spill] sm:$0xff] }
 0x3d4   : > { %3291 = vrot.lane.b32.xlu1 %v2436_v59, %s4081_s20  ;;  %v1427_v46 = vrot.slane %v1388_v26, 4  ;;  %v1425_v44 = vrot.slane %v1412_v42, 4  ;;  %v2725_v33 = vrot.slane %v6765_v27, 4  ;;  %v2756_v14 = vperm.slane %v2750_v49, %v4383_v50  ;;  %v6775_v29 = vld [vmem:[#allocation99_spill] sm:$0xff] }
 0x3d6   : > { %v3128_v51 = vpop.permute.xlu1 %3127  ;;  %3227 = vrot.lane.b32.xlu0 %v6759_v47, %s4079_s22  ;;  %3259 = vrot.lane.b32.xlu2 %v2434_v45, %s4080_s7  ;;  %v1426_v52 = vsel %vm1097_vm0, %v1425_v44, %v1388_v26  ;;  %v2726_v59 = vsel %vm1097_vm0, %v2725_v33, %v6768_v6  ;;  %v2769_v47 = vrot.slane %v2756_v14, 4  ;;  %v6779_v6 = vld [vmem:[#allocation118_spill] sm:$0xff] }
 0x3d7   : > { %v2732_v45 = vperm.slane %v2726_v59, %v4383_v50  ;;  %v6780_v59 = vld [vmem:[#allocation116_spill] sm:$0xff] }
 0x3d8   : > { %v3130_v63 = vpop.permute.xlu2 %3129  ;;  %v3064_v48 = vpop.permute.xlu0 %3063 }
 0x3d9   : > { %v3418_v58 = vsel %vm3414_vm6, %v5984_v10, %v3064_v48  ;;  %v1942_v10 = vsel %vm1097_vm0, %v1941_v38, %v6762_v4  ;;  %v2771_v48 = vrot.slane %v2732_v45, 4  ;;  %v6772_v4 = vld [vmem:[#allocation51_spill] sm:$0xff] }
 0x3da   : > { %v3427_v19 = vsel %vm3423_vm7, %v3418_v58, %v6044_v1  ;;  %v1428_v1 = vsel %vm1097_vm0, %v1412_v42, %v1427_v46  ;;  %v1948_v9 = vperm.slane %v1942_v10, %v4383_v50  ;;  %v2770_v58 = vsel %vm1097_vm0, %v2769_v47, %v2732_v45  ;;  %v6773_v10 = vld [vmem:[#allocation52_spill] sm:$0xff] }
 0x3db   : > { %v6142_v41 = vsel %vm3432_vm8, %v3427_v19, %v3128_v51  ;;  %v2773_v51 = vrot.slane %v6769_v36, 4  ;;  %v2772_v46 = vsel %vm1097_vm0, %v2756_v14, %v2771_v48 }
 0x3dc   : > { %3313 = vrot.lane.b32.xlu1 %v1430_v54, %s4082_s10  ;;  %v1987_v23 = vrot.slane %v1948_v9, 4  ;;  %v1986_v40 = vsel %vm1097_vm0, %v1985_v34, %v1948_v9 }
 0x3dd   : > { %v2774_v38 = vsel %vm1097_vm0, %v2773_v51, %v6770_v53 }
 0x3de   : > { %v3134_v3 = vpop.permute.xlu1 %3133  ;;  %3249 = vrot.lane.b32.xlu0 %v1426_v52, %s4080_s7  ;;  %3281 = vrot.lane.b32.xlu2 %v1428_v1, %s4081_s20  ;;  %v6774_v1 = vld [vmem:[#allocation97_spill] sm:$0xff] }
 0x3e0   : > { %v3136_v18 = vpop.permute.xlu2 %3135  ;;  %v3070_v56 = vpop.permute.xlu0 %3069 }
 0x3e1   : > { %v3421_v20 = vsel %vm3414_vm6, %v5996_v13, %v3070_v56 }
 0x3e2   : > { %v3430_v55 = vsel %vm3423_vm7, %v3421_v20, %v6076_v35  ;;  %v1988_v35 = vsel %vm1097_vm0, %v1972_v25, %v1987_v23 }
 0x3e3   : > { %v6165_v43 = vsel %vm3432_vm8, %v3430_v55, %v3134_v3 }
 0x3e4   : > { %3319 = vrot.lane.b32.xlu1 %v1990_v28, %s4082_s10  ;;  %v6778_v28 = vld [vmem:[#allocation69_spill] sm:$0xff] }
 0x3e6   : > { %v3156_v13 = vpop.permute.xlu1 %3155  ;;  %3255 = vrot.lane.b32.xlu0 %v1986_v40, %s4080_s7  ;;  %3287 = vrot.lane.b32.xlu2 %v1988_v35, %s4081_s20  ;;  %v1431_v35 = vrot.slane %v6127_v32, 4 }
 0x3e8   : > { %v3158_v26 = vpop.permute.xlu2 %3157  ;;  %v3092_v61 = vpop.permute.xlu0 %3091  ;;  %v1432_v51 = vsel %vm1097_vm0, %v6117_v30, %v1431_v35  ;;  %v6782_v30 = vld [vmem:[#allocation125_spill] sm:$0xff]  ;;  %v3904_v35 = vld [vmem:[#allocation5 + $0x7] ss:$0 sm:$0xff]  ;;  %vm3585_vm0 = vcmask 261120  }
 0x3e9   : > { %v3425_v31 = vsel %vm3423_vm7, %v6008_v62, %v3092_v61 }
 0x3ea   : > { %v3434_v42 = vsel %vm3432_vm8, %v3425_v31, %v6102_v21 }
 0x3eb   : > { %v6184_v7 = vsel %vm3441_vm9, %v3434_v42, %v3156_v13  ;;  %v6781_v42 = vld [vmem:[#allocation87_spill] sm:$0xff] }
 0x3ec   : > { %3325 = vrot.lane.b32.xlu1 %v2774_v38, %s4082_s10 }
 0x3ee   : > { %v3162_v50 = vpop.permute.xlu1 %3161  ;;  %3261 = vrot.lane.b32.xlu0 %v2770_v58, %s4080_s7  ;;  %3293 = vrot.lane.b32.xlu2 %v2772_v46, %s4081_s20  ;;  %s3993_s7 = scalar_lea.hbm %s6446_s3, 128 }
 0x3ef   : > { %p3995_p12 = scmp.lt.s32.totalorder %s3993_s7, %s3989_s1 }
 0x3f0   : > { %v3164_v62 = vpop.permute.xlu2 %3163  ;;  %v3098_v21 = vpop.permute.xlu0 %3097 }
 0x3f1   : > { %v3428_v19 = vsel %vm3423_vm7, %v6022_v57, %v3098_v21  ;;  %p3996_p13 = por %p3995_p12, %p3994_p10 }
 0x3f2   : > { %v3437_v54 = vsel %vm3432_vm8, %v3428_v19, %v3130_v63 }
 0x3f3   : > { %v6196_v17 = vsel %vm3441_vm9, %v3437_v54, %v3162_v50  ;;  %p3997_p0 = pnand %p3996_p13, %p3992_p8 }
 0x3f4   : > { %3347 = vrot.lane.b32.xlu1 %v6771_v39, %s4083_s24 }
 0x3f6   : > { %v3168_v44 = vpop.permute.xlu1 %3167  ;;  %3283 = vrot.lane.b32.xlu0 %v6772_v4, %s4081_s20  ;;  %3315 = vrot.lane.b32.xlu2 %v6773_v10, %s4082_s10 }
 0x3f8   : > { %v3186_v3 = vpop.permute.xlu2 %3185  ;;  %v3104_v52 = vpop.permute.xlu0 %3103 }
 0x3f9   : > { %v3431_v57 = vsel %vm3423_vm7, %v6036_v8, %v3104_v52 }
 0x3fa   : > { %v3440_v63 = vsel %vm3432_vm8, %v3431_v57, %v3136_v18 }
 0x3fb   : > { %v6208_v25 = vsel %vm3441_vm9, %v3440_v63, %v3168_v44 }
 0x3fc   : > { %3353 = vrot.lane.b32.xlu1 %v6774_v1, %s4083_s24 }
 0x3fe   : > { %v3190_v37 = vpop.permute.xlu1 %3189  ;;  %3289 = vrot.lane.b32.xlu0 %v6775_v29, %s4081_s20  ;;  %3321 = vrot.lane.b32.xlu2 %v6776_v60, %s4082_s10 }
 0x400   : > { %v3192_v12 = vpop.permute.xlu2 %3191  ;;  %v3126_v9 = vpop.permute.xlu0 %3125 }
 0x401   : > { %v3435_v8 = vsel %vm3432_vm8, %v6056_v22, %v3126_v9 }
 0x402   : > { %v3444_v27 = vsel %vm3441_vm9, %v3435_v8, %v3158_v26  ;;  %v3902_v8 = vld [vmem:[#allocation5 + $0x4] ss:$0 sm:$0xff] }
 0x403   : > { %v6220_v33 = vsel %vm3450_vm10, %v3444_v27, %v3190_v37 }
 0x404   : > { %3359 = vrot.lane.b32.xlu1 %v5722_v15, %s4083_s24 }
 0x406   : > { %v3196_v18 = vpop.permute.xlu1 %3195  ;;  %3295 = vrot.lane.b32.xlu0 %v5704_v16, %s4081_s20  ;;  %3327 = vrot.lane.b32.xlu2 %v5737_v11, %s4082_s10 }
 0x408   : > { %v3198_v56 = vpop.permute.xlu2 %3197  ;;  %v3132_v20 = vpop.permute.xlu0 %3131 }
 0x409   : > { %v3438_v22 = vsel %vm3432_vm8, %v6092_v5, %v3132_v20 }
 0x40a   : > { %v3447_v34 = vsel %vm3441_vm9, %v3438_v22, %v3164_v62 }
 0x40b   : > { %v6230_v55 = vsel %vm3450_vm10, %v3447_v34, %v3196_v18 }
 0x40e   : > { %v3218_v15 = vpop.permute.xlu1 %3217  ;;  %3317 = vrot.lane.b32.xlu0 %v6777_v0, %s4082_s10  ;;  %3349 = vrot.lane.b32.xlu2 %v6778_v28, %s4083_s24 }
 0x410   : > { %v3154_v16 = vpop.permute.xlu0 %3153  ;;  %v3220_v11 = vpop.permute.xlu2 %3219 }
 0x411   : > { %v3442_v2 = vsel %vm3441_vm9, %v6114_v24, %v3154_v16  ;;  %v3903_v16 = vld [vmem:[#allocation5 + $0x6] ss:$0 sm:$0xff] }
 0x412   : > { %v3451_v5 = vsel %vm3450_vm10, %v3442_v2, %v3186_v3 }
 0x413   : > { %v6240_v49 = vsel %vm3459_vm11, %v3451_v5, %v3218_v15 }
 0x416   : > { %v3224_v23 = vpop.permute.xlu1 %3223  ;;  %3323 = vrot.lane.b32.xlu0 %v6779_v6, %s4082_s10  ;;  %3355 = vrot.lane.b32.xlu2 %v6780_v59, %s4083_s24 }
 0x418   : > { %v3160_v13 = vpop.permute.xlu0 %3159  ;;  %v3226_v14 = vpop.permute.xlu2 %3225 }
 0x419   : > { %v3445_v40 = vsel %vm3441_vm9, %v6142_v41, %v3160_v13 }
 0x41a   : > { %v3454_v24 = vsel %vm3450_vm10, %v3445_v40, %v3192_v12 }
 0x41b   : > { %v6251_v36 = vsel %vm3459_vm11, %v3454_v24, %v3224_v23 }
 0x41e   : > { %v3230_v45 = vpop.permute.xlu1 %3229  ;;  %3345 = vrot.lane.b32.xlu0 %v1432_v51, %s4083_s24 }
 0x420   : > { %v3166_v26 = vpop.permute.xlu0 %3165  ;;  %v3232_v31 = vpop.permute.xlu2 %3231 }
 0x421   : > { %v3448_v61 = vsel %vm3441_vm9, %v6165_v43, %v3166_v26 }
 0x422   : > { %v3457_v41 = vsel %vm3450_vm10, %v3448_v61, %v3198_v56 }
 0x423   : > { %v6260_v32 = vsel %vm3459_vm11, %v3457_v41, %v3230_v45 }
 0x426   : > { %v3252_v47 = vpop.permute.xlu1 %3251  ;;  %3351 = vrot.lane.b32.xlu0 %v6781_v42, %s4083_s24 }
 0x428   : > { %v3188_v53 = vpop.permute.xlu0 %3187  ;;  %v3254_v48 = vpop.permute.xlu2 %3253 }
 0x429   : > { %v3452_v29 = vsel %vm3450_vm10, %v6184_v7, %v3188_v53 }
 0x42a   : > { %v3461_v60 = vsel %vm3459_vm11, %v3452_v29, %v3220_v11 }
 0x42b   : > { %v3470_v9 = vsel %vm3468_vm12, %v3461_v60, %v3252_v47  ;;  %v3905_v47 = vld [vmem:[#allocation5 + $0x5] ss:$0 sm:$0xff] }
 0x42e   : > { %v3258_v38 = vpop.permute.xlu1 %3257  ;;  %3357 = vrot.lane.b32.xlu0 %v6782_v30, %s4083_s24 }
 0x430   : > { %v3194_v50 = vpop.permute.xlu0 %3193  ;;  %v6266_v43 = vpop.permute.xlu2 %3259 }
 0x431   : > { %v3455_v56 = vsel %vm3450_vm10, %v6196_v17, %v3194_v50 }
 0x432   : > { %v3464_v15 = vsel %vm3459_vm11, %v3455_v56, %v3226_v14  ;;  %v3907_v56 = vld [vmem:[#allocation5] ss:$0 sm:$0xff] }
 0x433   : > { %v3473_v28 = vsel %vm3468_vm12, %v3464_v15, %v3258_v38 }
 0x436   : > { %v3264_v58 = vpop.permute.xlu1 %3263 }
 0x438   : > { %v3200_v46 = vpop.permute.xlu0 %3199  ;;  %v6268_v19 = vpop.permute.xlu2 %3281 }
 0x439   : > { %v3458_v2 = vsel %vm3450_vm10, %v6208_v25, %v3200_v46 }
 0x43a   : > { %v3467_v59 = vsel %vm3459_vm11, %v3458_v2, %v3232_v31 }
 0x43b   : > { %v3476_v40 = vsel %vm3468_vm12, %v3467_v59, %v3264_v58 }
 0x43e   : > { %v3286_v62 = vpop.permute.xlu1 %3285 }
 0x440   : > { %v3222_v21 = vpop.permute.xlu0 %3221  ;;  %v6272_v44 = vpop.permute.xlu2 %3287 }
 0x441   : > { %v3462_v25 = vsel %vm3459_vm11, %v6220_v33, %v3222_v21 }
 0x442   : > { %v3471_v41 = vsel %vm3468_vm12, %v3462_v25, %v3254_v48 }
 0x443   : > { %v3480_v42 = vsel %vm3477_vm13, %v3471_v41, %v3286_v62 }
 0x446   : > { %v6270_v54 = vpop.permute.xlu1 %3291 }
 0x448   : > { %v3228_v39 = vpop.permute.xlu0 %3227  ;;  %v6280_v52 = vpop.permute.xlu2 %3293 }
 0x449   : > { %v3465_v33 = vsel %vm3459_vm11, %v6230_v55, %v3228_v39 }
 0x44a   : > { %v3474_v58 = vsel %vm3468_vm12, %v3465_v33, %v6266_v43 }
 0x44b   : > { %v3483_v48 = vsel %vm3477_vm13, %v3474_v58, %v6270_v54 }
 0x44e   : > { %v6274_v4 = vpop.permute.xlu1 %3313 }
 0x450   : > { %v6276_v10 = vpop.permute.xlu0 %3249  ;;  %v3316_v37 = vpop.permute.xlu2 %3315 }
 0x456   : > { %v6278_v3 = vpop.permute.xlu1 %3319 }
 0x458   : > { %v6282_v57 = vpop.permute.xlu0 %3255  ;;  %v3322_v22 = vpop.permute.xlu2 %3321 }
 0x45e   : > { %v6284_v63 = vpop.permute.xlu1 %3325 }
 0x460   : > { %v6286_v1 = vpop.permute.xlu0 %3261  ;;  %v3328_v13 = vpop.permute.xlu2 %3327 }
 0x466   : > { %v3348_v12 = vpop.permute.xlu1 %3347 }
 0x468   : > { %v3284_v27 = vpop.permute.xlu0 %3283  ;;  %v3350_v31 = vpop.permute.xlu2 %3349 }
 0x469   : > { %v3479_v18 = vsel %vm3477_vm13, %v3470_v9, %v3284_v27 }
 0x46a   : > { %v3488_v20 = vsel %vm3486_vm15, %v3479_v18, %v3316_v37  ;;  %v3469_v37 = vsel %vm3468_vm12, %v6240_v49, %v6276_v10  ;;  %v3472_v49 = vsel %vm3468_vm12, %v6251_v36, %v6282_v57 }
 0x46b   : > { %v6297_v7 = vsel %vm3495_vm14, %v3488_v20, %v3348_v12  ;;  %v3478_v43 = vsel %vm3477_vm13, %v3469_v37, %v6268_v19  ;;  %v3481_v12 = vsel %vm3477_vm13, %v3472_v49, %v6272_v44 }
 0x46c   : > { %v3546_v34 = vmul.f32 %v3902_v8, %v6297_v7  ;;  %v3487_v54 = vsel %vm3486_vm15, %v3478_v43, %v6274_v4  ;;  %v3490_v19 = vsel %vm3486_vm15, %v3481_v12, %v6278_v3  ;;  %v3475_v4 = vsel %vm3468_vm12, %v6260_v32, %v6286_v1 }
 0x46d   : > { %v3484_v36 = vsel %vm3477_vm13, %v3475_v4, %v6280_v52  ;;  %v3521_v32 = vmul.f32 %v3907_v56, %v6297_v7  ;;  %v3906_v52 = vld [vmem:[#allocation5 + $0x2] ss:$0 sm:$0xff] }
 0x46e   : > { %3563 = vrot.lane.b32.xlu0 %v3546_v34, %s4084_s25  ;;  %v3354_v0 = vpop.permute.xlu1 %3353  ;;  %v3493_v44 = vsel %vm3486_vm15, %v3484_v36, %v6284_v63 }
 0x470   : > { %v3290_v11 = vpop.permute.xlu0 %3289  ;;  %v3356_v21 = vpop.permute.xlu2 %3355 }
 0x471   : > { %v3482_v17 = vsel %vm3477_vm13, %v3473_v28, %v3290_v11 }
 0x472   : > { %v3491_v5 = vsel %vm3486_vm15, %v3482_v17, %v3322_v22  ;;  %v6783_v22 = vld [vmem:[#allocation11_spill] sm:$0xff] }
 0x473   : > { %v6308_v23 = vsel %vm3495_vm14, %v3491_v5, %v3354_v0  ;;  %v6784_v0 = vld [vmem:[#allocation13_spill] sm:$0xff] }
 0x474   : > { %v3549_v6 = vmul.f32 %v3903_v16, %v6308_v23  ;;  %v3524_v63 = vmul.f32 %v3906_v52, %v6308_v23 }
 0x476   : > { %3569 = vrot.lane.b32.xlu0 %v3549_v6, %s4084_s25  ;;  %v3360_v51 = vpop.permute.xlu1 %3359 }
 0x478   : > { %v3296_v24 = vpop.permute.xlu0 %3295 }
 0x479   : > { %v3485_v14 = vsel %vm3477_vm13, %v3476_v40, %v3296_v24  ;;  %v6785_v40 = vld [vmem:[#allocation15_spill] sm:$0xff] }
 0x47a   : > { %v3494_v45 = vsel %vm3486_vm15, %v3485_v14, %v3328_v13  ;;  %v3908_v13 = vld [vmem:[#allocation5 + $0x1] ss:$0 sm:$0xff] }
 0x47b   : > { %v3503_v26 = vsel %vm3495_vm14, %v3494_v45, %v3360_v51 }
 0x47c   : > { %v3552_v61 = vmul.f32 %v3904_v35, %v3503_v26 }
 0x47e   : > { %3575 = vrot.lane.b32.xlu0 %v3552_v61, %s4084_s25 }
 0x480   : > { %v3318_v53 = vpop.permute.xlu0 %3317 }
 0x481   : > { %v3489_v38 = vsel %vm3486_vm15, %v3480_v42, %v3318_v53 }
 0x482   : > { %v3498_v30 = vsel %vm3495_vm14, %v3489_v38, %v3350_v31 }
 0x483   : > { %v3547_v50 = vmul.f32 %v3905_v47, %v3498_v30  ;;  %v3522_v25 = vmul.f32 %v3908_v13, %v3498_v30 }
 0x485   : > { %3565 = vrot.lane.b32.xlu1 %v3547_v50, %s4084_s25 }
 0x488   : > { %v3324_v46 = vpop.permute.xlu0 %3323 }
 0x489   : > { %v3492_v62 = vsel %vm3486_vm15, %v3483_v48, %v3324_v46 }
 0x48a   : > { %v6336_v55 = vsel %vm3495_vm14, %v3492_v62, %v3356_v21 }
 0x48b   : > { %v3550_v39 = vmul.f32 %v3903_v16, %v6336_v55  ;;  %v3909_v16 = vld [vmem:[#allocation5 + $0x3] ss:$0 sm:$0xff]  ;;  %v3525_v42 = vmul.f32 %v3906_v52, %v6336_v55 }
 0x48c   : > { %v3527_v5 = vmul.f32 %v3909_v16, %v3503_v26  ;;  %v6786_v26 = vld [vmem:[#allocation14_spill] sm:$0xff] }
 0x48d   : > { %3571 = vrot.lane.b32.xlu1 %v3550_v39, %s4084_s25 }
 0x490   : > { %v3346_v29 = vpop.permute.xlu0 %3345 }
 0x491   : > { %v3496_v60 = vsel %vm3495_vm14, %v3487_v54, %v3346_v29 }
 0x492   : > { %v3545_v10 = vmul.f32 %v3902_v8, %v3496_v60  ;;  %v3520_v11 = vmul.f32 %v3907_v56, %v3496_v60 }
 0x494   : > { %3561 = vrot.lane.b32.xlu2 %v3545_v10, %s4084_s25 }
 0x498   : > { %v3352_v9 = vpop.permute.xlu0 %3351 }
 0x499   : > { %v3499_v27 = vsel %vm3495_vm14, %v3490_v19, %v3352_v9 }
 0x49a   : > { %v3548_v18 = vmul.f32 %v3905_v47, %v3499_v27  ;;  %v3523_v24 = vmul.f32 %v3908_v13, %v3499_v27 }
 0x49c   : > { %3567 = vrot.lane.b32.xlu2 %v3548_v18, %s4084_s25 }
 0x4a0   : > { %v3358_v57 = vpop.permute.xlu0 %3357 }
 0x4a1   : > { %v3502_v3 = vsel %vm3495_vm14, %v3493_v44, %v3358_v57 }
 0x4a2   : > { %v3551_v8 = vmul.f32 %v3904_v35, %v3502_v3  ;;  %v3526_v47 = vmul.f32 %v3909_v16, %v3502_v3 }
 0x4a4   : > { %3573 = vrot.lane.b32.xlu2 %v3551_v8, %s4084_s25 }
 0x4e0   : > { %v3564_v1 = vpop.permute.xlu0 %3563 }
 0x4e1   : > { %v3587_v20 = vsel %vm3585_vm0, %v3521_v32, %v3564_v1 }
 0x4e2   : > { %v3595_v34 = vadd.f32 %v3587_v20, %v6783_v22 }
 0x4e4   : > { %3604 = vst.msk [vmem:[%s6369_s26 + $0x8] sm:$0xff] %vm3602_vm1, %v3595_v34 }
 0x4e8   : > { %v3570_v15 = vpop.permute.xlu0 %3569 }
 0x4e9   : > { %v3590_v7 = vsel %vm3585_vm0, %v3524_v63, %v3570_v15 }
 0x4ea   : > { %v3598_v28 = vadd.f32 %v3590_v7, %v6784_v0 }
 0x4ec   : > { %3607 = vst.msk [vmem:[%s6369_s26 + $0x20] sm:$0xff] %vm3602_vm1, %v3598_v28 }
 0x4ee   : > { %v3562_v17 = vpop.permute.xlu2 %3561 }
 0x4ef   : > { %v3586_v2 = vsel %vm3585_vm0, %v3520_v11, %v3562_v17 }
 0x4f0   : > { %v3594_v6 = vadd.f32 %v3586_v2, %v6783_v22  ;;  %v3576_v59 = vpop.permute.xlu0 %3575 }
 0x4f1   : > { %v3593_v23 = vsel %vm3585_vm0, %v3527_v5, %v3576_v59 }
 0x4f2   : > { %3603 = vst.msk [vmem:[%s6369_s26] sm:$0xff] %vm3602_vm1, %v3594_v6  ;;  %v3601_v35 = vadd.f32 %v3593_v23, %v6785_v40 }
 0x4f4   : > { %3610 = vst.msk [vmem:[%s6369_s26 + $0x38] sm:$0xff] %vm3602_vm1, %v3601_v35 }
 0x4f6   : > { %v3568_v14 = vpop.permute.xlu2 %3567 }
 0x4f7   : > { %v3589_v51 = vsel %vm3585_vm0, %v3523_v24, %v3568_v14  ;;  %v3566_v45 = vpop.permute.xlu1 %3565 }
 0x4f8   : > { %v3597_v61 = vadd.f32 %v3589_v51, %v6786_v26  ;;  %v3588_v41 = vsel %vm3585_vm0, %v3522_v25, %v3566_v45 }
 0x4f9   : > { %v3596_v31 = vadd.f32 %v3588_v41, %v6786_v26 }
 0x4fa   : > { %3606 = vst.msk [vmem:[%s6369_s26 + $0x18] sm:$0xff] %vm3602_vm1, %v3597_v61 }
 0x4fb   : > { %3605 = vst.msk [vmem:[%s6369_s26 + $0x10] sm:$0xff] %vm3602_vm1, %v3596_v31 }
 0x4fe   : > { %v3574_v53 = vpop.permute.xlu2 %3573 }
 0x4ff   : > { %v3592_v38 = vsel %vm3585_vm0, %v3526_v47, %v3574_v53  ;;  %v3572_v33 = vpop.permute.xlu1 %3571 }
 0x500   : > { %v3600_v30 = vadd.f32 %v3592_v38, %v6785_v40  ;;  %v3591_v50 = vsel %vm3585_vm0, %v3525_v42, %v3572_v33 }
 0x501   : > { %v3599_v58 = vadd.f32 %v3591_v50, %v6784_v0 }
 0x502   : > { %3609 = vst.msk [vmem:[%s6369_s26 + $0x30] sm:$0xff] %vm3602_vm1, %v3600_v30 }
 0x503   : > { %3608 = vst.msk [vmem:[%s6369_s26 + $0x28] sm:$0xff] %vm3602_vm1, %v3599_v58 }
 0x504   : > { %4000 = shalt.err (!%p3997_p0)
}
 0x505   : > { %s4085_s6 = smov 128  }
 0x506   : > { %3751 = dma.vmem_to_hbm [thread:$0]  (%p4185_p5), %s3627_s4, 1024, %s3629_s15, %s3612_s11, %s4085_s6, %s4085_s6, %s4072_s21  }
 0x507 PF: > { %s3643_s24 = sand.u32 1, %s4039_s12   ;;  %p3762_p3 = pnand %p3730_p11, %p4155_p6 }
 0x508   : > { %s3644_s25 = scalar_lea.sflag [#allocation4], %s3643_s24 }
 0x509   : > { %p3763_p7 = pneg %p3762_p3 }
 0x50b   : > { %4034 = dma.done.wait (%p3763_p7), %s3644_s25, 1024  }
 0x50c   : > { %4036 = vsyncadd (%p3763_p7), %s3644_s25, 4294966272  ;;  %s20_s17 = sadd.s32 1, %s4059_s17   ;;  %s6787_s12 = smov %s4043_s13 }
 0x50d   : > { %p17_p9 = scmp.ge.s32.totalorder %s20_s17, 4   ;;  %s6788_s13 = smov %s4047_s14 }
 0x50e   : > { %s6789_s14 = smov %s4194_s18  ;;  %s6790_s15 = smov %s4055_s16 }
 0x50f   : > { %s6791_s16 = smov %s6793_s5  ;;  %19 = sbr.rel (!%p17_p9) target bundleno = 9 (0x9), region = 82 }
 0x514   :  { %3650 = vsyncpa [#allocation3], 1 }
 0x515   :  { %3652 = vsyncpa [#allocation3 + $0x1], 1 }
 0x516   :  { %3653 = vsyncpa [#allocation6], 1 }
 0x517   :  { %3654 = vsyncpa [#allocation4], 1 }
 0x518   :  { %3656 = vsyncpa [#allocation4 + $0x1], 1 }

</bundles_post_ra>
